<compile_context>
chip_gen: v7x
topology: tpu7x:2x2x1
jax: 0.10.0
libtpu: 0.0.40
codegen_flags: <defaults>
</compile_context>

<pallas_src>
import jax
import jax.numpy as jnp
from jax.experimental import pallas as pl
from jax.experimental.pallas import tpu as pltpu

HIDDEN = 128          # latent width (lane-dense)
NODE_IN = 8
EDGE_IN = 4
OUT_DIM = 2
IN_PAD = 128          # node/edge input features zero-padded to full lane width
OUT_PAD = 128         # lane-dense decoder output, sliced to OUT_DIM outside
NUM_MP = 2
LN_EPS = 1e-5

# ---- coalesced parameter layouts --------------------------------------------
# square (H, H) bf16 weight stack indices
SQ_NE_W1, SQ_NE_W2, SQ_EE_W1, SQ_EE_W2, SQ_DE_W1, SQ_DE_W2 = 0, 1, 2, 3, 4, 5
SQ_MP = 6                       # + 3*step : [me_w1e, me_w2, mn_w2]
NUM_SQ = 6 + 3 * NUM_MP
# (1, H) f32 row slab indices: each group is (b1, b2, gamma, beta)
ROW_NE = 0
ROW_EE = 4
ROW_ME = 8                      # + 4*step
ROW_MN = 8 + 4 * NUM_MP         # + 4*step
ROW_DE = 8 + 8 * NUM_MP         # (b1, b2) only
NUM_VEC_ROWS = ROW_DE + 2


# ----------------------------------------------------------------------------
# In-kernel helpers
# ----------------------------------------------------------------------------
def _ln(y, g, b):
    """LayerNorm, single-pass variance, clamped against cancellation."""
    mean = jnp.mean(y, axis=-1, keepdims=True)
    var = jnp.maximum(jnp.mean(y * y, axis=-1, keepdims=True) - mean * mean, 0.0)
    return (y - mean) * jax.lax.rsqrt(var + LN_EPS) * g + b


def _dot(a_bf, w_bf):
    """bf16 MXU matmul with f32 accumulation (both operands already bf16)."""
    return jnp.dot(a_bf, w_bf, preferred_element_type=jnp.float32)


# ----------------------------------------------------------------------------
# Fused MeshGraphNets kernel: encoder -> NUM_MP processor blocks -> decoder
# ----------------------------------------------------------------------------
def _mgn_fused_kernel(
    node_x_ref, edge_x_ref, send_ref, recv_ref, recv_row_ref,
    w_sq_ref, w_sd_ref, w_n1_ref, vecs_ref,
    out_ref,
):
    n = node_x_ref.shape[0]
    e = edge_x_ref.shape[0]
    H = HIDDEN

    vecs = vecs_ref[...]                       # (NUM_VEC_ROWS, H) f32, one load

    def row(i):                                # static slice -> (1, H) f32
        return vecs[i:i + 1, :]

    def mlp(x_bf, w1_bf, b1, w2_bf, b2):
        h = jnp.maximum(_dot(x_bf, w1_bf) + b1, 0.0)
        return _dot(h.astype(jnp.bfloat16), w2_bf) + b2

    # --- graph structure (small-graph one-hot path) --------------------------
    # merged endpoint gather: one (E, 2N) one-hot over [senders | receivers+N]
    col2 = jax.lax.broadcasted_iota(jnp.int32, (e, 2 * n), 1)
    gat_sr = jnp.logical_or(col2 == send_ref[...],
                            col2 == recv_ref[...] + n).astype(jnp.bfloat16)
    # receiver scatter-add one-hot (N, E)
    row_ids = jax.lax.broadcasted_iota(jnp.int32, (n, e), 0)
    sc_r = (row_ids == recv_row_ref[...]).astype(jnp.bfloat16)

    # --- encoder --------------------------------------------------------------
    nodes = _ln(mlp(node_x_ref[...].astype(jnp.bfloat16),
                    w_sq_ref[SQ_NE_W1], row(ROW_NE + 0),
                    w_sq_ref[SQ_NE_W2], row(ROW_NE + 1)),
                row(ROW_NE + 2), row(ROW_NE + 3))                    # (N, H) f32
    edges = _ln(mlp(edge_x_ref[...].astype(jnp.bfloat16),
                    w_sq_ref[SQ_EE_W1], row(ROW_EE + 0),
                    w_sq_ref[SQ_EE_W2], row(ROW_EE + 1)),
                row(ROW_EE + 2), row(ROW_EE + 3))                    # (E, H) f32

    # bf16 shadows, refreshed once per residual add
    nodes_bf = nodes.astype(jnp.bfloat16)
    edges_bf = edges.astype(jnp.bfloat16)

    # --- processor: NUM_MP message-passing blocks (latents stay in VMEM) -----
    for step in range(NUM_MP):
        me = ROW_ME + 4 * step
        mn = ROW_MN + 4 * step
        sq = SQ_MP + 3 * step

        # edge update: MLP([e, x_src, x_dst]) + residual
        #   fused W1_src|W1_dst : one (N, 2H) matmul, slice at the 128 boundary
        nsnd = _dot(nodes_bf, w_sd_ref[step]).astype(jnp.bfloat16)   # (N, 2H)
        stacked = jnp.concatenate([nsnd[:, :H], nsnd[:, H:]], axis=0)  # (2N, H)
        pre = (_dot(edges_bf, w_sq_ref[sq + 0])        # edges @ W1_e
               + _dot(gat_sr, stacked)                 # ns[send] + nd[recv]
               + row(me + 0))
        h = jnp.maximum(pre, 0.0).astype(jnp.bfloat16)
        msg = _ln(_dot(h, w_sq_ref[sq + 1]) + row(me + 1),
                  row(me + 2), row(me + 3))
        edges = edges + msg                            # fused residual
        edges_bf = edges.astype(jnp.bfloat16)

        # aggregation: scatter-add of edge messages onto receivers (MXU)
        agg = _dot(sc_r, edges_bf)                     # (N, H) f32

        # node update: MLP([x, agg]) + residual, single K=2H matmul
        xa = jnp.concatenate([nodes_bf, agg.astype(jnp.bfloat16)], axis=1)
        pre = _dot(xa, w_n1_ref[step]) + row(mn + 0)
        h = jnp.maximum(pre, 0.0).astype(jnp.bfloat16)
        upd = _ln(_dot(h, w_sq_ref[sq + 2]) + row(mn + 1),
                  row(mn + 2), row(mn + 3))
        nodes = nodes + upd                            # fused residual
        nodes_bf = nodes.astype(jnp.bfloat16)

    # --- decoder (no LayerNorm), lane-dense padded output ---------------------
    out_ref[...] = mlp(nodes_bf,
                       w_sq_ref[SQ_DE_W1], row(ROW_DE + 0),
                       w_sq_ref[SQ_DE_W2], row(ROW_DE + 1))


# ----------------------------------------------------------------------------
# Wrapper
# ----------------------------------------------------------------------------
def mesh_graph_nets(params, node_x, edge_x, senders, receivers):
    n = node_x.shape[0]
    e = edge_x.shape[0]
    H = HIDDEN

    # pad input features to a full lane width once at the boundary
    node_x_pad = jnp.pad(node_x, ((0, 0), (0, IN_PAD - node_x.shape[1])))
    edge_x_pad = jnp.pad(edge_x, ((0, 0), (0, IN_PAD - edge_x.shape[1])))
    send_e1 = senders.reshape(e, 1).astype(jnp.int32)
    recv_e1 = receivers.reshape(e, 1).astype(jnp.int32)
    recv_1e = receivers.reshape(1, e).astype(jnp.int32)

    flat_inputs = [node_x_pad, edge_x_pad, send_e1, recv_e1, recv_1e,
                   params["w_sq"], params["w_sd"], params["w_n1"], params["vecs"]]

    flops = 2 * (
        n * IN_PAD * H + n * H * H            # node encoder
        + e * IN_PAD * H + e * H * H          # edge encoder
        + NUM_MP * (
            n * H * (2 * H)                   # nodes @ [W1_src | W1_dst]
            + e * (2 * n) * H                 # merged endpoint gather
            + e * H * H                       # edges @ W1_e
            + e * H * H                       # edge MLP W2
            + n * e * H                       # receiver scatter-add
            + n * (2 * H) * H                 # node MLP W1 (K = 2H)
            + n * H * H                       # node MLP W2
        )
        + n * H * H + n * H * OUT_PAD         # decoder
    )
    ln_rows = (n + e) * (1 + NUM_MP)          # one rsqrt per LayerNorm row
    bytes_acc = int(sum(x.size * x.dtype.itemsize for x in flat_inputs)
                    + n * OUT_PAD * 4)
    cost = pl.CostEstimate(flops=int(flops), transcendentals=int(ln_rows),
                           bytes_accessed=bytes_acc)

    vmem = pl.BlockSpec(memory_space=pltpu.MemorySpace.VMEM)
    out_pad = pl.pallas_call(
        _mgn_fused_kernel,
        out_shape=jax.ShapeDtypeStruct((n, OUT_PAD), jnp.float32),
        in_specs=[vmem] * len(flat_inputs),
        out_specs=vmem,
        compiler_params=pltpu.CompilerParams(vmem_limit_bytes=8 * 1024 * 1024),
        cost_estimate=cost,
    )(*flat_inputs)
    return out_pad[:, :OUT_DIM]


# ----------------------------------------------------------------------------
# Parameter init (deterministic, in-script). All weights coalesced into four
# arrays: bf16 weight stacks for the MXU, one f32 slab of bias/gamma/beta rows.
# ----------------------------------------------------------------------------
def init_params(key):
    keys = jax.random.split(key, 6 + 7 * NUM_MP)

    def nrm(k, shape, scale):
        return jax.random.normal(keys[k], shape, jnp.float32) * scale

    sh = 1.0 / float(HIDDEN) ** 0.5
    se = 1.0 / (3.0 * HIDDEN) ** 0.5   # edge-MLP W1 fan-in = 3H
    sn = 1.0 / (2.0 * HIDDEN) ** 0.5   # node-MLP W1 fan-in = 2H

    ne_w1 = jnp.zeros((IN_PAD, HIDDEN), jnp.float32).at[:NODE_IN].set(
        nrm(0, (NODE_IN, HIDDEN), 1.0 / float(NODE_IN) ** 0.5))
    ne_w2 = nrm(1, (HIDDEN, HIDDEN), sh)
    ee_w1 = jnp.zeros((IN_PAD, HIDDEN), jnp.float32).at[:EDGE_IN].set(
        nrm(2, (EDGE_IN, HIDDEN), 1.0 / float(EDGE_IN) ** 0.5))
    ee_w2 = nrm(3, (HIDDEN, HIDDEN), sh)
    de_w1 = nrm(4, (HIDDEN, HIDDEN), sh)
    de_w2 = jnp.zeros((HIDDEN, OUT_PAD), jnp.float32).at[:, :OUT_DIM].set(
        nrm(5, (HIDDEN, OUT_DIM), sh))

    sq = [ne_w1, ne_w2, ee_w1, ee_w2, de_w1, de_w2]
    sd, n1 = [], []
    k = 6
    for _ in range(NUM_MP):
        me_w1e = nrm(k + 0, (HIDDEN, HIDDEN), se)
        me_w1s = nrm(k + 1, (HIDDEN, HIDDEN), se)
        me_w1d = nrm(k + 2, (HIDDEN, HIDDEN), se)
        me_w2 = nrm(k + 3, (HIDDEN, HIDDEN), sh)
        mn_w1x = nrm(k + 4, (HIDDEN, HIDDEN), sn)
        mn_w1a = nrm(k + 5, (HIDDEN, HIDDEN), sn)
        mn_w2 = nrm(k + 6, (HIDDEN, HIDDEN), sh)
        k += 7
        sq += [me_w1e, me_w2, mn_w2]                       # SQ_MP + 3*step + {0,1,2}
        sd.append(jnp.concatenate([me_w1s, me_w1d], axis=1))   # (H, 2H)
        n1.append(jnp.concatenate([mn_w1x, mn_w1a], axis=0))   # (2H, H)

    w_sq = jnp.stack(sq).astype(jnp.bfloat16)              # (NUM_SQ, H, H)
    w_sd = jnp.stack(sd).astype(jnp.bfloat16)              # (NUM_MP, H, 2H)
    w_n1 = jnp.stack(n1).astype(jnp.bfloat16)              # (NUM_MP, 2H, H)
    assert w_sq.shape[0] == NUM_SQ

    # biases zero, gammas one, betas zero -> only set the gamma rows
    vecs = jnp.zeros((NUM_VEC_ROWS, HIDDEN), jnp.float32)
    gamma_rows = ([ROW_NE + 2, ROW_EE + 2]
                  + [ROW_ME + 4 * s + 2 for s in range(NUM_MP)]
                  + [ROW_MN + 4 * s + 2 for s in range(NUM_MP)])
    vecs = vecs.at[jnp.array(gamma_rows)].set(1.0)

    return {"w_sq": w_sq, "w_sd": w_sd, "w_n1": w_n1, "vecs": vecs}


if __name__ == "__main__":
    key = jax.random.PRNGKey(0)
    k_nodes, k_edges, k_send, k_recv, k_par = jax.random.split(key, 5)

    N, E = 64, 128
    node_x = jax.random.normal(k_nodes, (N, NODE_IN), jnp.float32)
    edge_x = jax.random.normal(k_edges, (E, EDGE_IN), jnp.float32)
    senders = jax.random.randint(k_send, (E,), 0, N, jnp.int32)
    receivers = jax.random.randint(k_recv, (E,), 0, N, jnp.int32)

    params = init_params(k_par)

    fwd = jax.jit(mesh_graph_nets)
    out = jax.block_until_ready(fwd(params, node_x, edge_x, senders, receivers))
    assert out.shape == (N, OUT_DIM) and out.dtype == jnp.float32
    assert bool(jnp.all(jnp.isfinite(out)))
    print("KERNEL_OK")
</pallas_src>

<mosaic_0001>
module attributes {stable_mosaic.version = 11 : i64} {
  func.func @_mgn_fused_kernel(%arg0: memref<64x128xf32, #tpu.memory_space<vmem>>, %arg1: memref<128x128xf32, #tpu.memory_space<vmem>>, %arg2: memref<128x1xi32, #tpu.memory_space<vmem>>, %arg3: memref<128x1xi32, #tpu.memory_space<vmem>>, %arg4: memref<1x128xi32, #tpu.memory_space<vmem>>, %arg5: memref<12x128x128xbf16, #tpu.memory_space<vmem>>, %arg6: memref<2x128x256xbf16, #tpu.memory_space<vmem>>, %arg7: memref<2x256x128xbf16, #tpu.memory_space<vmem>>, %arg8: memref<26x128xf32, #tpu.memory_space<vmem>>, %arg9: memref<64x128xf32, #tpu.memory_space<vmem>>) attributes {dimension_semantics = [], scalar_prefetch = 0 : i64, scratch_operands = 0 : i64, tpu.core_type = #tpu.core_type<tc>} {
    %c0 = arith.constant 0 : index
    %c0_0 = arith.constant 0 : index
    %0 = vector.load %arg8[%c0, %c0_0] : memref<26x128xf32, #tpu.memory_space<vmem>>, vector<26x128xf32>
    %1 = tpu.iota {dimensions = array<i32: 1>} : vector<128x128xi32>
    %c0_1 = arith.constant 0 : index
    %c0_2 = arith.constant 0 : index
    %2 = vector.load %arg2[%c0_1, %c0_2] : memref<128x1xi32, #tpu.memory_space<vmem>>, vector<128x1xi32>
    %3 = vector.broadcast %2 : vector<128x1xi32> to vector<128x128xi32>
    %4 = arith.cmpi eq, %1, %3 : vector<128x128xi32>
    %c0_3 = arith.constant 0 : index
    %c0_4 = arith.constant 0 : index
    %5 = vector.load %arg3[%c0_3, %c0_4] : memref<128x1xi32, #tpu.memory_space<vmem>>, vector<128x1xi32>
    %c64_i32 = arith.constant 64 : i32
    %6 = vector.broadcast %c64_i32 : i32 to vector<128x1xi32>
    %7 = arith.addi %5, %6 : vector<128x1xi32>
    %8 = vector.broadcast %7 : vector<128x1xi32> to vector<128x128xi32>
    %9 = arith.cmpi eq, %1, %8 : vector<128x128xi32>
    %10 = arith.ori %4, %9 : vector<128x128xi1>
    %11 = arith.extui %10 : vector<128x128xi1> to vector<128x128xi32>
    %12 = arith.sitofp %11 : vector<128x128xi32> to vector<128x128xf32>
    %13 = arith.truncf %12 : vector<128x128xf32> to vector<128x128xbf16>
    %14 = tpu.iota {dimensions = array<i32: 0>} : vector<64x128xi32>
    %c0_5 = arith.constant 0 : index
    %c0_6 = arith.constant 0 : index
    %15 = vector.load %arg4[%c0_5, %c0_6] : memref<1x128xi32, #tpu.memory_space<vmem>>, vector<1x128xi32>
    %16 = vector.broadcast %15 : vector<1x128xi32> to vector<64x128xi32>
    %17 = arith.cmpi eq, %14, %16 : vector<64x128xi32>
    %18 = arith.extui %17 : vector<64x128xi1> to vector<64x128xi32>
    %19 = arith.sitofp %18 : vector<64x128xi32> to vector<64x128xf32>
    %20 = arith.truncf %19 : vector<64x128xf32> to vector<64x128xbf16>
    %c0_7 = arith.constant 0 : index
    %c0_8 = arith.constant 0 : index
    %21 = vector.load %arg0[%c0_7, %c0_8] : memref<64x128xf32, #tpu.memory_space<vmem>>, vector<64x128xf32>
    %22 = arith.truncf %21 : vector<64x128xf32> to vector<64x128xbf16>
    %c0_9 = arith.constant 0 : index
    %c0_10 = arith.constant 0 : index
    %c0_11 = arith.constant 0 : index
    %23 = vector.load %arg5[%c0_9, %c0_10, %c0_11] : memref<12x128x128xbf16, #tpu.memory_space<vmem>>, vector<1x128x128xbf16>
    %24 = vector.shape_cast %23 : vector<1x128x128xbf16> to vector<128x128xbf16>
    %25 = vector.extract_strided_slice %0 {offsets = [0, 0], sizes = [1, 128], strides = [1, 1]} : vector<26x128xf32> to vector<1x128xf32>
    %c1 = arith.constant 1 : index
    %c0_12 = arith.constant 0 : index
    %c0_13 = arith.constant 0 : index
    %26 = vector.load %arg5[%c1, %c0_12, %c0_13] : memref<12x128x128xbf16, #tpu.memory_space<vmem>>, vector<1x128x128xbf16>
    %27 = vector.shape_cast %26 : vector<1x128x128xbf16> to vector<128x128xbf16>
    %28 = vector.extract_strided_slice %0 {offsets = [1, 0], sizes = [1, 128], strides = [1, 1]} : vector<26x128xf32> to vector<1x128xf32>
    %cst = arith.constant dense<0.000000e+00> : vector<64x128xf32>
    %29 = tpu.matmul %22, %24, %cst {dimension_numbers = #tpu.dot_dimension_numbers<[1], [0], [0], [1], [0, 0, 1, 1], [], []>} : vector<64x128xbf16>, vector<128x128xbf16>, vector<64x128xf32> -> vector<64x128xf32>
    %30 = vector.broadcast %25 : vector<1x128xf32> to vector<64x128xf32>
    %31 = arith.addf %29, %30 : vector<64x128xf32>
    %cst_14 = arith.constant 0.000000e+00 : f32
    %32 = vector.broadcast %cst_14 : f32 to vector<64x128xf32>
    %33 = arith.maximumf %31, %32 : vector<64x128xf32>
    %34 = arith.truncf %33 : vector<64x128xf32> to vector<64x128xbf16>
    %cst_15 = arith.constant dense<0.000000e+00> : vector<64x128xf32>
    %35 = tpu.matmul %34, %27, %cst_15 {dimension_numbers = #tpu.dot_dimension_numbers<[1], [0], [0], [1], [0, 0, 1, 1], [], []>} : vector<64x128xbf16>, vector<128x128xbf16>, vector<64x128xf32> -> vector<64x128xf32>
    %36 = vector.broadcast %28 : vector<1x128xf32> to vector<64x128xf32>
    %37 = arith.addf %35, %36 : vector<64x128xf32>
    %38 = vector.extract_strided_slice %0 {offsets = [2, 0], sizes = [1, 128], strides = [1, 1]} : vector<26x128xf32> to vector<1x128xf32>
    %39 = vector.extract_strided_slice %0 {offsets = [3, 0], sizes = [1, 128], strides = [1, 1]} : vector<26x128xf32> to vector<1x128xf32>
    %cst_16 = arith.constant dense<0.000000e+00> : vector<64xf32>
    %40 = vector.multi_reduction <add>, %37, %cst_16 [1] : vector<64x128xf32> to vector<64xf32>
    %41 = vector.shape_cast %40 : vector<64xf32> to vector<64x1xf32>
    %cst_17 = arith.constant 1.280000e+02 : f32
    %42 = vector.broadcast %cst_17 : f32 to vector<64x1xf32>
    %43 = arith.divf %41, %42 : vector<64x1xf32>
    %44 = arith.mulf %37, %37 : vector<64x128xf32>
    %cst_18 = arith.constant dense<0.000000e+00> : vector<64xf32>
    %45 = vector.multi_reduction <add>, %44, %cst_18 [1] : vector<64x128xf32> to vector<64xf32>
    %46 = vector.shape_cast %45 : vector<64xf32> to vector<64x1xf32>
    %cst_19 = arith.constant 1.280000e+02 : f32
    %47 = vector.broadcast %cst_19 : f32 to vector<64x1xf32>
    %48 = arith.divf %46, %47 : vector<64x1xf32>
    %49 = arith.mulf %43, %43 : vector<64x1xf32>
    %50 = arith.subf %48, %49 : vector<64x1xf32>
    %cst_20 = arith.constant 0.000000e+00 : f32
    %51 = vector.broadcast %cst_20 : f32 to vector<64x1xf32>
    %52 = arith.maximumf %50, %51 : vector<64x1xf32>
    %53 = vector.broadcast %43 : vector<64x1xf32> to vector<64x128xf32>
    %54 = arith.subf %37, %53 : vector<64x128xf32>
    %cst_21 = arith.constant 9.99999974E-6 : f32
    %55 = vector.broadcast %cst_21 : f32 to vector<64x1xf32>
    %56 = arith.addf %52, %55 : vector<64x1xf32>
    %57 = math.rsqrt %56 : vector<64x1xf32>
    %58 = vector.broadcast %57 : vector<64x1xf32> to vector<64x128xf32>
    %59 = arith.mulf %54, %58 : vector<64x128xf32>
    %60 = vector.broadcast %38 : vector<1x128xf32> to vector<64x128xf32>
    %61 = arith.mulf %59, %60 : vector<64x128xf32>
    %62 = vector.broadcast %39 : vector<1x128xf32> to vector<64x128xf32>
    %63 = arith.addf %61, %62 : vector<64x128xf32>
    %c0_22 = arith.constant 0 : index
    %c0_23 = arith.constant 0 : index
    %64 = vector.load %arg1[%c0_22, %c0_23] : memref<128x128xf32, #tpu.memory_space<vmem>>, vector<128x128xf32>
    %65 = arith.truncf %64 : vector<128x128xf32> to vector<128x128xbf16>
    %c2 = arith.constant 2 : index
    %c0_24 = arith.constant 0 : index
    %c0_25 = arith.constant 0 : index
    %66 = vector.load %arg5[%c2, %c0_24, %c0_25] : memref<12x128x128xbf16, #tpu.memory_space<vmem>>, vector<1x128x128xbf16>
    %67 = vector.shape_cast %66 : vector<1x128x128xbf16> to vector<128x128xbf16>
    %68 = vector.extract_strided_slice %0 {offsets = [4, 0], sizes = [1, 128], strides = [1, 1]} : vector<26x128xf32> to vector<1x128xf32>
    %c3 = arith.constant 3 : index
    %c0_26 = arith.constant 0 : index
    %c0_27 = arith.constant 0 : index
    %69 = vector.load %arg5[%c3, %c0_26, %c0_27] : memref<12x128x128xbf16, #tpu.memory_space<vmem>>, vector<1x128x128xbf16>
    %70 = vector.shape_cast %69 : vector<1x128x128xbf16> to vector<128x128xbf16>
    %71 = vector.extract_strided_slice %0 {offsets = [5, 0], sizes = [1, 128], strides = [1, 1]} : vector<26x128xf32> to vector<1x128xf32>
    %cst_28 = arith.constant dense<0.000000e+00> : vector<128x128xf32>
    %72 = tpu.matmul %65, %67, %cst_28 {dimension_numbers = #tpu.dot_dimension_numbers<[1], [0], [0], [1], [0, 0, 1, 1], [], []>} : vector<128x128xbf16>, vector<128x128xbf16>, vector<128x128xf32> -> vector<128x128xf32>
    %73 = vector.broadcast %68 : vector<1x128xf32> to vector<128x128xf32>
    %74 = arith.addf %72, %73 : vector<128x128xf32>
    %cst_29 = arith.constant 0.000000e+00 : f32
    %75 = vector.broadcast %cst_29 : f32 to vector<128x128xf32>
    %76 = arith.maximumf %74, %75 : vector<128x128xf32>
    %77 = arith.truncf %76 : vector<128x128xf32> to vector<128x128xbf16>
    %cst_30 = arith.constant dense<0.000000e+00> : vector<128x128xf32>
    %78 = tpu.matmul %77, %70, %cst_30 {dimension_numbers = #tpu.dot_dimension_numbers<[1], [0], [0], [1], [0, 0, 1, 1], [], []>} : vector<128x128xbf16>, vector<128x128xbf16>, vector<128x128xf32> -> vector<128x128xf32>
    %79 = vector.broadcast %71 : vector<1x128xf32> to vector<128x128xf32>
    %80 = arith.addf %78, %79 : vector<128x128xf32>
    %81 = vector.extract_strided_slice %0 {offsets = [6, 0], sizes = [1, 128], strides = [1, 1]} : vector<26x128xf32> to vector<1x128xf32>
    %82 = vector.extract_strided_slice %0 {offsets = [7, 0], sizes = [1, 128], strides = [1, 1]} : vector<26x128xf32> to vector<1x128xf32>
    %cst_31 = arith.constant dense<0.000000e+00> : vector<128xf32>
    %83 = vector.multi_reduction <add>, %80, %cst_31 [1] : vector<128x128xf32> to vector<128xf32>
    %84 = vector.shape_cast %83 : vector<128xf32> to vector<128x1xf32>
    %cst_32 = arith.constant 1.280000e+02 : f32
    %85 = vector.broadcast %cst_32 : f32 to vector<128x1xf32>
    %86 = arith.divf %84, %85 : vector<128x1xf32>
    %87 = arith.mulf %80, %80 : vector<128x128xf32>
    %cst_33 = arith.constant dense<0.000000e+00> : vector<128xf32>
    %88 = vector.multi_reduction <add>, %87, %cst_33 [1] : vector<128x128xf32> to vector<128xf32>
    %89 = vector.shape_cast %88 : vector<128xf32> to vector<128x1xf32>
    %cst_34 = arith.constant 1.280000e+02 : f32
    %90 = vector.broadcast %cst_34 : f32 to vector<128x1xf32>
    %91 = arith.divf %89, %90 : vector<128x1xf32>
    %92 = arith.mulf %86, %86 : vector<128x1xf32>
    %93 = arith.subf %91, %92 : vector<128x1xf32>
    %cst_35 = arith.constant 0.000000e+00 : f32
    %94 = vector.broadcast %cst_35 : f32 to vector<128x1xf32>
    %95 = arith.maximumf %93, %94 : vector<128x1xf32>
    %96 = vector.broadcast %86 : vector<128x1xf32> to vector<128x128xf32>
    %97 = arith.subf %80, %96 : vector<128x128xf32>
    %cst_36 = arith.constant 9.99999974E-6 : f32
    %98 = vector.broadcast %cst_36 : f32 to vector<128x1xf32>
    %99 = arith.addf %95, %98 : vector<128x1xf32>
    %100 = math.rsqrt %99 : vector<128x1xf32>
    %101 = vector.broadcast %100 : vector<128x1xf32> to vector<128x128xf32>
    %102 = arith.mulf %97, %101 : vector<128x128xf32>
    %103 = vector.broadcast %81 : vector<1x128xf32> to vector<128x128xf32>
    %104 = arith.mulf %102, %103 : vector<128x128xf32>
    %105 = vector.broadcast %82 : vector<1x128xf32> to vector<128x128xf32>
    %106 = arith.addf %104, %105 : vector<128x128xf32>
    %107 = arith.truncf %63 : vector<64x128xf32> to vector<64x128xbf16>
    %108 = arith.truncf %106 : vector<128x128xf32> to vector<128x128xbf16>
    %c0_37 = arith.constant 0 : index
    %c0_38 = arith.constant 0 : index
    %c0_39 = arith.constant 0 : index
    %109 = vector.load %arg6[%c0_37, %c0_38, %c0_39] : memref<2x128x256xbf16, #tpu.memory_space<vmem>>, vector<1x128x256xbf16>
    %110 = vector.shape_cast %109 : vector<1x128x256xbf16> to vector<128x256xbf16>
    %cst_40 = arith.constant dense<0.000000e+00> : vector<64x256xf32>
    %111 = tpu.matmul %107, %110, %cst_40 {dimension_numbers = #tpu.dot_dimension_numbers<[1], [0], [0], [1], [0, 0, 1, 1], [], []>} : vector<64x128xbf16>, vector<128x256xbf16>, vector<64x256xf32> -> vector<64x256xf32>
    %112 = arith.truncf %111 : vector<64x256xf32> to vector<64x256xbf16>
    %113 = vector.extract_strided_slice %112 {offsets = [0, 0], sizes = [64, 128], strides = [1, 1]} : vector<64x256xbf16> to vector<64x128xbf16>
    %114 = vector.extract_strided_slice %112 {offsets = [0, 128], sizes = [64, 128], strides = [1, 1]} : vector<64x256xbf16> to vector<64x128xbf16>
    %115 = tpu.concatenate %113, %114 in 0 : vector<64x128xbf16>, vector<64x128xbf16> -> vector<128x128xbf16>
    %c6 = arith.constant 6 : index
    %c0_41 = arith.constant 0 : index
    %c0_42 = arith.constant 0 : index
    %116 = vector.load %arg5[%c6, %c0_41, %c0_42] : memref<12x128x128xbf16, #tpu.memory_space<vmem>>, vector<1x128x128xbf16>
    %117 = vector.shape_cast %116 : vector<1x128x128xbf16> to vector<128x128xbf16>
    %cst_43 = arith.constant dense<0.000000e+00> : vector<128x128xf32>
    %118 = tpu.matmul %108, %117, %cst_43 {dimension_numbers = #tpu.dot_dimension_numbers<[1], [0], [0], [1], [0, 0, 1, 1], [], []>} : vector<128x128xbf16>, vector<128x128xbf16>, vector<128x128xf32> -> vector<128x128xf32>
    %cst_44 = arith.constant dense<0.000000e+00> : vector<128x128xf32>
    %119 = tpu.matmul %13, %115, %cst_44 {dimension_numbers = #tpu.dot_dimension_numbers<[1], [0], [0], [1], [0, 0, 1, 1], [], []>} : vector<128x128xbf16>, vector<128x128xbf16>, vector<128x128xf32> -> vector<128x128xf32>
    %120 = arith.addf %118, %119 : vector<128x128xf32>
    %121 = vector.extract_strided_slice %0 {offsets = [8, 0], sizes = [1, 128], strides = [1, 1]} : vector<26x128xf32> to vector<1x128xf32>
    %122 = vector.broadcast %121 : vector<1x128xf32> to vector<128x128xf32>
    %123 = arith.addf %120, %122 : vector<128x128xf32>
    %cst_45 = arith.constant 0.000000e+00 : f32
    %124 = vector.broadcast %cst_45 : f32 to vector<128x128xf32>
    %125 = arith.maximumf %123, %124 : vector<128x128xf32>
    %126 = arith.truncf %125 : vector<128x128xf32> to vector<128x128xbf16>
    %c7 = arith.constant 7 : index
    %c0_46 = arith.constant 0 : index
    %c0_47 = arith.constant 0 : index
    %127 = vector.load %arg5[%c7, %c0_46, %c0_47] : memref<12x128x128xbf16, #tpu.memory_space<vmem>>, vector<1x128x128xbf16>
    %128 = vector.shape_cast %127 : vector<1x128x128xbf16> to vector<128x128xbf16>
    %cst_48 = arith.constant dense<0.000000e+00> : vector<128x128xf32>
    %129 = tpu.matmul %126, %128, %cst_48 {dimension_numbers = #tpu.dot_dimension_numbers<[1], [0], [0], [1], [0, 0, 1, 1], [], []>} : vector<128x128xbf16>, vector<128x128xbf16>, vector<128x128xf32> -> vector<128x128xf32>
    %130 = vector.extract_strided_slice %0 {offsets = [9, 0], sizes = [1, 128], strides = [1, 1]} : vector<26x128xf32> to vector<1x128xf32>
    %131 = vector.broadcast %130 : vector<1x128xf32> to vector<128x128xf32>
    %132 = arith.addf %129, %131 : vector<128x128xf32>
    %133 = vector.extract_strided_slice %0 {offsets = [10, 0], sizes = [1, 128], strides = [1, 1]} : vector<26x128xf32> to vector<1x128xf32>
    %134 = vector.extract_strided_slice %0 {offsets = [11, 0], sizes = [1, 128], strides = [1, 1]} : vector<26x128xf32> to vector<1x128xf32>
    %cst_49 = arith.constant dense<0.000000e+00> : vector<128xf32>
    %135 = vector.multi_reduction <add>, %132, %cst_49 [1] : vector<128x128xf32> to vector<128xf32>
    %136 = vector.shape_cast %135 : vector<128xf32> to vector<128x1xf32>
    %cst_50 = arith.constant 1.280000e+02 : f32
    %137 = vector.broadcast %cst_50 : f32 to vector<128x1xf32>
    %138 = arith.divf %136, %137 : vector<128x1xf32>
    %139 = arith.mulf %132, %132 : vector<128x128xf32>
    %cst_51 = arith.constant dense<0.000000e+00> : vector<128xf32>
    %140 = vector.multi_reduction <add>, %139, %cst_51 [1] : vector<128x128xf32> to vector<128xf32>
    %141 = vector.shape_cast %140 : vector<128xf32> to vector<128x1xf32>
    %cst_52 = arith.constant 1.280000e+02 : f32
    %142 = vector.broadcast %cst_52 : f32 to vector<128x1xf32>
    %143 = arith.divf %141, %142 : vector<128x1xf32>
    %144 = arith.mulf %138, %138 : vector<128x1xf32>
    %145 = arith.subf %143, %144 : vector<128x1xf32>
    %cst_53 = arith.constant 0.000000e+00 : f32
    %146 = vector.broadcast %cst_53 : f32 to vector<128x1xf32>
    %147 = arith.maximumf %145, %146 : vector<128x1xf32>
    %148 = vector.broadcast %138 : vector<128x1xf32> to vector<128x128xf32>
    %149 = arith.subf %132, %148 : vector<128x128xf32>
    %cst_54 = arith.constant 9.99999974E-6 : f32
    %150 = vector.broadcast %cst_54 : f32 to vector<128x1xf32>
    %151 = arith.addf %147, %150 : vector<128x1xf32>
    %152 = math.rsqrt %151 : vector<128x1xf32>
    %153 = vector.broadcast %152 : vector<128x1xf32> to vector<128x128xf32>
    %154 = arith.mulf %149, %153 : vector<128x128xf32>
    %155 = vector.broadcast %133 : vector<1x128xf32> to vector<128x128xf32>
    %156 = arith.mulf %154, %155 : vector<128x128xf32>
    %157 = vector.broadcast %134 : vector<1x128xf32> to vector<128x128xf32>
    %158 = arith.addf %156, %157 : vector<128x128xf32>
    %159 = arith.addf %106, %158 : vector<128x128xf32>
    %160 = arith.truncf %159 : vector<128x128xf32> to vector<128x128xbf16>
    %cst_55 = arith.constant dense<0.000000e+00> : vector<64x128xf32>
    %161 = tpu.matmul %20, %160, %cst_55 {dimension_numbers = #tpu.dot_dimension_numbers<[1], [0], [0], [1], [0, 0, 1, 1], [], []>} : vector<64x128xbf16>, vector<128x128xbf16>, vector<64x128xf32> -> vector<64x128xf32>
    %162 = arith.truncf %161 : vector<64x128xf32> to vector<64x128xbf16>
    %163 = tpu.concatenate %107, %162 in 1 : vector<64x128xbf16>, vector<64x128xbf16> -> vector<64x256xbf16>
    %c0_56 = arith.constant 0 : index
    %c0_57 = arith.constant 0 : index
    %c0_58 = arith.constant 0 : index
    %164 = vector.load %arg7[%c0_56, %c0_57, %c0_58] : memref<2x256x128xbf16, #tpu.memory_space<vmem>>, vector<1x256x128xbf16>
    %165 = vector.shape_cast %164 : vector<1x256x128xbf16> to vector<256x128xbf16>
    %cst_59 = arith.constant dense<0.000000e+00> : vector<64x128xf32>
    %166 = tpu.matmul %163, %165, %cst_59 {dimension_numbers = #tpu.dot_dimension_numbers<[1], [0], [0], [1], [0, 0, 1, 1], [], []>} : vector<64x256xbf16>, vector<256x128xbf16>, vector<64x128xf32> -> vector<64x128xf32>
    %167 = vector.extract_strided_slice %0 {offsets = [16, 0], sizes = [1, 128], strides = [1, 1]} : vector<26x128xf32> to vector<1x128xf32>
    %168 = vector.broadcast %167 : vector<1x128xf32> to vector<64x128xf32>
    %169 = arith.addf %166, %168 : vector<64x128xf32>
    %cst_60 = arith.constant 0.000000e+00 : f32
    %170 = vector.broadcast %cst_60 : f32 to vector<64x128xf32>
    %171 = arith.maximumf %169, %170 : vector<64x128xf32>
    %172 = arith.truncf %171 : vector<64x128xf32> to vector<64x128xbf16>
    %c8 = arith.constant 8 : index
    %c0_61 = arith.constant 0 : index
    %c0_62 = arith.constant 0 : index
    %173 = vector.load %arg5[%c8, %c0_61, %c0_62] : memref<12x128x128xbf16, #tpu.memory_space<vmem>>, vector<1x128x128xbf16>
    %174 = vector.shape_cast %173 : vector<1x128x128xbf16> to vector<128x128xbf16>
    %cst_63 = arith.constant dense<0.000000e+00> : vector<64x128xf32>
    %175 = tpu.matmul %172, %174, %cst_63 {dimension_numbers = #tpu.dot_dimension_numbers<[1], [0], [0], [1], [0, 0, 1, 1], [], []>} : vector<64x128xbf16>, vector<128x128xbf16>, vector<64x128xf32> -> vector<64x128xf32>
    %176 = vector.extract_strided_slice %0 {offsets = [17, 0], sizes = [1, 128], strides = [1, 1]} : vector<26x128xf32> to vector<1x128xf32>
    %177 = vector.broadcast %176 : vector<1x128xf32> to vector<64x128xf32>
    %178 = arith.addf %175, %177 : vector<64x128xf32>
    %179 = vector.extract_strided_slice %0 {offsets = [18, 0], sizes = [1, 128], strides = [1, 1]} : vector<26x128xf32> to vector<1x128xf32>
    %180 = vector.extract_strided_slice %0 {offsets = [19, 0], sizes = [1, 128], strides = [1, 1]} : vector<26x128xf32> to vector<1x128xf32>
    %cst_64 = arith.constant dense<0.000000e+00> : vector<64xf32>
    %181 = vector.multi_reduction <add>, %178, %cst_64 [1] : vector<64x128xf32> to vector<64xf32>
    %182 = vector.shape_cast %181 : vector<64xf32> to vector<64x1xf32>
    %cst_65 = arith.constant 1.280000e+02 : f32
    %183 = vector.broadcast %cst_65 : f32 to vector<64x1xf32>
    %184 = arith.divf %182, %183 : vector<64x1xf32>
    %185 = arith.mulf %178, %178 : vector<64x128xf32>
    %cst_66 = arith.constant dense<0.000000e+00> : vector<64xf32>
    %186 = vector.multi_reduction <add>, %185, %cst_66 [1] : vector<64x128xf32> to vector<64xf32>
    %187 = vector.shape_cast %186 : vector<64xf32> to vector<64x1xf32>
    %cst_67 = arith.constant 1.280000e+02 : f32
    %188 = vector.broadcast %cst_67 : f32 to vector<64x1xf32>
    %189 = arith.divf %187, %188 : vector<64x1xf32>
    %190 = arith.mulf %184, %184 : vector<64x1xf32>
    %191 = arith.subf %189, %190 : vector<64x1xf32>
    %cst_68 = arith.constant 0.000000e+00 : f32
    %192 = vector.broadcast %cst_68 : f32 to vector<64x1xf32>
    %193 = arith.maximumf %191, %192 : vector<64x1xf32>
    %194 = vector.broadcast %184 : vector<64x1xf32> to vector<64x128xf32>
    %195 = arith.subf %178, %194 : vector<64x128xf32>
    %cst_69 = arith.constant 9.99999974E-6 : f32
    %196 = vector.broadcast %cst_69 : f32 to vector<64x1xf32>
    %197 = arith.addf %193, %196 : vector<64x1xf32>
    %198 = math.rsqrt %197 : vector<64x1xf32>
    %199 = vector.broadcast %198 : vector<64x1xf32> to vector<64x128xf32>
    %200 = arith.mulf %195, %199 : vector<64x128xf32>
    %201 = vector.broadcast %179 : vector<1x128xf32> to vector<64x128xf32>
    %202 = arith.mulf %200, %201 : vector<64x128xf32>
    %203 = vector.broadcast %180 : vector<1x128xf32> to vector<64x128xf32>
    %204 = arith.addf %202, %203 : vector<64x128xf32>
    %205 = arith.addf %63, %204 : vector<64x128xf32>
    %206 = arith.truncf %205 : vector<64x128xf32> to vector<64x128xbf16>
    %c1_70 = arith.constant 1 : index
    %c0_71 = arith.constant 0 : index
    %c0_72 = arith.constant 0 : index
    %207 = vector.load %arg6[%c1_70, %c0_71, %c0_72] : memref<2x128x256xbf16, #tpu.memory_space<vmem>>, vector<1x128x256xbf16>
    %208 = vector.shape_cast %207 : vector<1x128x256xbf16> to vector<128x256xbf16>
    %cst_73 = arith.constant dense<0.000000e+00> : vector<64x256xf32>
    %209 = tpu.matmul %206, %208, %cst_73 {dimension_numbers = #tpu.dot_dimension_numbers<[1], [0], [0], [1], [0, 0, 1, 1], [], []>} : vector<64x128xbf16>, vector<128x256xbf16>, vector<64x256xf32> -> vector<64x256xf32>
    %210 = arith.truncf %209 : vector<64x256xf32> to vector<64x256xbf16>
    %211 = vector.extract_strided_slice %210 {offsets = [0, 0], sizes = [64, 128], strides = [1, 1]} : vector<64x256xbf16> to vector<64x128xbf16>
    %212 = vector.extract_strided_slice %210 {offsets = [0, 128], sizes = [64, 128], strides = [1, 1]} : vector<64x256xbf16> to vector<64x128xbf16>
    %213 = tpu.concatenate %211, %212 in 0 : vector<64x128xbf16>, vector<64x128xbf16> -> vector<128x128xbf16>
    %c9 = arith.constant 9 : index
    %c0_74 = arith.constant 0 : index
    %c0_75 = arith.constant 0 : index
    %214 = vector.load %arg5[%c9, %c0_74, %c0_75] : memref<12x128x128xbf16, #tpu.memory_space<vmem>>, vector<1x128x128xbf16>
    %215 = vector.shape_cast %214 : vector<1x128x128xbf16> to vector<128x128xbf16>
    %cst_76 = arith.constant dense<0.000000e+00> : vector<128x128xf32>
    %216 = tpu.matmul %160, %215, %cst_76 {dimension_numbers = #tpu.dot_dimension_numbers<[1], [0], [0], [1], [0, 0, 1, 1], [], []>} : vector<128x128xbf16>, vector<128x128xbf16>, vector<128x128xf32> -> vector<128x128xf32>
    %cst_77 = arith.constant dense<0.000000e+00> : vector<128x128xf32>
    %217 = tpu.matmul %13, %213, %cst_77 {dimension_numbers = #tpu.dot_dimension_numbers<[1], [0], [0], [1], [0, 0, 1, 1], [], []>} : vector<128x128xbf16>, vector<128x128xbf16>, vector<128x128xf32> -> vector<128x128xf32>
    %218 = arith.addf %216, %217 : vector<128x128xf32>
    %219 = vector.extract_strided_slice %0 {offsets = [12, 0], sizes = [1, 128], strides = [1, 1]} : vector<26x128xf32> to vector<1x128xf32>
    %220 = vector.broadcast %219 : vector<1x128xf32> to vector<128x128xf32>
    %221 = arith.addf %218, %220 : vector<128x128xf32>
    %cst_78 = arith.constant 0.000000e+00 : f32
    %222 = vector.broadcast %cst_78 : f32 to vector<128x128xf32>
    %223 = arith.maximumf %221, %222 : vector<128x128xf32>
    %224 = arith.truncf %223 : vector<128x128xf32> to vector<128x128xbf16>
    %c10 = arith.constant 10 : index
    %c0_79 = arith.constant 0 : index
    %c0_80 = arith.constant 0 : index
    %225 = vector.load %arg5[%c10, %c0_79, %c0_80] : memref<12x128x128xbf16, #tpu.memory_space<vmem>>, vector<1x128x128xbf16>
    %226 = vector.shape_cast %225 : vector<1x128x128xbf16> to vector<128x128xbf16>
    %cst_81 = arith.constant dense<0.000000e+00> : vector<128x128xf32>
    %227 = tpu.matmul %224, %226, %cst_81 {dimension_numbers = #tpu.dot_dimension_numbers<[1], [0], [0], [1], [0, 0, 1, 1], [], []>} : vector<128x128xbf16>, vector<128x128xbf16>, vector<128x128xf32> -> vector<128x128xf32>
    %228 = vector.extract_strided_slice %0 {offsets = [13, 0], sizes = [1, 128], strides = [1, 1]} : vector<26x128xf32> to vector<1x128xf32>
    %229 = vector.broadcast %228 : vector<1x128xf32> to vector<128x128xf32>
    %230 = arith.addf %227, %229 : vector<128x128xf32>
    %231 = vector.extract_strided_slice %0 {offsets = [14, 0], sizes = [1, 128], strides = [1, 1]} : vector<26x128xf32> to vector<1x128xf32>
    %232 = vector.extract_strided_slice %0 {offsets = [15, 0], sizes = [1, 128], strides = [1, 1]} : vector<26x128xf32> to vector<1x128xf32>
    %cst_82 = arith.constant dense<0.000000e+00> : vector<128xf32>
    %233 = vector.multi_reduction <add>, %230, %cst_82 [1] : vector<128x128xf32> to vector<128xf32>
    %234 = vector.shape_cast %233 : vector<128xf32> to vector<128x1xf32>
    %cst_83 = arith.constant 1.280000e+02 : f32
    %235 = vector.broadcast %cst_83 : f32 to vector<128x1xf32>
    %236 = arith.divf %234, %235 : vector<128x1xf32>
    %237 = arith.mulf %230, %230 : vector<128x128xf32>
    %cst_84 = arith.constant dense<0.000000e+00> : vector<128xf32>
    %238 = vector.multi_reduction <add>, %237, %cst_84 [1] : vector<128x128xf32> to vector<128xf32>
    %239 = vector.shape_cast %238 : vector<128xf32> to vector<128x1xf32>
    %cst_85 = arith.constant 1.280000e+02 : f32
    %240 = vector.broadcast %cst_85 : f32 to vector<128x1xf32>
    %241 = arith.divf %239, %240 : vector<128x1xf32>
    %242 = arith.mulf %236, %236 : vector<128x1xf32>
    %243 = arith.subf %241, %242 : vector<128x1xf32>
    %cst_86 = arith.constant 0.000000e+00 : f32
    %244 = vector.broadcast %cst_86 : f32 to vector<128x1xf32>
    %245 = arith.maximumf %243, %244 : vector<128x1xf32>
    %246 = vector.broadcast %236 : vector<128x1xf32> to vector<128x128xf32>
    %247 = arith.subf %230, %246 : vector<128x128xf32>
    %cst_87 = arith.constant 9.99999974E-6 : f32
    %248 = vector.broadcast %cst_87 : f32 to vector<128x1xf32>
    %249 = arith.addf %245, %248 : vector<128x1xf32>
    %250 = math.rsqrt %249 : vector<128x1xf32>
    %251 = vector.broadcast %250 : vector<128x1xf32> to vector<128x128xf32>
    %252 = arith.mulf %247, %251 : vector<128x128xf32>
    %253 = vector.broadcast %231 : vector<1x128xf32> to vector<128x128xf32>
    %254 = arith.mulf %252, %253 : vector<128x128xf32>
    %255 = vector.broadcast %232 : vector<1x128xf32> to vector<128x128xf32>
    %256 = arith.addf %254, %255 : vector<128x128xf32>
    %257 = arith.addf %159, %256 : vector<128x128xf32>
    %258 = arith.truncf %257 : vector<128x128xf32> to vector<128x128xbf16>
    %cst_88 = arith.constant dense<0.000000e+00> : vector<64x128xf32>
    %259 = tpu.matmul %20, %258, %cst_88 {dimension_numbers = #tpu.dot_dimension_numbers<[1], [0], [0], [1], [0, 0, 1, 1], [], []>} : vector<64x128xbf16>, vector<128x128xbf16>, vector<64x128xf32> -> vector<64x128xf32>
    %260 = arith.truncf %259 : vector<64x128xf32> to vector<64x128xbf16>
    %261 = tpu.concatenate %206, %260 in 1 : vector<64x128xbf16>, vector<64x128xbf16> -> vector<64x256xbf16>
    %c1_89 = arith.constant 1 : index
    %c0_90 = arith.constant 0 : index
    %c0_91 = arith.constant 0 : index
    %262 = vector.load %arg7[%c1_89, %c0_90, %c0_91] : memref<2x256x128xbf16, #tpu.memory_space<vmem>>, vector<1x256x128xbf16>
    %263 = vector.shape_cast %262 : vector<1x256x128xbf16> to vector<256x128xbf16>
    %cst_92 = arith.constant dense<0.000000e+00> : vector<64x128xf32>
    %264 = tpu.matmul %261, %263, %cst_92 {dimension_numbers = #tpu.dot_dimension_numbers<[1], [0], [0], [1], [0, 0, 1, 1], [], []>} : vector<64x256xbf16>, vector<256x128xbf16>, vector<64x128xf32> -> vector<64x128xf32>
    %265 = vector.extract_strided_slice %0 {offsets = [20, 0], sizes = [1, 128], strides = [1, 1]} : vector<26x128xf32> to vector<1x128xf32>
    %266 = vector.broadcast %265 : vector<1x128xf32> to vector<64x128xf32>
    %267 = arith.addf %264, %266 : vector<64x128xf32>
    %cst_93 = arith.constant 0.000000e+00 : f32
    %268 = vector.broadcast %cst_93 : f32 to vector<64x128xf32>
    %269 = arith.maximumf %267, %268 : vector<64x128xf32>
    %270 = arith.truncf %269 : vector<64x128xf32> to vector<64x128xbf16>
    %c11 = arith.constant 11 : index
    %c0_94 = arith.constant 0 : index
    %c0_95 = arith.constant 0 : index
    %271 = vector.load %arg5[%c11, %c0_94, %c0_95] : memref<12x128x128xbf16, #tpu.memory_space<vmem>>, vector<1x128x128xbf16>
    %272 = vector.shape_cast %271 : vector<1x128x128xbf16> to vector<128x128xbf16>
    %cst_96 = arith.constant dense<0.000000e+00> : vector<64x128xf32>
    %273 = tpu.matmul %270, %272, %cst_96 {dimension_numbers = #tpu.dot_dimension_numbers<[1], [0], [0], [1], [0, 0, 1, 1], [], []>} : vector<64x128xbf16>, vector<128x128xbf16>, vector<64x128xf32> -> vector<64x128xf32>
    %274 = vector.extract_strided_slice %0 {offsets = [21, 0], sizes = [1, 128], strides = [1, 1]} : vector<26x128xf32> to vector<1x128xf32>
    %275 = vector.broadcast %274 : vector<1x128xf32> to vector<64x128xf32>
    %276 = arith.addf %273, %275 : vector<64x128xf32>
    %277 = vector.extract_strided_slice %0 {offsets = [22, 0], sizes = [1, 128], strides = [1, 1]} : vector<26x128xf32> to vector<1x128xf32>
    %278 = vector.extract_strided_slice %0 {offsets = [23, 0], sizes = [1, 128], strides = [1, 1]} : vector<26x128xf32> to vector<1x128xf32>
    %cst_97 = arith.constant dense<0.000000e+00> : vector<64xf32>
    %279 = vector.multi_reduction <add>, %276, %cst_97 [1] : vector<64x128xf32> to vector<64xf32>
    %280 = vector.shape_cast %279 : vector<64xf32> to vector<64x1xf32>
    %cst_98 = arith.constant 1.280000e+02 : f32
    %281 = vector.broadcast %cst_98 : f32 to vector<64x1xf32>
    %282 = arith.divf %280, %281 : vector<64x1xf32>
    %283 = arith.mulf %276, %276 : vector<64x128xf32>
    %cst_99 = arith.constant dense<0.000000e+00> : vector<64xf32>
    %284 = vector.multi_reduction <add>, %283, %cst_99 [1] : vector<64x128xf32> to vector<64xf32>
    %285 = vector.shape_cast %284 : vector<64xf32> to vector<64x1xf32>
    %cst_100 = arith.constant 1.280000e+02 : f32
    %286 = vector.broadcast %cst_100 : f32 to vector<64x1xf32>
    %287 = arith.divf %285, %286 : vector<64x1xf32>
    %288 = arith.mulf %282, %282 : vector<64x1xf32>
    %289 = arith.subf %287, %288 : vector<64x1xf32>
    %cst_101 = arith.constant 0.000000e+00 : f32
    %290 = vector.broadcast %cst_101 : f32 to vector<64x1xf32>
    %291 = arith.maximumf %289, %290 : vector<64x1xf32>
    %292 = vector.broadcast %282 : vector<64x1xf32> to vector<64x128xf32>
    %293 = arith.subf %276, %292 : vector<64x128xf32>
    %cst_102 = arith.constant 9.99999974E-6 : f32
    %294 = vector.broadcast %cst_102 : f32 to vector<64x1xf32>
    %295 = arith.addf %291, %294 : vector<64x1xf32>
    %296 = math.rsqrt %295 : vector<64x1xf32>
    %297 = vector.broadcast %296 : vector<64x1xf32> to vector<64x128xf32>
    %298 = arith.mulf %293, %297 : vector<64x128xf32>
    %299 = vector.broadcast %277 : vector<1x128xf32> to vector<64x128xf32>
    %300 = arith.mulf %298, %299 : vector<64x128xf32>
    %301 = vector.broadcast %278 : vector<1x128xf32> to vector<64x128xf32>
    %302 = arith.addf %300, %301 : vector<64x128xf32>
    %303 = arith.addf %205, %302 : vector<64x128xf32>
    %304 = arith.truncf %303 : vector<64x128xf32> to vector<64x128xbf16>
    %c4 = arith.constant 4 : index
    %c0_103 = arith.constant 0 : index
    %c0_104 = arith.constant 0 : index
    %305 = vector.load %arg5[%c4, %c0_103, %c0_104] : memref<12x128x128xbf16, #tpu.memory_space<vmem>>, vector<1x128x128xbf16>
    %306 = vector.shape_cast %305 : vector<1x128x128xbf16> to vector<128x128xbf16>
    %307 = vector.extract_strided_slice %0 {offsets = [24, 0], sizes = [1, 128], strides = [1, 1]} : vector<26x128xf32> to vector<1x128xf32>
    %c5 = arith.constant 5 : index
    %c0_105 = arith.constant 0 : index
    %c0_106 = arith.constant 0 : index
    %308 = vector.load %arg5[%c5, %c0_105, %c0_106] : memref<12x128x128xbf16, #tpu.memory_space<vmem>>, vector<1x128x128xbf16>
    %309 = vector.shape_cast %308 : vector<1x128x128xbf16> to vector<128x128xbf16>
    %310 = vector.extract_strided_slice %0 {offsets = [25, 0], sizes = [1, 128], strides = [1, 1]} : vector<26x128xf32> to vector<1x128xf32>
    %cst_107 = arith.constant dense<0.000000e+00> : vector<64x128xf32>
    %311 = tpu.matmul %304, %306, %cst_107 {dimension_numbers = #tpu.dot_dimension_numbers<[1], [0], [0], [1], [0, 0, 1, 1], [], []>} : vector<64x128xbf16>, vector<128x128xbf16>, vector<64x128xf32> -> vector<64x128xf32>
    %312 = vector.broadcast %307 : vector<1x128xf32> to vector<64x128xf32>
    %313 = arith.addf %311, %312 : vector<64x128xf32>
    %cst_108 = arith.constant 0.000000e+00 : f32
    %314 = vector.broadcast %cst_108 : f32 to vector<64x128xf32>
    %315 = arith.maximumf %313, %314 : vector<64x128xf32>
    %316 = arith.truncf %315 : vector<64x128xf32> to vector<64x128xbf16>
    %cst_109 = arith.constant dense<0.000000e+00> : vector<64x128xf32>
    %317 = tpu.matmul %316, %309, %cst_109 {dimension_numbers = #tpu.dot_dimension_numbers<[1], [0], [0], [1], [0, 0, 1, 1], [], []>} : vector<64x128xbf16>, vector<128x128xbf16>, vector<64x128xf32> -> vector<64x128xf32>
    %318 = vector.broadcast %310 : vector<1x128xf32> to vector<64x128xf32>
    %319 = arith.addf %317, %318 : vector<64x128xf32>
    %c0_110 = arith.constant 0 : index
    %c0_111 = arith.constant 0 : index
    %320 = vector.load %arg9[%c0_110, %c0_111] : memref<64x128xf32, #tpu.memory_space<vmem>>, vector<64x128xf32>
    tpu.vector_store %arg9[%c0_110, %c0_111], %319 {strides = array<i32>} : memref<64x128xf32, #tpu.memory_space<vmem>>, vector<64x128xf32>,
    return
  }
}

</mosaic_0001>

<bundles_post_ra>
// kernel: mesh_graph_nets.1
= control target key start
LH: loop header
LB: loop body
LE: loop exit
PB: predicated region body
PF: predicated region fallthrough
CT: control target
= control target key end

     0   :  { %14 = vsyncpa [#allocation3], 0  ;;  %s8780_s0 = inlined_call_operand.vmem [shape: f32[64,128], index: 0, kind: input, shape index: {}]   ;;  %s8781_s1 = inlined_call_operand.vmem [shape: f32[128,128], index: 1, kind: input, shape index: {}]   ;;  %s8782_s2 = inlined_call_operand.vmem [shape: s32[128,1], index: 2, kind: input, shape index: {}]   ;;  %s8783_s3 = inlined_call_operand.vmem [shape: s32[128,1], index: 3, kind: input, shape index: {}]   ;;  %s8784_s4 = inlined_call_operand.vmem [shape: s32[1,128], index: 4, kind: input, shape index: {}]   ;;  %s8785_s5 = inlined_call_operand.vmem [shape: bf16[12,128,128], index: 5, kind: input, shape index: {}]   ;;  %s8786_s6 = inlined_call_operand.hbm [shape: bf16[2,128,256], index: 6, kind: input, shape index: {}]   ;;  %s8787_s7 = inlined_call_operand.hbm [shape: bf16[2,256,128], index: 7, kind: input, shape index: {}]   ;;  %s8788_s8 = inlined_call_operand.vmem [shape: f32[26,128], index: 8, kind: input, shape index: {}]   ;;  %s8789_s9 = inlined_call_operand.vmem [shape: f32[64,128], index: 9, kind: output, shape index: {}]  }
   0x1   :  { %15 = vsyncpa [#allocation5], 0  ;;  %s6283_s30 = smov [#allocation2]   ;;  %s6235_s13 = scalar_lea.hbm %s8786_s6, 4096 }
   0x2   :  { %s33_s10 = sshll.u32 %s6283_s30, 4  ;;  %p6236_p0 = scmp.ne.s32.totalorder %s8786_s6, %s6235_s13  ;;  %s34_s10 = int_to_ptr.vmem [resolvable:$true] %s33_s10 }
   0x3   :  { %p6239_p1 = scmp.lt.u32.totalorder %s6235_s13, %s8786_s6 }
   0x5   :  { %p6241_p2 = pnand %p6239_p1, %p6236_p0 }
   0x7   :  { %6244 = shalt.err (!%p6241_p2)
}
   0x8   :  { %s6245_s18 = scalar_lea.vmem %s34_s10, 4096  ;;  %p6250_p4 = scmp.lt.s32.totalorder %s34_s10, %s34_s10 }
   0x9   :  { %p6246_p3 = scmp.ne.s32.totalorder %s34_s10, %s6245_s18  ;;  %p6251_p5 = scmp.lt.s32.totalorder %s6245_s18, %s6245_s18 }
   0xb   :  { %p6252_p6 = por %p6251_p5, %p6250_p4 }
   0xd   :  { %p6253_p7 = pnand %p6252_p6, %p6246_p3 }
   0xf   :  { %6256 = shalt.err (!%p6253_p7)
}
  0x10   :  { %s6284_s19 = smov 128   ;;  %s6285_s20 = smov 8  }
  0x11   :  { %39 = dma.hbm_to_vmem [thread:$0]  %s8786_s6, 4096, %s34_s10, [#allocation3], %s6284_s19, %s6284_s19, %s6285_s20  }
  0x12   :  { %s6286_s23 = smov [#allocation4]   ;;  %s6257_s27 = scalar_lea.hbm %s8787_s7, 4096 }
  0x13   :  { %s45_s24 = sshll.u32 %s6286_s23, 4  ;;  %p6258_p8 = scmp.ne.s32.totalorder %s8787_s7, %s6257_s27  ;;  %s46_s24 = int_to_ptr.vmem [resolvable:$true] %s45_s24 }
  0x14   :  { %p6261_p9 = scmp.lt.u32.totalorder %s6257_s27, %s8787_s7 }
  0x16   :  { %p6263_p10 = pnand %p6261_p9, %p6258_p8 }
  0x18   :  { %6266 = shalt.err (!%p6263_p10)
}
  0x19   :  { %s6267_s12 = scalar_lea.vmem %s46_s24, 4096  ;;  %p6272_p12 = scmp.lt.s32.totalorder %s46_s24, %s46_s24 }
  0x1a   :  { %p6268_p11 = scmp.ne.s32.totalorder %s46_s24, %s6267_s12  ;;  %p6273_p13 = scmp.lt.s32.totalorder %s6267_s12, %s6267_s12 }
  0x1c   :  { %p6274_p0 = por %p6273_p13, %p6272_p12 }
  0x1e   :  { %p6275_p1 = pnand %p6274_p0, %p6268_p11 }
  0x20   :  { %6278 = shalt.err (!%p6275_p1)
}
  0x21   :  { %s6287_s6 = smov 64   ;;  %s6288_s10 = smov 4  }
  0x22   :  { %51 = dma.hbm_to_vmem [thread:$0]  %s8787_s7, 4096, %s46_s24, [#allocation5], %s6287_s6, %s6287_s6, %s6288_s10  }
  0x23   :  { %6279 = dma.done.wait [#allocation3], 4096  }
  0x24   :  { %6280 = vsyncadd [#allocation3], 4294963200 }
  0x25   :  { %6281 = dma.done.wait [#allocation5], 4096  }
  0x26   :  { %6282 = vsyncadd [#allocation5], 4294963200  ;;  %v5912_v0 = vld [vmem:[%s8785_s5] sm:$0xff]   ;;  %v5913_v1 = vld [vmem:[%s8785_s5 + $0x8] sm:$0xff]   ;;  %v65_v61 = vlaneseq }
  0x27   :  { %5422 = vmatprep.subr.bf16.mxu0 %v5912_v0  ;;  %v5914_v2 = vld [vmem:[%s8785_s5 + $0x10] sm:$0xff]   ;;  %v5915_v3 = vld [vmem:[%s8785_s5 + $0x18] sm:$0xff]   ;;  %v341_v4 = vld [vmem:[%s8780_s0] sm:$0xff] }
  0x28   :  { %5423 = vmatpush3.bf16.msra.mxu0 %v5912_v0  ;;  %v342_v5 = vld [vmem:[%s8780_s0 + $0x8] sm:$0xff]  ;;  %v5916_v7 = vld [vmem:[%s8785_s5 + $0x20] sm:$0xff]   ;;  %v5918_v9 = vld [vmem:[%s8785_s5 + $0x30] sm:$0xff]   ;;  %v6513_v62 = vshrl.u32 %v65_v61, 7 }
  0x29   :  { %5424 = vmatprep.subr.bf16.mxu0 %v5913_v1  ;;  %v349_v6 = vpack.c.bf16 %v342_v5, %v341_v4  ;;  %v5917_v8 = vld [vmem:[%s8785_s5 + $0x28] sm:$0xff]   ;;  %v5919_v10 = vld [vmem:[%s8785_s5 + $0x38] sm:$0xff]   ;;  %v5928_v11 = vld [vmem:[%s8785_s5 + $0x40] sm:$0xff]  }
  0x2a   :  { %v343_v12 = vld [vmem:[%s8780_s0 + $0x10] sm:$0xff]  ;;  %v344_v13 = vld [vmem:[%s8780_s0 + $0x18] sm:$0xff]  ;;  %v5929_v14 = vld [vmem:[%s8785_s5 + $0x48] sm:$0xff]   ;;  %5446 = vmatprep.subr.bf16.mxu1 %v5928_v11  ;;  %8892 = vst [vmem:[#allocation8_spill] sm:$0xff] %v6513_v62  ;;  %v6516_v63 = vsub.s32 0, %v6513_v62 }
  0x2b   :  { %5438 = vmatprep.mubr.bf16.mxu0 %v349_v6  ;;  %v345_v15 = vld [vmem:[%s8780_s0 + $0x20] sm:$0xff]  ;;  %v346_v16 = vld [vmem:[%s8780_s0 + $0x28] sm:$0xff]  ;;  %5447 = vmatpush3.bf16.msra.mxu1 %v5928_v11  ;;  %v5930_v18 = vld [vmem:[%s8785_s5 + $0x50] sm:$0xff]   ;;  %v350_v19 = vpack.c.bf16 %v344_v13, %v343_v12 }
  0x2c   :  { %5425 = vmatpush3.bf16.msra.mxu0 %v5913_v1  ;;  %v5920_v17 = vld [vmem:[%s8785_s5 + $0x80] sm:$0xff]   ;;  %5448 = vmatprep.subr.bf16.mxu1 %v5929_v14  ;;  %v5921_v20 = vld [vmem:[%s8785_s5 + $0x88] sm:$0xff]   ;;  %v351_v21 = vpack.c.bf16 %v346_v16, %v345_v15  ;;  %v5931_v22 = vld [vmem:[%s8785_s5 + $0x58] sm:$0xff]   ;;  %8893 = vst [vmem:[#allocation9_spill] sm:$0xff] %v6516_v63 }
  0x2d   :  { %5426 = vmatprep.subr.bf16.mxu0 %v5914_v2  ;;  %v347_v23 = vld [vmem:[%s8780_s0 + $0x30] sm:$0xff]  ;;  %v348_v24 = vld [vmem:[%s8780_s0 + $0x38] sm:$0xff]  ;;  %v769_v26 = vld [vmem:[%s8781_s1] sm:$0xff] }
  0x2e   :  { %v5922_v25 = vld [vmem:[%s8785_s5 + $0x90] sm:$0xff]   ;;  %v770_v27 = vld [vmem:[%s8781_s1 + $0x8] sm:$0xff]  ;;  %v5932_v28 = vld [vmem:[%s8785_s5 + $0x60] sm:$0xff]   ;;  %v352_v29 = vpack.c.bf16 %v348_v24, %v347_v23 }
  0x2f   :  { %5449 = vmatpush3.bf16.msra.mxu1 %v5929_v14  ;;  %v5923_v30 = vld [vmem:[%s8785_s5 + $0x98] sm:$0xff]   ;;  %v785_v31 = vpack.c.bf16 %v770_v27, %v769_v26  ;;  %v5933_v32 = vld [vmem:[%s8785_s5 + $0x68] sm:$0xff]   ;;  %v5924_v33 = vld [vmem:[%s8785_s5 + $0xa0] sm:$0xff]  }
  0x30   :  { %5427 = vmatpush3.bf16.msra.mxu0 %v5914_v2  ;;  %5450 = vmatprep.subr.bf16.mxu1 %v5930_v18  ;;  %v5925_v34 = vld [vmem:[%s8785_s5 + $0xa8] sm:$0xff]   ;;  %v5926_v35 = vld [vmem:[%s8785_s5 + $0xb0] sm:$0xff]   ;;  %v5927_v36 = vld [vmem:[%s8785_s5 + $0xb8] sm:$0xff]  }
  0x31   :  { %5428 = vmatprep.subr.bf16.mxu0 %v5915_v3  ;;  %v771_v37 = vld [vmem:[%s8781_s1 + $0x10] sm:$0xff]  ;;  %v772_v38 = vld [vmem:[%s8781_s1 + $0x18] sm:$0xff]  ;;  %v773_v39 = vld [vmem:[%s8781_s1 + $0x20] sm:$0xff] }
  0x32   :  { %v774_v40 = vld [vmem:[%s8781_s1 + $0x28] sm:$0xff]  ;;  %v786_v41 = vpack.c.bf16 %v772_v38, %v771_v37  ;;  %v775_v43 = vld [vmem:[%s8781_s1 + $0x30] sm:$0xff]  ;;  %v776_v44 = vld [vmem:[%s8781_s1 + $0x38] sm:$0xff] }
  0x33   :  { %5451 = vmatpush3.bf16.msra.mxu1 %v5930_v18  ;;  %v787_v42 = vpack.c.bf16 %v774_v40, %v773_v39  ;;  %v777_v45 = vld [vmem:[%s8781_s1 + $0x40] sm:$0xff]  ;;  %v778_v46 = vld [vmem:[%s8781_s1 + $0x48] sm:$0xff]  ;;  %v788_v47 = vpack.c.bf16 %v776_v44, %v775_v43  ;;  %v779_v49 = vld [vmem:[%s8781_s1 + $0x50] sm:$0xff] }
  0x34   :  { %5429 = vmatpush3.bf16.msra.mxu0 %v5915_v3  ;;  %5452 = vmatprep.subr.bf16.mxu1 %v5931_v22  ;;  %v789_v48 = vpack.c.bf16 %v778_v46, %v777_v45  ;;  %v780_v50 = vld [vmem:[%s8781_s1 + $0x58] sm:$0xff]  ;;  %v781_v51 = vld [vmem:[%s8781_s1 + $0x60] sm:$0xff]  ;;  %v782_v52 = vld [vmem:[%s8781_s1 + $0x68] sm:$0xff] }
  0x35   :  { %5430 = vmatprep.subr.bf16.mxu0 %v5916_v7  ;;  %v790_v53 = vpack.c.bf16 %v780_v50, %v779_v49  ;;  %v791_v54 = vpack.c.bf16 %v782_v52, %v781_v51  ;;  %v783_v55 = vld [vmem:[%s8781_s1 + $0x70] sm:$0xff]  ;;  %v784_v56 = vld [vmem:[%s8781_s1 + $0x78] sm:$0xff]  ;;  %v5936_v60 = vld [vmem:[%s8785_s5 + $0xc0] sm:$0xff]  }
  0x36   :  { %v792_v57 = vpack.c.bf16 %v784_v56, %v783_v55  ;;  %v5934_v58 = vld [vmem:[%s8785_s5 + $0x70] sm:$0xff]   ;;  %v5935_v59 = vld [vmem:[%s8785_s5 + $0x78] sm:$0xff]   ;;  %v6521_v0 = vld [vmem:[%s8788_s8] sm:$0xff] }
  0x37   :  { %5453 = vmatpush3.bf16.msra.mxu1 %v5931_v22  ;;  %v389_v1 = vrot.slane %v6521_v0, %v6516_v63  ;;  %v5942_v37 = vld [vmem:[%s8785_s5 + $0xf0] sm:$0xff]  }
  0x38   :  { %5431 = vmatpush3.bf16.msra.mxu0 %v5916_v7  ;;  %5454 = vmatprep.subr.bf16.mxu1 %v5932_v28 }
  0x39   :  { %5432 = vmatprep.subr.bf16.mxu0 %v5917_v8 }
  0x3b   :  { %5455 = vmatpush3.bf16.msra.mxu1 %v5932_v28  ;;  %v5938_v28 = vld [vmem:[%s8785_s5 + $0xd0] sm:$0xff]  }
  0x3c   :  { %5433 = vmatpush3.bf16.msra.mxu0 %v5917_v8  ;;  %5456 = vmatprep.subr.bf16.mxu1 %v5933_v32 }
  0x3d   :  { %5434 = vmatprep.subr.bf16.mxu0 %v5918_v9 }
  0x3f   :  { %5457 = vmatpush3.bf16.msra.mxu1 %v5933_v32  ;;  %v5939_v32 = vld [vmem:[%s8785_s5 + $0xd8] sm:$0xff]  }
  0x40   :  { %5435 = vmatpush3.bf16.msra.mxu0 %v5918_v9  ;;  %5458 = vmatprep.subr.bf16.mxu1 %v5934_v58 }
  0x41   :  { %5436 = vmatprep.subr.bf16.mxu0 %v5919_v10 }
  0x43   :  { %5459 = vmatpush3.bf16.msra.mxu1 %v5934_v58 }
  0x44   :  { %5437 = vmatpush3.bf16.msra.mxu0 %v5919_v10  ;;  %5460 = vmatprep.subr.bf16.mxu1 %v5935_v59 }
  0x45   :  { %5470 = vmatprep.subr.bf16.mxu0 %v5920_v17 }
  0x47   :  { %5439 = vmatmul.mubr.bf16.vlgmr.msra.gmra.mrb[0].mxu0 %v350_v19  ;;  %5461 = vmatpush3.bf16.msra.mxu1 %v5935_v59  ;;  %v5937_v19 = vld [vmem:[%s8785_s5 + $0xc8] sm:$0xff]  }
  0x48   :  { %5442 = vmatprep.mubr.bf16.mxu0 %v351_v21  ;;  %5471 = vmatpush3.bf16.msra.mxu0 %v5920_v17 }
  0x49   :  { %5472 = vmatprep.subr.bf16.mxu0 %v5921_v20  ;;  %5502 = vmatprep.subr.bf16.mxu1 %v5936_v60 }
  0x4c   :  { %5473 = vmatpush3.bf16.msra.mxu0 %v5921_v20 }
  0x4d   :  { %5474 = vmatprep.subr.bf16.mxu0 %v5922_v25 }
  0x4f   :  { %5443 = vmatmul.mubr.bf16.gmra.mrb[4].mxu0 %v352_v29 }
  0x50   :  { %5475 = vmatpush3.bf16.msra.mxu0 %v5922_v25  ;;  %5486 = vmatprep.mubr.bf16.mxu0 %v785_v31 }
  0x51   :  { %5476 = vmatprep.subr.bf16.mxu0 %v5923_v30 }
  0x54   :  { %5477 = vmatpush3.bf16.msra.mxu0 %v5923_v30 }
  0x55   :  { %5478 = vmatprep.subr.bf16.mxu0 %v5924_v33 }
  0x58   :  { %5479 = vmatpush3.bf16.msra.mxu0 %v5924_v33  ;;  %v5940_v33 = vld [vmem:[%s8785_s5 + $0xe0] sm:$0xff]  }
  0x59   :  { %5480 = vmatprep.subr.bf16.mxu0 %v5925_v34 }
  0x5c   :  { %5481 = vmatpush3.bf16.msra.mxu0 %v5925_v34  ;;  %v6538_v34 = vsub.s32 4, %v6513_v62 }
  0x5d   :  { %5482 = vmatprep.subr.bf16.mxu0 %v5926_v35 }
  0x5e   :  { %8894 = vst [vmem:[#allocation10_spill] sm:$0xff] %v6538_v34 }
  0x60   :  { %5483 = vmatpush3.bf16.msra.mxu0 %v5926_v35  ;;  %v5941_v35 = vld [vmem:[%s8785_s5 + $0xe8] sm:$0xff]  }
  0x61   :  { %5484 = vmatprep.subr.bf16.mxu0 %v5927_v36 }
  0x64   :  { %5485 = vmatpush3.bf16.msra.mxu0 %v5927_v36  ;;  %v6545_v36 = vrot.slane %v6521_v0, %v6538_v34 }
  0x67   :  { %5487 = vmatmul.mubr.bf16.vlgmr.msra.gmra.mrb[8].mxu0 %v786_v41  ;;  %v5943_v41 = vld [vmem:[%s8785_s5 + $0xf8] sm:$0xff]  }
  0x68   :  { %5490 = vmatprep.mubr.bf16.mxu0 %v787_v42 }
  0x6f   :  { %5491 = vmatmul.mubr.bf16.gmra.mrb[12].mxu0 %v788_v47 }
  0x70   :  { %5494 = vmatprep.mubr.bf16.mxu0 %v789_v48 }
  0x77   :  { %5495 = vmatmul.mubr.bf16.gmra.mrb[16].mxu0 %v790_v53 }
  0x78   :  { %5498 = vmatprep.mubr.bf16.mxu0 %v791_v54 }
  0x7f   :  { %5499 = vmatmul.mubr.bf16.gmra.mrb[20].mxu0 %v792_v57 }
 0x11a   :  { %v5440_v2 = vpop.f32.mrb[0].mxu0 }
 0x11b   :  { %v481_v3 = vadd.f32 %v5440_v2, %v389_v1  ;;  %v472_v4 = vpop.f32.mrb[1].mxu0 }
 0x11c   :  { %v473_v5 = vadd.f32 %v472_v4, %v389_v1  ;;  %v5441_v6 = vpop.f32.mrb[2].mxu0 }
 0x11d   :  { %v484_v7 = vadd.f32 %v5441_v6, %v389_v1  ;;  %v475_v8 = vpop.f32.mrb[3].mxu0  ;;  %v505_v10 = vmax.f32 %v481_v3, 0.0 }
 0x11e   :  { %v476_v9 = vadd.f32 %v475_v8, %v389_v1  ;;  %v503_v12 = vmax.f32 %v473_v5, 0.0 }
 0x11f   :  { %v506_v11 = vmax.f32 %v484_v7, 0.0 }
 0x120   :  { %v504_v13 = vmax.f32 %v476_v9, 0.0 }
 0x121   :  { %v512_v14 = vpack.c.bf16 %v506_v11, %v505_v10 }
 0x122   :  { %v5444_v15 = vpop.f32.mrb[4].mxu0  ;;  %v511_v16 = vpack.c.bf16 %v504_v13, %v503_v12 }
 0x123   :  { %v497_v17 = vadd.f32 %v5444_v15, %v389_v1  ;;  %v488_v18 = vpop.f32.mrb[5].mxu0 }
 0x124   :  { %v489_v20 = vadd.f32 %v488_v18, %v389_v1  ;;  %5462 = vmatprep.mubr.bf16.mxu1 %v511_v16  ;;  %v5445_v21 = vpop.f32.mrb[6].mxu0 }
 0x125   :  { %v509_v22 = vmax.f32 %v497_v17, 0.0  ;;  %v500_v23 = vadd.f32 %v5445_v21, %v389_v1  ;;  %5463 = vmatmul.mubr.bf16.vlgmr.msra.gmra.mrb[0].mxu1 %v512_v14  ;;  %v491_v24 = vpop.f32.mrb[7].mxu0 }
 0x126   :  { %v507_v25 = vmax.f32 %v489_v20, 0.0  ;;  %v492_v26 = vadd.f32 %v491_v24, %v389_v1  ;;  %5503 = vmatpush3.bf16.msra.mxu1 %v5936_v60 }
 0x127   :  { %v510_v27 = vmax.f32 %v500_v23, 0.0  ;;  %5504 = vmatprep.subr.bf16.mxu1 %v5937_v19 }
 0x128   :  { %v508_v29 = vmax.f32 %v492_v26, 0.0 }
 0x129   :  { %v514_v30 = vpack.c.bf16 %v510_v27, %v509_v22 }
 0x12a   :  { %v513_v31 = vpack.c.bf16 %v508_v29, %v507_v25  ;;  %5505 = vmatpush3.bf16.msra.mxu1 %v5937_v19 }
 0x12b   :  { %5506 = vmatprep.subr.bf16.mxu1 %v5938_v28 }
 0x12c   :  { %5466 = vmatprep.mubr.bf16.mxu1 %v513_v31 }
 0x12d   :  { %5467 = vmatmul.mubr.bf16.gmra.mrb[4].mxu1 %v514_v30 }
 0x12e   :  { %5507 = vmatpush3.bf16.msra.mxu1 %v5938_v28 }
 0x12f   :  { %5508 = vmatprep.subr.bf16.mxu1 %v5939_v32 }
 0x132   :  { %5509 = vmatpush3.bf16.msra.mxu1 %v5939_v32 }
 0x133   :  { %5510 = vmatprep.subr.bf16.mxu1 %v5940_v33 }
 0x136   :  { %5511 = vmatpush3.bf16.msra.mxu1 %v5940_v33 }
 0x137   :  { %5512 = vmatprep.subr.bf16.mxu1 %v5941_v35 }
 0x13a   :  { %v5488_v38 = vpop.f32.mrb[8].mxu0  ;;  %5513 = vmatpush3.bf16.msra.mxu1 %v5941_v35 }
 0x13b   :  { %v922_v39 = vadd.f32 %v5488_v38, %v6545_v36  ;;  %v913_v40 = vpop.f32.mrb[9].mxu0  ;;  %5514 = vmatprep.subr.bf16.mxu1 %v5942_v37  ;;  %v6573_v38 = vsub.s32 1, %v6513_v62 }
 0x13c   :  { %v914_v42 = vadd.f32 %v913_v40, %v6545_v36  ;;  %v5489_v43 = vpop.f32.mrb[10].mxu0 }
 0x13d   :  { %v978_v44 = vmax.f32 %v922_v39, 0.0  ;;  %v925_v45 = vadd.f32 %v5489_v43, %v6545_v36  ;;  %v916_v46 = vpop.f32.mrb[11].mxu0  ;;  %8895 = vst [vmem:[#allocation11_spill] sm:$0xff] %v6573_v38  ;;  %v518_v39 = vrot.slane %v6521_v0, %v6573_v38 }
 0x13e   :  { %v976_v47 = vmax.f32 %v914_v42, 0.0  ;;  %v917_v48 = vadd.f32 %v916_v46, %v6545_v36  ;;  %5515 = vmatpush3.bf16.msra.mxu1 %v5942_v37  ;;  %v8790_v37 = vmov 0  }
 0x13f   :  { %v979_v49 = vmax.f32 %v925_v45, 0.0  ;;  %5516 = vmatprep.subr.bf16.mxu1 %v5943_v41  ;;  %5911 = vset.pattern.permute.xlu1 %v8790_v37 }
 0x140   :  { %v977_v50 = vmax.f32 %v917_v48, 0.0  ;;  %5910 = vset.pattern.permute.xlu0 %v8790_v37  ;;  %1553 = vmatprep.mubr.bf16.mxu0 %v8790_v37 }
 0x141   :  { %v993_v51 = vpack.c.bf16 %v979_v49, %v978_v44 }
 0x142   :  { %v992_v52 = vpack.c.bf16 %v977_v50, %v976_v47  ;;  %5517 = vmatpush3.bf16.msra.mxu1 %v5943_v41  ;;  %v5492_v53 = vpop.f32.mrb[12].mxu0 }
 0x143   :  { %v938_v54 = vadd.f32 %v5492_v53, %v6545_v36  ;;  %v929_v55 = vpop.f32.mrb[13].mxu0 }
 0x144   :  { %5518 = vmatprep.mubr.bf16.mxu1 %v992_v52  ;;  %v930_v56 = vadd.f32 %v929_v55, %v6545_v36  ;;  %v5493_v57 = vpop.f32.mrb[14].mxu0  ;;  %v5946_v55 = vld [vmem:[#allocation2 + $0x4] ss:$8 sps:$4 sm:$0xff]  }
 0x145   :  { %5519 = vmatmul.mubr.bf16.vlgmr.msra.gmra.mrb[8].mxu1 %v993_v51  ;;  %v982_v58 = vmax.f32 %v938_v54, 0.0  ;;  %v941_v59 = vadd.f32 %v5493_v57, %v6545_v36  ;;  %v932_v60 = vpop.f32.mrb[15].mxu0  ;;  %v5944_v57 = vld [vmem:[#allocation2] ss:$8 sps:$4 sm:$0xff]   ;;  %1521 = vmatprep.subr.bf16.mxu0 %v5946_v55  ;;  %v73_v55 = vld [vmem:[%s8782_s2 + $0x30] sm:$0xff] }
 0x146   :  { %v980_v1 = vmax.f32 %v930_v56, 0.0  ;;  %v933_v2 = vadd.f32 %v932_v60, %v6545_v36  ;;  %1522 = vmatpush1.bf16.msra.mxu0 %v5944_v57 }
 0x147   :  { %v983_v3 = vmax.f32 %v941_v59, 0.0  ;;  %v5949_v59 = vld [vmem:[#allocation2 + $0x14] ss:$8 sps:$4 sm:$0xff]  }
 0x148   :  { %v981_v4 = vmax.f32 %v933_v2, 0.0  ;;  %1523 = vmatprep.subr.bf16.mxu0 %v5949_v59  ;;  %v154_v59 = vld [vmem:[%s8783_s3 + $0x38] sm:$0xff] }
 0x149   :  { %v995_v5 = vpack.c.bf16 %v983_v3, %v982_v58  ;;  %v5952_v3 = vld [vmem:[#allocation2 + $0x24] ss:$8 sps:$4 sm:$0xff]  }
 0x14a   :  { %v994_v6 = vpack.c.bf16 %v981_v4, %v980_v1  ;;  %v5496_v7 = vpop.f32.mrb[16].mxu0  ;;  %v5947_v1 = vld [vmem:[#allocation2 + $0x10] ss:$8 sps:$4 sm:$0xff]  }
 0x14b   :  { %v954_v8 = vadd.f32 %v5496_v7, %v6545_v36  ;;  %v945_v9 = vpop.f32.mrb[17].mxu0  ;;  %1524 = vmatpush1.bf16.msra.mxu0 %v5947_v1 }
 0x14c   :  { %5522 = vmatprep.mubr.bf16.mxu1 %v994_v6  ;;  %v946_v10 = vadd.f32 %v945_v9, %v6545_v36  ;;  %v5497_v11 = vpop.f32.mrb[18].mxu0  ;;  %1525 = vmatprep.subr.bf16.mxu0 %v5952_v3  ;;  %v5953_v9 = vld [vmem:[#allocation2 + $0x30] ss:$8 sps:$4 sm:$0xff]   ;;  %v151_v3 = vld [vmem:[%s8783_s3 + $0x20] sm:$0xff] }
 0x14d   :  { %5523 = vmatmul.mubr.bf16.gmra.mrb[12].mxu1 %v995_v5  ;;  %v986_v12 = vmax.f32 %v954_v8, 0.0  ;;  %v957_v13 = vadd.f32 %v5497_v11, %v6545_v36  ;;  %v948_v14 = vpop.f32.mrb[19].mxu0  ;;  %v5950_v5 = vld [vmem:[#allocation2 + $0x20] ss:$8 sps:$4 sm:$0xff]   ;;  %v5955_v8 = vld [vmem:[#allocation2 + $0x34] ss:$8 sps:$4 sm:$0xff]  }
 0x14e   :  { %v984_v15 = vmax.f32 %v946_v10, 0.0  ;;  %v949_v16 = vadd.f32 %v948_v14, %v6545_v36  ;;  %v5958_v14 = vld [vmem:[#allocation2 + $0x44] ss:$8 sps:$4 sm:$0xff]  }
 0x14f   :  { %v987_v17 = vmax.f32 %v957_v13, 0.0  ;;  %1526 = vmatpush1.bf16.msra.mxu0 %v5950_v5  ;;  %v75_v5 = vld [vmem:[%s8782_s2 + $0x40] sm:$0xff] }
 0x150   :  { %v985_v18 = vmax.f32 %v949_v16, 0.0  ;;  %1527 = vmatprep.subr.bf16.mxu0 %v5955_v8  ;;  %v5956_v16 = vld [vmem:[#allocation2 + $0x40] ss:$8 sps:$4 sm:$0xff]  }
 0x151   :  { %v997_v19 = vpack.c.bf16 %v987_v17, %v986_v12  ;;  %v5961_v17 = vld [vmem:[#allocation2 + $0x54] ss:$8 sps:$4 sm:$0xff]   ;;  %v156_v8 = vld [vmem:[%s8783_s3 + $0x48] sm:$0xff] }
 0x152   :  { %v996_v20 = vpack.c.bf16 %v985_v18, %v984_v15  ;;  %v5500_v21 = vpop.f32.mrb[20].mxu0  ;;  %v5959_v18 = vld [vmem:[#allocation2 + $0x50] ss:$8 sps:$4 sm:$0xff]  }
 0x153   :  { %v970_v22 = vadd.f32 %v5500_v21, %v6545_v36  ;;  %v961_v23 = vpop.f32.mrb[21].mxu0  ;;  %1528 = vmatpush1.bf16.msra.mxu0 %v5953_v9  ;;  %v172_v9 = vadd.s32 64, %v156_v8 }
 0x154   :  { %5526 = vmatprep.mubr.bf16.mxu1 %v996_v20  ;;  %v962_v24 = vadd.f32 %v961_v23, %v6545_v36  ;;  %v5501_v25 = vpop.f32.mrb[22].mxu0  ;;  %1529 = vmatprep.subr.bf16.mxu0 %v5958_v14  ;;  %v153_v14 = vld [vmem:[%s8783_s3 + $0x30] sm:$0xff] }
 0x155   :  { %5527 = vmatmul.mubr.bf16.gmra.mrb[16].mxu1 %v997_v19  ;;  %v990_v26 = vmax.f32 %v970_v22, 0.0  ;;  %v973_v27 = vadd.f32 %v5501_v25, %v6545_v36  ;;  %v964_v28 = vpop.f32.mrb[23].mxu0  ;;  %v5964_v22 = vld [vmem:[#allocation2 + $0x64] ss:$8 sps:$4 sm:$0xff]   ;;  %v5967_v25 = vld [vmem:[#allocation2 + $0x74] ss:$8 sps:$4 sm:$0xff]  }
 0x156   :  { %v988_v29 = vmax.f32 %v962_v24, 0.0  ;;  %v965_v30 = vadd.f32 %v964_v28, %v6545_v36  ;;  %v5962_v24 = vld [vmem:[#allocation2 + $0x60] ss:$8 sps:$4 sm:$0xff]  }
 0x157   :  { %v991_v31 = vmax.f32 %v973_v27, 0.0  ;;  %1530 = vmatpush1.bf16.msra.mxu0 %v5956_v16  ;;  %v68_v27 = vld [vmem:[%s8782_s2 + $0x8] sm:$0xff]  ;;  %v147_v28 = vld [vmem:[%s8783_s3] sm:$0xff]  ;;  %v77_v16 = vld [vmem:[%s8782_s2 + $0x50] sm:$0xff] }
 0x158   :  { %v989_v32 = vmax.f32 %v965_v30, 0.0  ;;  %1531 = vmatprep.subr.bf16.mxu0 %v5961_v17  ;;  %v169_v17 = vadd.s32 64, %v153_v14 }
 0x159   :  { %v999_v33 = vpack.c.bf16 %v991_v31, %v990_v26  ;;  %v5965_v26 = vld [vmem:[#allocation2 + $0x70] ss:$8 sps:$4 sm:$0xff]  }
 0x15a   :  { %v998_v35 = vpack.c.bf16 %v989_v32, %v988_v29  ;;  %v67_v32 = vld [vmem:[%s8782_s2] sm:$0xff] }
 0x15b   :  { %1532 = vmatpush1.bf16.msra.mxu0 %v5959_v18  ;;  %v158_v18 = vld [vmem:[%s8783_s3 + $0x58] sm:$0xff] }
 0x15c   :  { %5530 = vmatprep.mubr.bf16.mxu1 %v998_v35  ;;  %1533 = vmatprep.subr.bf16.mxu0 %v5964_v22  ;;  %v174_v22 = vadd.s32 64, %v158_v18 }
 0x15d   :  { %5531 = vmatmul.mubr.bf16.gmra.mrb[20].mxu1 %v999_v33  ;;  %v163_v33 = vadd.s32 64, %v147_v28  ;;  %v160_v28 = vld [vmem:[%s8783_s3 + $0x68] sm:$0xff] }
 0x15f   :  { %1534 = vmatpush1.bf16.msra.mxu0 %v5962_v24  ;;  %v76_v24 = vld [vmem:[%s8782_s2 + $0x48] sm:$0xff] }
 0x160   :  { %1535 = vmatprep.subr.bf16.mxu0 %v5967_v25  ;;  %v155_v25 = vld [vmem:[%s8783_s3 + $0x40] sm:$0xff] }
 0x163   :  { %1536 = vmatpush1.bf16.msra.mxu0 %v5965_v26  ;;  %v79_v26 = vld [vmem:[%s8782_s2 + $0x60] sm:$0xff] }
 0x1f8   :  { %v5464_v36 = vpop.f32.mrb[0].mxu1 }
 0x1f9   :  { %v601_v40 = vpop.f32.mrb[1].mxu1  ;;  %v6587_v49 = vadd.f32 %v5464_v36, %v518_v39  ;;  %v70_v36 = vld [vmem:[%s8782_s2 + $0x18] sm:$0xff] }
 0x1fa   :  { %v6577_v41 = vadd.f32 %v601_v40, %v518_v39  ;;  %v5465_v42 = vpop.f32.mrb[2].mxu1 }
 0x1fb   :  { %v604_v43 = vpop.f32.mrb[3].mxu1  ;;  %v6589_v52 = vadd.f32 %v5465_v42, %v518_v39  ;;  %v659_v53 = vmul.f32 %v6587_v49, %v6587_v49 }
 0x1fc   :  { %v6579_v44 = vadd.f32 %v604_v43, %v518_v39  ;;  %632 = vadd.xlane.f32.xlu0 %v6577_v41  ;;  %v657_v45 = vmul.f32 %v6577_v41, %v6577_v41 }
 0x1fd   :  { %v660_v54 = vmul.f32 %v6589_v52, %v6589_v52 }
 0x1fe   :  { %665 = vadd.xlane.f32.xlu1 %v657_v45  ;;  %v658_v47 = vmul.f32 %v6579_v44, %v6579_v44 }
 0x200   :  { %634 = vadd.xlane.f32.xlu0 %v6579_v44  ;;  %v5468_v46 = vpop.f32.mrb[4].mxu1 }
 0x201   :  { %v617_v48 = vpop.f32.mrb[5].mxu1  ;;  %v6607_v4 = vadd.f32 %v5468_v46, %v518_v39  ;;  %v71_v46 = vld [vmem:[%s8782_s2 + $0x20] sm:$0xff] }
 0x202   :  { %667 = vadd.xlane.f32.xlu1 %v658_v47  ;;  %v5469_v50 = vpop.f32.mrb[6].mxu1  ;;  %v6597_v56 = vadd.f32 %v617_v48, %v518_v39  ;;  %v152_v47 = vld [vmem:[%s8783_s3 + $0x28] sm:$0xff]  ;;  %v69_v48 = vld [vmem:[%s8782_s2 + $0x10] sm:$0xff] }
 0x203   :  { %v620_v51 = vpop.f32.mrb[7].mxu1  ;;  %v6609_v6 = vadd.f32 %v5469_v50, %v518_v39  ;;  %v663_v7 = vmul.f32 %v6607_v4, %v6607_v4  ;;  %v149_v50 = vld [vmem:[%s8783_s3 + $0x10] sm:$0xff] }
 0x204   :  { %636 = vadd.xlane.f32.xlu0 %v6587_v49  ;;  %v6599_v58 = vadd.f32 %v620_v51, %v518_v39  ;;  %v661_v60 = vmul.f32 %v6597_v56, %v6597_v56  ;;  %v148_v39 = vld [vmem:[%s8783_s3 + $0x8] sm:$0xff]  ;;  %v168_v51 = vadd.s32 64, %v152_v47 }
 0x205   :  { %v664_v10 = vmul.f32 %v6609_v6, %v6609_v6  ;;  %v164_v40 = vadd.s32 64, %v148_v39  ;;  %v157_v39 = vld [vmem:[%s8783_s3 + $0x50] sm:$0xff] }
 0x206   :  { %638 = vadd.xlane.f32.xlu1 %v6589_v52  ;;  %v662_v2 = vmul.f32 %v6599_v58, %v6599_v58 }
 0x208   :  { %669 = vadd.xlane.f32.xlu0 %v659_v53  ;;  %v165_v53 = vadd.s32 64, %v149_v50  ;;  %v159_v50 = vld [vmem:[%s8783_s3 + $0x60] sm:$0xff] }
 0x20a   :  { %671 = vadd.xlane.f32.xlu1 %v660_v54  ;;  %v150_v54 = vld [vmem:[%s8783_s3 + $0x18] sm:$0xff] }
 0x20b   :  { %v166_v57 = vadd.s32 64, %v150_v54  ;;  %v161_v54 = vld [vmem:[%s8783_s3 + $0x70] sm:$0xff] }
 0x20c   :  { %640 = vadd.xlane.f32.xlu0 %v6597_v56 }
 0x20e   :  { %642 = vadd.xlane.f32.xlu1 %v6599_v58 }
 0x210   :  { %673 = vadd.xlane.f32.xlu0 %v661_v60  ;;  %v170_v60 = vadd.s32 64, %v154_v59 }
 0x212   :  { %675 = vadd.xlane.f32.xlu1 %v662_v2  ;;  %v72_v2 = vld [vmem:[%s8782_s2 + $0x28] sm:$0xff] }
 0x214   :  { %644 = vadd.xlane.f32.xlu0 %v6607_v4 }
 0x216   :  { %646 = vadd.xlane.f32.xlu1 %v6609_v6 }
 0x218   :  { %677 = vadd.xlane.f32.xlu0 %v663_v7  ;;  %v6617_v11 = vpop.f32.mrb[8].mxu1  ;;  %v167_v7 = vadd.s32 64, %v151_v3 }
 0x219   :  { %v6619_v12 = vpop.f32.mrb[9].mxu1 }
 0x21a   :  { %679 = vadd.xlane.f32.xlu1 %v664_v10  ;;  %v6621_v13 = vpop.f32.mrb[10].mxu1  ;;  %v74_v10 = vld [vmem:[%s8782_s2 + $0x38] sm:$0xff] }
 0x21b   :  { %v6623_v15 = vpop.f32.mrb[11].mxu1 }
 0x220   :  { %v6625_v19 = vpop.f32.mrb[12].mxu1 }
 0x221   :  { %v6627_v20 = vpop.f32.mrb[13].mxu1 }
 0x222   :  { %v6629_v21 = vpop.f32.mrb[14].mxu1 }
 0x223   :  { %v6631_v23 = vpop.f32.mrb[15].mxu1 }
 0x228   :  { %v6639_v29 = vpop.f32.mrb[16].mxu1 }
 0x229   :  { %v6641_v30 = vpop.f32.mrb[17].mxu1 }
 0x22a   :  { %v6643_v31 = vpop.f32.mrb[18].mxu1 }
 0x22b   :  { %87 = vperm.xlu1 %5911, %v68_v27   ;;  %v6648_v35 = vpop.f32.mrb[19].mxu1  ;;  %v171_v27 = vadd.s32 64, %v155_v25 }
 0x22e   :  { %84 = vperm.xlu0 %5910, %v67_v32   ;;  %v176_v32 = vadd.s32 64, %v160_v28 }
 0x22f   :  { %180 = vperm.xlu1 %5911, %v163_v33   ;;  %v78_v33 = vld [vmem:[%s8782_s2 + $0x58] sm:$0xff] }
 0x230   :  { %v6656_v42 = vpop.f32.mrb[20].mxu1 }
 0x231   :  { %v6658_v43 = vpop.f32.mrb[21].mxu1 }
 0x232   :  { %93 = vperm.xlu0 %5910, %v70_v36   ;;  %v6660_v45 = vpop.f32.mrb[22].mxu1  ;;  %v81_v36 = vld [vmem:[%s8782_s2 + $0x70] sm:$0xff] }
 0x233   :  { %183 = vperm.xlu1 %5911, %v164_v40   ;;  %v6683_v1 = vpop.f32.mrb[23].mxu1  ;;  %v173_v40 = vadd.s32 64, %v157_v39 }
 0x236   :  { %96 = vperm.xlu0 %5910, %v71_v46   ;;  %v162_v46 = vld [vmem:[%s8783_s3 + $0x78] sm:$0xff] }
 0x237   :  { %90 = vperm.xlu1 %5911, %v69_v48   ;;  %v178_v47 = vadd.s32 64, %v162_v46  ;;  %v80_v48 = vld [vmem:[%s8782_s2 + $0x68] sm:$0xff] }
 0x23a   :  { %195 = vperm.xlu0 %5910, %v168_v51   ;;  %v175_v51 = vadd.s32 64, %v159_v50 }
 0x23b   :  { %186 = vperm.xlu1 %5911, %v165_v53   ;;  %v82_v53 = vld [vmem:[%s8782_s2 + $0x78] sm:$0xff] }
 0x23e   :  { %102 = vperm.xlu0 %5910, %v73_v55   ;;  %v177_v55 = vadd.s32 64, %v161_v54 }
 0x23f   :  { %189 = vperm.xlu1 %5911, %v166_v57   ;;  %v6746_v57 = vsub.s32 5, %v6513_v62 }
 0x241   :  { %8896 = vst [vmem:[#allocation12_spill] sm:$0xff] %v6746_v57  ;;  %v6750_v59 = vrot.slane %v6521_v0, %v6746_v57 }
 0x242   :  { %201 = vperm.xlu0 %5910, %v170_v60  }
 0x243   :  { %99 = vperm.xlu1 %5911, %v72_v2   ;;  %v6754_v60 = vadd.f32 %v6619_v12, %v6750_v59  ;;  %v6759_v2 = vadd.f32 %v6621_v13, %v6750_v59  ;;  %v6763_v3 = vadd.f32 %v6623_v15, %v6750_v59  ;;  %v6770_v12 = vadd.f32 %v6627_v20, %v6750_v59 }
 0x244   :  { %v6778_v15 = vadd.f32 %v6625_v19, %v6750_v59  ;;  %v6789_v18 = vadd.f32 %v6617_v11, %v6750_v59 }
 0x245   :  { %8897 = vst [vmem:[#allocation13_spill] sm:$0xff] %v6759_v2  ;;  %8898 = vst [vmem:[#allocation14_spill] sm:$0xff] %v6763_v3 }
 0x246   :  { %108 = vperm.xlu0 %5910, %v75_v5   ;;  %v1198_v5 = vmul.f32 %v6763_v3, %v6763_v3  ;;  %8899 = vst [vmem:[#allocation15_spill] sm:$0xff] %v6770_v12  ;;  %8900 = vst [vmem:[#allocation16_spill] sm:$0xff] %v6778_v15  ;;  %v1199_v39 = vmul.f32 %v6789_v18, %v6789_v18 }
 0x247   :  { %192 = vperm.xlu1 %5911, %v167_v7   ;;  %8902 = vst [vmem:[#allocation18_spill] sm:$0xff] %v6789_v18 }
 0x24a   :  { %207 = vperm.xlu0 %5910, %v172_v9  }
 0x24b   :  { %105 = vperm.xlu1 %5911, %v74_v10  }
 0x24e   :  { %114 = vperm.xlu0 %5910, %v77_v16   ;;  %v6783_v16 = vadd.f32 %v6629_v21, %v6750_v59  ;;  %v6796_v21 = vadd.f32 %v6631_v23, %v6750_v59 }
 0x24f   :  { %198 = vperm.xlu1 %5911, %v169_v17  }
 0x250   :  { %8901 = vst [vmem:[#allocation17_spill] sm:$0xff] %v6783_v16  ;;  %8903 = vst [vmem:[#allocation19_spill] sm:$0xff] %v6796_v21  ;;  %v1202_v23 = vmul.f32 %v6796_v21, %v6796_v21 }
 0x252   :  { %213 = vperm.xlu0 %5910, %v174_v22  }
 0x253   :  { %111 = vperm.xlu1 %5911, %v76_v24  }
 0x256   :  { %120 = vperm.xlu0 %5910, %v79_v26  }
 0x257   :  { %204 = vperm.xlu1 %5911, %v171_v27   ;;  %v1203_v27 = vmul.f32 %v6778_v15, %v6778_v15 }
 0x25a   :  { %219 = vperm.xlu0 %5910, %v176_v32  }
 0x25b   :  { %117 = vperm.xlu1 %5911, %v78_v33  }
 0x25e   :  { %126 = vperm.xlu0 %5910, %v81_v36  }
 0x25f   :  { %210 = vperm.xlu1 %5911, %v173_v40  }
 0x262   :  { %225 = vperm.xlu0 %5910, %v178_v47  }
 0x263   :  { %123 = vperm.xlu1 %5911, %v80_v48  }
 0x267   :  { %216 = vperm.xlu1 %5911, %v175_v51  }
 0x26b   :  { %129 = vperm.xlu1 %5911, %v82_v53  }
 0x26f   :  { %222 = vperm.xlu1 %5911, %v177_v55  }
 0x281   :  { %1149 = vadd.xlane.f32.xlu0 %v6754_v60 }
 0x285   :  { %1155 = vadd.xlane.f32.xlu0 %v6759_v2 }
 0x289   :  { %v633_v7 = vpop.xlane.xlu0 %632  ;;  %1215 = vadd.xlane.f32.xlu0 %v1198_v5 }
 0x28a   :  { %v6772_v8 = vmul.f32 0.0078125, %v633_v7  ;;  %v6815_v7 = vadd.f32 %v6641_v30, %v6750_v59 }
 0x28b   :  { %v666_v9 = vpop.xlane.xlu1 %665 }
 0x28c   :  { %v689_v13 = vmul.f32 %v6772_v8, %v6772_v8  ;;  %v681_v10 = vmul.f32 0.0078125, %v666_v9  ;;  %8904 = vst [vmem:[#allocation20_spill] sm:$0xff] %v6815_v7 }
 0x28d   :  { %v635_v14 = vpop.xlane.xlu0 %634  ;;  %1157 = vadd.xlane.f32.xlu0 %v6770_v12 }
 0x28e   :  { %v697_v20 = vsub.f32 %v681_v10, %v689_v13  ;;  %v6785_v17 = vmul.f32 0.0078125, %v635_v14 }
 0x28f   :  { %v668_v22 = vpop.xlane.xlu1 %667 }
 0x290   :  { %v705_v24 = vmax.f32 %v697_v20, 0.0  ;;  %v690_v19 = vmul.f32 %v6785_v17, %v6785_v17  ;;  %v682_v25 = vmul.f32 0.0078125, %v668_v22  ;;  %v1197_v20 = vmul.f32 %v6754_v60, %v6754_v60 }
 0x291   :  { %v637_v26 = vpop.xlane.xlu0 %636  ;;  %1163 = vadd.xlane.f32.xlu0 %v6783_v16  ;;  %v6823_v22 = vsub.s32 2, %v6513_v62 }
 0x292   :  { %v721_v28 = vadd.f32 1e-05, %v705_v24  ;;  %v698_v32 = vsub.f32 %v682_v25, %v690_v19  ;;  %v6800_v11 = vmul.f32 0.0078125, %v637_v26  ;;  %v713_v25 = vsub.f32 %v6577_v41, %v6772_v8 }
 0x293   :  { %1153 = vadd.xlane.f32.xlu1 %v6789_v18  ;;  %v639_v33 = vpop.xlane.xlu1 %638  ;;  %8905 = vst [vmem:[#allocation21_spill] sm:$0xff] %v6823_v22  ;;  %v6831_v26 = vadd.f32 %v6639_v29, %v6750_v59  ;;  %v1200_v29 = vmul.f32 %v6759_v2, %v6759_v2 }
 0x294   :  { %6088 = vrsqrt.f32 %v721_v28  ;;  %v706_v36 = vmax.f32 %v698_v32, 0.0  ;;  %v6805_v40 = vmul.f32 0.0078125, %v639_v33  ;;  %v691_v48 = vmul.f32 %v6800_v11, %v6800_v11 }
 0x295   :  { %v670_v46 = vpop.xlane.xlu0 %669  ;;  %1225 = vadd.xlane.f32.xlu0 %v1203_v27  ;;  %8906 = vst [vmem:[#allocation22_spill] sm:$0xff] %v6831_v26  ;;  %v6836_v28 = vadd.f32 %v6643_v31, %v6750_v59  ;;  %v6847_v31 = vsub.s32 3, %v6513_v62 }
 0x296   :  { %v722_v47 = vadd.f32 1e-05, %v706_v36  ;;  %v683_v50 = vmul.f32 0.0078125, %v670_v46  ;;  %v692_v53 = vmul.f32 %v6805_v40, %v6805_v40  ;;  %v6844_v46 = vrot.slane %v6521_v0, %v6823_v22 }
 0x297   :  { %1217 = vadd.xlane.f32.xlu1 %v1199_v39  ;;  %v672_v51 = vpop.xlane.xlu1 %671  ;;  %8907 = vst [vmem:[#allocation23_spill] sm:$0xff] %v6836_v28  ;;  %8908 = vst [vmem:[#allocation24_spill] sm:$0xff] %v6847_v31 }
 0x298   :  { %6090 = vrsqrt.f32 %v722_v47  ;;  %v699_v54 = vsub.f32 %v683_v50, %v691_v48  ;;  %v684_v55 = vmul.f32 0.0078125, %v672_v51  ;;  %v714_v50 = vsub.f32 %v6579_v44, %v6785_v17 }
 0x299   :  { %v641_v5 = vpop.xlane.xlu0 %640  ;;  %1223 = vadd.xlane.f32.xlu0 %v1202_v23  ;;  %v6865_v17 = vrot.slane %v6521_v0, %v6847_v31  ;;  %v715_v0 = vsub.f32 %v6587_v49, %v6800_v11  ;;  %v6893_v11 = vadd.f32 %v6658_v43, %v6750_v59 }
 0x29a   :  { %v707_v9 = vmax.f32 %v699_v54, 0.0  ;;  %v700_v13 = vsub.f32 %v684_v55, %v692_v53  ;;  %v6817_v10 = vmul.f32 0.0078125, %v641_v5  ;;  %v6856_v53 = vadd.f32 %v6648_v35, %v6750_v59 }
 0x29b   :  { %1151 = vadd.xlane.f32.xlu1 %v6763_v3  ;;  %v643_v14 = vpop.xlane.xlu1 %642  ;;  %v1207_v54 = vmul.f32 %v6831_v26, %v6831_v26  ;;  %8913 = vst [vmem:[#allocation29_spill] sm:$0xff] %v6893_v11 }
 0x29c   :  { %v723_v24 = vadd.f32 1e-05, %v707_v9  ;;  %v708_v19 = vmax.f32 %v700_v13, 0.0  ;;  %v6827_v30 = vmul.f32 0.0078125, %v643_v14  ;;  %v693_v39 = vmul.f32 %v6817_v10, %v6817_v10  ;;  %8909 = vst [vmem:[#allocation25_spill] sm:$0xff] %v6856_v53 }
 0x29d   :  { %v674_v27 = vpop.xlane.xlu0 %673  ;;  %1165 = vadd.xlane.f32.xlu0 %v6815_v7 }
 0x29e   :  { %v6089_v32 = vpop.eup %6088  ;;  %6092 = vrsqrt.f32 %v723_v24  ;;  %v724_v33 = vadd.f32 1e-05, %v708_v19  ;;  %v685_v41 = vmul.f32 0.0078125, %v674_v27  ;;  %v694_v23 = vmul.f32 %v6827_v30, %v6827_v30 }
 0x29f   :  { %v737_v8 = vmul.f32 %v6089_v32, %v713_v25  ;;  %1213 = vadd.xlane.f32.xlu1 %v1197_v20  ;;  %v676_v36 = vpop.xlane.xlu1 %675  ;;  %v1206_v32 = vmul.f32 %v6856_v53, %v6856_v53 }
 0x2a0   :  { %6094 = vrsqrt.f32 %v724_v33  ;;  %v701_v47 = vsub.f32 %v685_v41, %v693_v39  ;;  %v686_v48 = vmul.f32 0.0078125, %v676_v36 }
 0x2a1   :  { %v645_v51 = vpop.xlane.xlu0 %644  ;;  %1171 = vadd.xlane.f32.xlu0 %v6836_v28  ;;  %v749_v44 = vmul.f32 %v6844_v46, %v737_v8 }
 0x2a2   :  { %v6091_v55 = vpop.eup %6090  ;;  %v709_v5 = vmax.f32 %v701_v47, 0.0  ;;  %v702_v9 = vsub.f32 %v686_v48, %v694_v23  ;;  %v6860_v13 = vmul.f32 0.0078125, %v645_v51  ;;  %v716_v51 = vsub.f32 %v6589_v52, %v6805_v40 }
 0x2a3   :  { %v738_v14 = vmul.f32 %v6091_v55, %v714_v50  ;;  %1219 = vadd.xlane.f32.xlu1 %v1200_v29  ;;  %v647_v20 = vpop.xlane.xlu1 %646  ;;  %v6878_v36 = vadd.f32 %v6865_v17, %v749_v44  ;;  %v1201_v52 = vmul.f32 %v6770_v12, %v6770_v12  ;;  %v6901_v44 = vand.u32 127, %v65_v61 }
 0x2a4   :  { %v725_v24 = vadd.f32 1e-05, %v709_v5  ;;  %v710_v35 = vmax.f32 %v702_v9, 0.0  ;;  %v6867_v19 = vmul.f32 0.0078125, %v647_v20  ;;  %v695_v39 = vmul.f32 %v6860_v13, %v6860_v13 }
 0x2a5   :  { %v678_v25 = vpop.xlane.xlu0 %677  ;;  %1233 = vadd.xlane.f32.xlu0 %v1207_v54  ;;  %v750_v27 = vmul.f32 %v6844_v46, %v738_v14  ;;  %8910 = vst [vmem:[#allocation26_spill] sm:$0xff] %v6878_v36  ;;  %v717_v61 = vsub.f32 %v6597_v56, %v6817_v10  ;;  %v718_v56 = vsub.f32 %v6599_v58, %v6827_v30  ;;  %v8920_v58 = vmov 0 }
 0x2a6   :  { %6096 = vrsqrt.f32 %v725_v24  ;;  %v726_v33 = vadd.f32 1e-05, %v710_v35  ;;  %v687_v41 = vmul.f32 0.0078125, %v678_v25  ;;  %v696_v47 = vmul.f32 %v6867_v19, %v6867_v19 }
 0x2a7   :  { %1161 = vadd.xlane.f32.xlu1 %v6778_v15  ;;  %v680_v8 = vpop.xlane.xlu1 %679  ;;  %v6881_v29 = vadd.f32 %v6865_v17, %v750_v27  ;;  %v6907_v35 = vadd.f32 %v6660_v45, %v6750_v59  ;;  %v6912_v27 = vadd.f32 %v6683_v1, %v6750_v59  ;;  %v6926_v1 = vadd.f32 %v6656_v42, %v6750_v59 }
 0x2a8   :  { %v6093_v23 = vpop.eup %6092  ;;  %6098 = vrsqrt.f32 %v726_v33  ;;  %v703_v48 = vsub.f32 %v687_v41, %v695_v39  ;;  %v688_v50 = vmul.f32 0.0078125, %v680_v8  ;;  %v1204_v33 = vmul.f32 %v6783_v16, %v6783_v16 }
 0x2a9   :  { %8911 = vst [vmem:[#allocation27_spill] sm:$0xff] %v6881_v29  ;;  %v6889_v49 = vpack.c.bf16 %v6881_v29, %v6878_v36  ;;  %1231 = vadd.xlane.f32.xlu0 %v1206_v32  ;;  %v739_v54 = vmul.f32 %v6093_v23, %v715_v0  ;;  %8914 = vst [vmem:[#allocation30_spill] sm:$0xff] %v6907_v35  ;;  %v5978_v36 = vld [vmem:[%s8785_s5 + $0x1d0] sm:$0xff]  }
 0x2aa   :  { %v6095_v55 = vpop.eup %6094  ;;  %v711_v5 = vmax.f32 %v703_v48, 0.0  ;;  %v704_v9 = vsub.f32 %v688_v50, %v696_v47  ;;  %8915 = vst [vmem:[#allocation31_spill] sm:$0xff] %v6912_v27  ;;  %8918 = vst [vmem:[#allocation34_spill] sm:$0xff] %v6926_v1  ;;  %v1210_v47 = vmul.f32 %v6912_v27, %v6912_v27 }
 0x2ab   :  { %8912 = vst [vmem:[#allocation28_spill] sm:$0xff] %v6889_v49  ;;  %1159 = vadd.xlane.f32.xlu1 %v6796_v21  ;;  %1554 = vmatmul.mubr.bf16.vlgmr.msra.gmra.mrb[24].mxu0 %v6889_v49  ;;  %v740_v40 = vmul.f32 %v6095_v55, %v716_v51  ;;  %v751_v14 = vmul.f32 %v6844_v46, %v739_v54  ;;  %v88_v20 = vpop.permute.xlu1 %87  ;;  %v8923_v54 = vmov 0 }
 0x2ac   :  { %v727_v43 = vadd.f32 1e-05, %v711_v5  ;;  %v712_v24 = vmax.f32 %v704_v9, 0.0  ;;  %1563 = vmatprep.mubr.bf16.mxu0 %v8790_v37  ;;  %vm132_vm2 = vcmp.eq.s32.totalorder %v6901_v44, %v88_v20  ;;  %v1211_v51 = vmul.f32 %v6926_v1, %v6926_v1 }
 0x2ad   :  { %1173 = vadd.xlane.f32.xlu0 %v6893_v11  ;;  %v752_v25 = vmul.f32 %v6844_v46, %v740_v40  ;;  %v6919_v39 = vadd.f32 %v6865_v17, %v751_v14  ;;  %v85_v41 = vpop.permute.xlu0 %84  ;;  %v719_v55 = vsub.f32 %v6607_v4, %v6860_v13  ;;  %v720_v4 = vsub.f32 %v6609_v6, %v6867_v19 }
 0x2ae   :  { %6100 = vrsqrt.f32 %v727_v43  ;;  %v728_v32 = vadd.f32 1e-05, %v712_v24  ;;  %vm131_vm0 = vcmp.eq.s32.totalorder %v6901_v44, %v85_v41  ;;  %v1205_v43 = vmul.f32 %v6815_v7, %v6815_v7 }
 0x2af   :  { %1221 = vadd.xlane.f32.xlu1 %v1201_v52  ;;  %8916 = vst [vmem:[#allocation32_spill] sm:$0xff] %v6919_v39  ;;  %v6922_v45 = vadd.f32 %v6865_v17, %v752_v25  ;;  %v181_v0 = vpop.permute.xlu1 %180  ;;  %v8792_v52 = vmov 1.0|1.0   ;;  %v1208_v19 = vmul.f32 %v6836_v28, %v6836_v28  ;;  %v1212_v41 = vmul.f32 %v6907_v35, %v6907_v35 }
 0x2b0   :  { %v6097_v8 = vpop.eup %6096  ;;  %6102 = vrsqrt.f32 %v728_v32  ;;  %vm227_vm1 = vcmp.eq.s32.totalorder %v6901_v44, %v181_v0 }
 0x2b1   :  { %8917 = vst [vmem:[#allocation33_spill] sm:$0xff] %v6922_v45  ;;  %v6934_v10 = vpack.c.bf16 %v6922_v45, %v6919_v39  ;;  %1179 = vadd.xlane.f32.xlu0 %v6907_v35  ;;  %v741_v23 = vmul.f32 %v6097_v8, %v717_v61  ;;  %vm6942_vm3 = vmor %vm131_vm0, %vm227_vm1  ;;  %v5977_v45 = vld [vmem:[%s8785_s5 + $0x1c8] sm:$0xff]  }
 0x2b2   :  { %v6099_v48 = vpop.eup %6098  ;;  %v8921_v58 = vsel %vm6942_vm3, 4294967295, %v8920_v58 }
 0x2b3   :  { %8919 = vst [vmem:[#allocation35_spill] sm:$0xff] %v6934_v10  ;;  %1227 = vadd.xlane.f32.xlu1 %v1204_v33  ;;  %1564 = vmatmul.mubr.bf16.gmra.mrb[28].mxu0 %v6934_v10  ;;  %v742_v42 = vmul.f32 %v6099_v48, %v718_v56  ;;  %v753_v59 = vmul.f32 %v6844_v46, %v741_v23  ;;  %8922 = vst [vmem:[#allocation36_spill] sm:$0xff] %v8921_v58  ;;  %v184_v30 = vpop.permute.xlu1 %183  ;;  %v7018_v48 = vpop.permute.xlu0 %93  ;;  %v5979_v58 = vld [vmem:[%s8785_s5 + $0x1d8] sm:$0xff]  }
 0x2b4   :  { %1573 = vmatprep.mubr.bf16.mxu0 %v8790_v37  ;;  %vm228_vm4 = vcmp.eq.s32.totalorder %v6901_v44, %v184_v30  ;;  %vm134_vm7 = vcmp.eq.s32.totalorder %v6901_v44, %v7018_v48 }
 0x2b5   :  { %v754_v50 = vmul.f32 %v6844_v46, %v742_v42  ;;  %1239 = vadd.xlane.f32.xlu0 %v1210_v47  ;;  %vm6951_vm5 = vmor %vm132_vm2, %vm228_vm4  ;;  %v6963_v5 = vadd.f32 %v6865_v17, %v753_v59 }
 0x2b6   :  { %v8924_v54 = vsel %vm6951_vm5, 4294967295, %v8923_v54  ;;  %vm8844_vm6 = vmpackc.low %vm6951_vm5, %vm6942_vm3 }
 0x2b7   :  { %8925 = vst [vmem:[#allocation37_spill] sm:$0xff] %v8924_v54  ;;  %1169 = vadd.xlane.f32.xlu1 %v6831_v26  ;;  %8926 = vst [vmem:[#allocation38_spill] sm:$0xff] %v6963_v5  ;;  %v6966_v9 = vadd.f32 %v6865_v17, %v754_v50  ;;  %5550 = vmatprep.mubr.msk.bf16.mxu1 %vm8844_vm6, %v8792_v52  ;;  %v7022_v59 = vpop.permute.xlu0 %96 }
 0x2b8   :  { %v6101_v40 = vpop.eup %6100  ;;  %vm135_vm8 = vcmp.eq.s32.totalorder %v6901_v44, %v7022_v59 }
 0x2b9   :  { %8927 = vst [vmem:[#allocation39_spill] sm:$0xff] %v6966_v9  ;;  %v6978_v13 = vpack.c.bf16 %v6966_v9, %v6963_v5  ;;  %v743_v14 = vmul.f32 %v6101_v40, %v719_v55  ;;  %1241 = vadd.xlane.f32.xlu0 %v1211_v51  ;;  %v5976_v5 = vld [vmem:[%s8785_s5 + $0x1c0] sm:$0xff]  }
 0x2ba   :  { %v6103_v20 = vpop.eup %6102  ;;  %5598 = vmatprep.subr.bf16.mxu0 %v5976_v5 }
 0x2bb   :  { %8928 = vst [vmem:[#allocation40_spill] sm:$0xff] %v6978_v13  ;;  %1167 = vadd.xlane.f32.xlu1 %v6856_v53  ;;  %1574 = vmatmul.mubr.bf16.gmra.mrb[32].mxu0 %v6978_v13  ;;  %v744_v24 = vmul.f32 %v6103_v20, %v720_v4  ;;  %v755_v25 = vmul.f32 %v6844_v46, %v743_v14  ;;  %v7026_v50 = vpop.permute.xlu0 %195 }
 0x2bc   :  { %1583 = vmatprep.mubr.bf16.mxu0 %v8790_v37  ;;  %5599 = vmatpush3.bf16.msra.mxu0 %v5976_v5  ;;  %v5980_v5 = vld [vmem:[%s8785_s5 + $0x1e0] sm:$0xff]   ;;  %vm232_vm10 = vcmp.eq.s32.totalorder %v6901_v44, %v7026_v50 }
 0x2bd   :  { %v756_v6 = vmul.f32 %v6844_v46, %v744_v24  ;;  %v6990_v32 = vadd.f32 %v6865_v17, %v755_v25  ;;  %v1209_v46 = vmul.f32 %v6893_v11, %v6893_v11  ;;  %5600 = vmatprep.subr.bf16.mxu0 %v5977_v45 }
 0x2bf   :  { %1229 = vadd.xlane.f32.xlu1 %v1205_v43  ;;  %8929 = vst [vmem:[#allocation41_spill] sm:$0xff] %v6990_v32  ;;  %v6993_v61 = vadd.f32 %v6865_v17, %v756_v6  ;;  %v7006_v17 = vpop.permute.xlu1 %90  ;;  %v7030_v55 = vpop.permute.xlu0 %102 }
 0x2c0   :  { %5601 = vmatpush3.bf16.msra.mxu0 %v5977_v45  ;;  %v5981_v45 = vld [vmem:[%s8785_s5 + $0x1e8] sm:$0xff]   ;;  %vm133_vm9 = vcmp.eq.s32.totalorder %v6901_v44, %v7006_v17  ;;  %vm137_vm12 = vcmp.eq.s32.totalorder %v6901_v44, %v7030_v55  ;;  %v5968_v17 = vld [vmem:[%s8785_s5 + $0x180] sm:$0xff]  }
 0x2c1   :  { %8930 = vst [vmem:[#allocation42_spill] sm:$0xff] %v6993_v61  ;;  %v6997_v33 = vpack.c.bf16 %v6993_v61, %v6990_v32  ;;  %5602 = vmatprep.subr.bf16.mxu0 %v5978_v36 }
 0x2c3   :  { %8931 = vst [vmem:[#allocation43_spill] sm:$0xff] %v6997_v33  ;;  %1235 = vadd.xlane.f32.xlu1 %v1208_v19  ;;  %1584 = vmatmul.mubr.bf16.gmra.mrb[36].mxu0 %v6997_v33  ;;  %v7008_v0 = vpop.permute.xlu1 %186  ;;  %v7034_v4 = vpop.permute.xlu0 %201 }
 0x2c4   :  { %5603 = vmatpush3.bf16.msra.mxu0 %v5978_v36  ;;  %vm229_vm11 = vcmp.eq.s32.totalorder %v6901_v44, %v7008_v0  ;;  %vm234_vm14 = vcmp.eq.s32.totalorder %v6901_v44, %v7034_v4  ;;  %v8940_v0 = vmov 0  ;;  %v8953_v4 = vmov 0 }
 0x2c5   :  { %5604 = vmatprep.subr.bf16.mxu0 %v5979_v58  ;;  %vm7208_vm1 = vmor %vm133_vm9, %vm229_vm11 }
 0x2c7   :  { %1177 = vadd.xlane.f32.xlu1 %v6926_v1  ;;  %v7010_v8 = vpop.permute.xlu1 %189  ;;  %v7038_v20 = vpop.permute.xlu0 %108 }
 0x2c8   :  { %5605 = vmatpush3.bf16.msra.mxu0 %v5979_v58  ;;  %vm230_vm13 = vcmp.eq.s32.totalorder %v6901_v44, %v7010_v8  ;;  %v8943_v8 = vmov 0 }
 0x2c9   :  { %5606 = vmatprep.subr.bf16.mxu0 %v5980_v5  ;;  %vm7229_vm9 = vmor %vm134_vm7, %vm230_vm13 }
 0x2ca   :  { %v8941_v0 = vsel %vm7229_vm9, 4294967295, %v8940_v0 }
 0x2cb   :  { %1175 = vadd.xlane.f32.xlu1 %v6912_v27  ;;  %v7012_v56 = vpop.permute.xlu1 %99  ;;  %v7042_v24 = vpop.permute.xlu0 %207  ;;  %8942 = vst [vmem:[#allocation50_spill] sm:$0xff] %v8941_v0 }
 0x2cc   :  { %5607 = vmatpush3.bf16.msra.mxu0 %v5980_v5  ;;  %vm136_vm15 = vcmp.eq.s32.totalorder %v6901_v44, %v7012_v56  ;;  %vm236_vm4 = vcmp.eq.s32.totalorder %v6901_v44, %v7042_v24  ;;  %v8946_v56 = vmov 0  ;;  %v8961_v24 = vmov 0 }
 0x2cd   :  { %5608 = vmatprep.subr.bf16.mxu0 %v5981_v45  ;;  %vm7242_vm11 = vmor %vm136_vm15, %vm232_vm10 }
 0x2ce   :  { %v8944_v8 = vsel %vm7242_vm11, 4294967295, %v8943_v8 }
 0x2cf   :  { %1237 = vadd.xlane.f32.xlu1 %v1209_v46  ;;  %v7014_v23 = vpop.permute.xlu1 %192  ;;  %v7046_v6 = vpop.permute.xlu0 %114  ;;  %8945 = vst [vmem:[#allocation51_spill] sm:$0xff] %v8944_v8 }
 0x2d0   :  { %5609 = vmatpush3.bf16.msra.mxu0 %v5981_v45  ;;  %vm231_vm0 = vcmp.eq.s32.totalorder %v6901_v44, %v7014_v23 }
 0x2d1   :  { %vm7260_vm10 = vmor %vm135_vm8, %vm231_vm0 }
 0x2d2   :  { %v8947_v56 = vsel %vm7260_vm10, 4294967295, %v8946_v56  ;;  %vm8845_vm8 = vmpackc.low %vm7229_vm9, %vm7208_vm1 }
 0x2d3   :  { %1243 = vadd.xlane.f32.xlu1 %v1212_v41  ;;  %v7016_v47 = vpop.permute.xlu1 %105  ;;  %v7050_v46 = vpop.permute.xlu0 %213  ;;  %8948 = vst [vmem:[#allocation52_spill] sm:$0xff] %v8947_v56  ;;  %vm8846_vm0 = vmpackc.low %vm7242_vm11, %vm7260_vm10 }
 0x2d4   :  { %vm138_vm7 = vcmp.eq.s32.totalorder %v6901_v44, %v7016_v47  ;;  %v5970_v47 = vld [vmem:[%s8785_s5 + $0x190] sm:$0xff]  }
 0x2d7   :  { %v7020_v42 = vpop.permute.xlu1 %198  ;;  %v7054_v37 = vpop.permute.xlu0 %120 }
 0x2d8   :  { %vm233_vm13 = vcmp.eq.s32.totalorder %v6901_v44, %v7020_v42  ;;  %v8956_v42 = vmov 0 }
 0x2db   :  { %v7024_v30 = vpop.permute.xlu1 %111  ;;  %v7058_v57 = vpop.permute.xlu0 %219 }
 0x2dc   :  { %vm140_vm6 = vcmp.eq.s32.totalorder %v6901_v44, %v7024_v30 }
 0x2df   :  { %v7028_v51 = vpop.permute.xlu1 %204  ;;  %v7062_v61 = vpop.permute.xlu0 %126 }
 0x2e3   :  { %v7032_v40 = vpop.permute.xlu1 %117  ;;  %v7066_v9 = vpop.permute.xlu0 %225 }
 0x2e4   :  { %8934 = vst [vmem:[#allocation46_spill] sm:$0xff] %v7066_v9  ;;  %vm142_vm2 = vcmp.eq.s32.totalorder %v6901_v44, %v7032_v40  ;;  %v8970_v40 = vmov 0 }
 0x2e7   :  { %v7036_v14 = vpop.permute.xlu1 %210 }
 0x2eb   :  { %v7040_v43 = vpop.permute.xlu1 %123 }
 0x2ef   :  { %v7044_v25 = vpop.permute.xlu1 %216 }
 0x2f3   :  { %v7048_v19 = vpop.permute.xlu1 %129 }
 0x2f4   :  { %8932 = vst [vmem:[#allocation44_spill] sm:$0xff] %v7048_v19 }
 0x2f7   :  { %v7052_v41 = vpop.permute.xlu1 %222 }
 0x2f8   :  { %8933 = vst [vmem:[#allocation45_spill] sm:$0xff] %v7052_v41 }
 0x30e   :  { %v1150_v29 = vpop.xlane.xlu0 %1149 }
 0x312   :  { %v7084_v33 = vpop.xlane.xlu0 %1155 }
 0x316   :  { %v1216_v13 = vpop.xlane.xlu0 %1215 }
 0x31a   :  { %v7094_v49 = vpop.xlane.xlu0 %1157 }
 0x31e   :  { %v7098_v63 = vpop.xlane.xlu0 %1163 }
 0x320   :  { %v7056_v52 = vpop.xlane.xlu1 %1153 }
 0x322   :  { %v7102_v5 = vpop.xlane.xlu0 %1225 }
 0x324   :  { %v7060_v34 = vpop.xlane.xlu1 %1217 }
 0x326   :  { %v7106_v16 = vpop.xlane.xlu0 %1223 }
 0x328   :  { %v7064_v32 = vpop.xlane.xlu1 %1151 }
 0x329   :  { %v7119_v19 = vmul.f32 0.0078125, %v7064_v32  ;;  %v7134_v32 = vsub.s32 7, %v6513_v62 }
 0x32a   :  { %v7112_v12 = vpop.xlane.xlu0 %1165 }
 0x32b   :  { %8936 = vst [vmem:[#allocation48_spill] sm:$0xff] %v7134_v32  ;;  %v7249_v48 = vmul.f32 0.0078125, %v7112_v12 }
 0x32c   :  { %v7074_v39 = vpop.xlane.xlu1 %1213 }
 0x32d   :  { %v1269_v23 = vmul.f32 %v7249_v48, %v7249_v48 }
 0x330   :  { %v7082_v54 = vpop.xlane.xlu1 %1219 }
 0x334   :  { %v7089_v10 = vpop.xlane.xlu1 %1161 }
 0x338   :  { %v7096_v31 = vpop.xlane.xlu1 %1159 }
 0x33c   :  { %v7100_v58 = vpop.xlane.xlu1 %1221 }
 0x340   :  { %v7104_v28 = vpop.xlane.xlu1 %1227 }
 0x37e   :  { %v1555_v36 = vpop.f32.mrb[24].mxu0 }
 0x37f   :  { %v1557_v22 = vpop.f32.mrb[25].mxu0 }
 0x380   :  { %v1559_v38 = vpop.f32.mrb[26].mxu0 }
 0x381   :  { %v1594_v1 = vpack.c.bf16 %v1559_v38, %v1555_v36  ;;  %v1561_v35 = vpop.f32.mrb[27].mxu0  ;;  %v7108_v38 = vpop.xlane.xlu1 %1169 }
 0x382   :  { %v1595_v27 = vpack.c.bf16 %v1561_v35, %v1557_v22 }
 0x383   :  { %5534 = vmatprep.subr.bf16.mxu1 %v1594_v1 }
 0x384   :  { %5535 = vmatpush3.bf16.msra.mxu1 %v1594_v1 }
 0x385   :  { %v7114_v41 = vpop.xlane.xlu1 %1167 }
 0x386   :  { %v1565_v26 = vpop.f32.mrb[28].mxu0 }
 0x387   :  { %v1567_v11 = vpop.f32.mrb[29].mxu0 }
 0x388   :  { %v1569_v53 = vpop.f32.mrb[30].mxu0 }
 0x389   :  { %v1596_v15 = vpack.c.bf16 %v1569_v53, %v1565_v26  ;;  %v1571_v45 = vpop.f32.mrb[31].mxu0 }
 0x38a   :  { %v1597_v7 = vpack.c.bf16 %v1571_v45, %v1567_v11  ;;  %v7116_v11 = vpop.xlane.xlu0 %1171 }
 0x38b   :  { %5536 = vmatprep.subr.bf16.mxu1 %v1596_v15 }
 0x38c   :  { %5537 = vmatpush3.bf16.msra.mxu1 %v1596_v15 }
 0x38e   :  { %v1575_v36 = vpop.f32.mrb[32].mxu0 }
 0x38f   :  { %v1577_v22 = vpop.f32.mrb[33].mxu0 }
 0x390   :  { %v1579_v35 = vpop.f32.mrb[34].mxu0 }
 0x391   :  { %v1598_v1 = vpack.c.bf16 %v1579_v35, %v1575_v36  ;;  %v1581_v21 = vpop.f32.mrb[35].mxu0  ;;  %v7121_v36 = vpop.xlane.xlu1 %1229  ;;  %v7128_v35 = vsub.s32 6, %v6513_v62 }
 0x392   :  { %v7110_v18 = vpack.c.bf16 %v1581_v21, %v1577_v22  ;;  %v7125_v22 = vmul.f32 0.0078125, %v1150_v29  ;;  %v7138_v29 = vpop.xlane.xlu0 %1233 }
 0x393   :  { %5538 = vmatprep.subr.bf16.mxu1 %v1598_v1  ;;  %8935 = vst [vmem:[#allocation47_spill] sm:$0xff] %v7128_v35 }
 0x394   :  { %5539 = vmatpush3.bf16.msra.mxu1 %v1598_v1  ;;  %v1261_v1 = vmul.f32 %v7125_v22, %v7125_v22 }
 0x396   :  { %v1585_v26 = vpop.f32.mrb[36].mxu0 }
 0x397   :  { %v1587_v53 = vpop.f32.mrb[37].mxu0 }
 0x398   :  { %v1589_v15 = vpop.f32.mrb[38].mxu0 }
 0x399   :  { %v1600_v45 = vpack.c.bf16 %v1589_v15, %v1585_v26  ;;  %v1591_v2 = vpop.f32.mrb[39].mxu0  ;;  %v1245_v26 = vmul.f32 0.0078125, %v7074_v39  ;;  %v1246_v15 = vmul.f32 0.0078125, %v1216_v13  ;;  %v7154_v13 = vmul.f32 0.0078125, %v7084_v33 }
 0x39a   :  { %v7123_v21 = vpack.c.bf16 %v1591_v2, %v1587_v53  ;;  %v1262_v2 = vmul.f32 %v7119_v19, %v7119_v19  ;;  %v7140_v53 = vpop.xlane.xlu1 %1235 }
 0x39b   :  { %5540 = vmatprep.subr.bf16.mxu1 %v1600_v45  ;;  %v1277_v39 = vsub.f32 %v1245_v26, %v1261_v1  ;;  %v7164_v1 = vmul.f32 0.0078125, %v7096_v31  ;;  %v1264_v33 = vmul.f32 %v7154_v13, %v7154_v13  ;;  %v7171_v26 = vmul.f32 0.0078125, %v7056_v52 }
 0x39c   :  { %5541 = vmatpush3.bf16.msra.mxu1 %v1600_v45  ;;  %v6232_v45 = vld [vmem:[%s8788_s8] sm:$0xff]  ;;  %v1278_v3 = vsub.f32 %v1246_v15, %v1262_v2  ;;  %v1248_v15 = vmul.f32 0.0078125, %v7082_v54  ;;  %v1232_v2 = vpop.xlane.xlu0 %1231  ;;  %v1247_v52 = vmul.f32 0.0078125, %v7060_v34 }
 0x39d   :  { %5542 = vmatprep.subr.bf16.mxu1 %v1595_v27  ;;  %v7146_v9 = vrot.slane %v6232_v45, %v7128_v35  ;;  %v7149_v62 = vrot.slane %v6232_v45, %v7134_v32  ;;  %v1293_v31 = vmax.f32 %v1277_v39, 0.0  ;;  %v1249_v45 = vmul.f32 0.0078125, %v7100_v58 }
 0x39e   :  { %v1263_v32 = vmul.f32 %v7171_v26, %v7171_v26  ;;  %v1294_v35 = vmax.f32 %v1278_v3, 0.0  ;;  %v7186_v54 = vpop.xlane.xlu1 %1177  ;;  %v1250_v58 = vmul.f32 0.0078125, %v7106_v16  ;;  %v1266_v39 = vmul.f32 %v7164_v1, %v7164_v1 }
 0x39f   :  { %v1280_v34 = vsub.f32 %v1248_v15, %v1264_v33  ;;  %v8937_v3 = vmov 0  ;;  %v7217_v16 = vmul.f32 0.0078125, %v7098_v63  ;;  %v1251_v33 = vmul.f32 0.0078125, %v7102_v5 }
 0x3a0   :  { %5543 = vmatpush3.bf16.msra.mxu1 %v1595_v27  ;;  %v7161_v27 = vmul.f32 0.0078125, %v7094_v49  ;;  %v8938_v3 = vsel %vm7208_vm1, 4294967295, %v8937_v3  ;;  %v1279_v63 = vsub.f32 %v1247_v52, %v1263_v32  ;;  %v1326_v15 = vadd.f32 1e-05, %v1294_v35  ;;  %v1174_v35 = vpop.xlane.xlu0 %1173  ;;  %v5969_v52 = vld [vmem:[%s8785_s5 + $0x188] sm:$0xff]  }
 0x3a1   :  { %5544 = vmatprep.subr.bf16.mxu1 %v1597_v7  ;;  %8939 = vst [vmem:[#allocation49_spill] sm:$0xff] %v8938_v3  ;;  %v1282_v5 = vsub.f32 %v1250_v58, %v1266_v39  ;;  %v7252_v32 = vmul.f32 0.0078125, %v7114_v41  ;;  %v1268_v12 = vmul.f32 %v7217_v16, %v7217_v16  ;;  %v1296_v50 = vmax.f32 %v1280_v34, 0.0 }
 0x3a2   :  { %v1265_v49 = vmul.f32 %v7161_v27, %v7161_v27  ;;  %v1252_v41 = vmul.f32 0.0078125, %v7104_v28  ;;  %v1295_v28 = vmax.f32 %v1279_v63, 0.0  ;;  %v1254_v58 = vmul.f32 0.0078125, %v1232_v2 }
 0x3a3   :  { %v1270_v39 = vmul.f32 %v7252_v32, %v7252_v32  ;;  %v8949_v34 = vmov 1.0|1.0   ;;  %v1328_v2 = vadd.f32 1e-05, %v1296_v50 }
 0x3a4   :  { %5545 = vmatpush3.bf16.msra.mxu1 %v1597_v7  ;;  %v7184_v7 = vmul.f32 0.0078125, %v7089_v10  ;;  %v1281_v10 = vsub.f32 %v1249_v45, %v1265_v49  ;;  %v1253_v45 = vmul.f32 0.0078125, %v7121_v36  ;;  %v1298_v36 = vmax.f32 %v1282_v5, 0.0  ;;  %v1180_v63 = vpop.xlane.xlu0 %1179 }
 0x3a5   :  { %5546 = vmatprep.subr.bf16.mxu1 %v7110_v18 }
 0x3a6   :  { %v1267_v49 = vmul.f32 %v7184_v7, %v7184_v7  ;;  %v1297_v59 = vmax.f32 %v1281_v10, 0.0  ;;  %v8950_v10 = vmov 0  ;;  %v1330_v55 = vadd.f32 1e-05, %v1298_v36 }
 0x3a8   :  { %5547 = vmatpush3.bf16.msra.mxu1 %v7110_v18  ;;  %v1325_v18 = vadd.f32 1e-05, %v1293_v31  ;;  %v1176_v31 = vpop.xlane.xlu1 %1175 }
 0x3a9   :  { %5548 = vmatprep.subr.bf16.mxu1 %v7123_v21 }
 0x3aa   :  { %6104 = vrsqrt.f32 %v1325_v18  ;;  %v1284_v18 = vsub.f32 %v1252_v41, %v1268_v12  ;;  %v7341_v12 = vmul.f32 0.0078125, %v7108_v38  ;;  %v7353_v41 = vmul.f32 0.0078125, %v1174_v35 }
 0x3ab   :  { %6106 = vrsqrt.f32 %v1326_v15  ;;  %v1327_v15 = vadd.f32 1e-05, %v1295_v28  ;;  %v1256_v35 = vmul.f32 0.0078125, %v7140_v53 }
 0x3ac   :  { %5549 = vmatpush3.bf16.msra.mxu1 %v7123_v21  ;;  %v1283_v21 = vsub.f32 %v1251_v33, %v1267_v49  ;;  %v1285_v33 = vsub.f32 %v1253_v45, %v1269_v23  ;;  %v7338_v49 = vmul.f32 0.0078125, %v7116_v11  ;;  %v1238_v50 = vpop.xlane.xlu1 %1237  ;;  %v1286_v11 = vsub.f32 %v1254_v58, %v1270_v39 }
 0x3ad   :  { %5566 = vmatprep.subr.bf16.mxu1 %v5968_v17  ;;  %v7355_v23 = vmul.f32 0.0078125, %v1176_v31  ;;  %6108 = vrsqrt.f32 %v1328_v2  ;;  %v1300_v38 = vmax.f32 %v1284_v18, 0.0  ;;  %v1273_v31 = vmul.f32 %v7353_v41, %v7353_v41 }
 0x3ae   :  { %v1299_v5 = vmax.f32 %v1283_v21, 0.0  ;;  %v1272_v30 = vmul.f32 %v7338_v49, %v7338_v49  ;;  %v1257_v45 = vmul.f32 0.0078125, %v1238_v50  ;;  %v1255_v21 = vmul.f32 0.0078125, %v7138_v29 }
 0x3af   :  { %5551 = vmatmul.mubr.msk.bf16.vlgmr.msra.gmra.mrb[24].mxu1 %vm8845_vm8, %v8949_v34  ;;  %vm7314_vm8 = vmor %vm138_vm7, %vm234_vm14  ;;  %v1271_v53 = vmul.f32 %v7341_v12, %v7341_v12  ;;  %v1302_v36 = vmax.f32 %v1286_v11, 0.0  ;;  %v1274_v39 = vmul.f32 %v7355_v23, %v7355_v23  ;;  %v1309_v2 = vsub.f32 %v6754_v60, %v7125_v22  ;;  %v8968_v22 = vld [vmem:[#allocation14_spill] sm:$0xff] }
 0x3b0   :  { %5554 = vmatprep.mubr.msk.bf16.mxu1 %vm8846_vm0, %v8949_v34  ;;  %5567 = vmatpush3.bf16.msra.mxu1 %v5968_v17  ;;  %v8951_v10 = vsel %vm7314_vm8, 4294967295, %v8950_v10  ;;  %vm237_vm0 = vcmp.eq.s32.totalorder %v6901_v44, %v7036_v14  ;;  %v1329_v17 = vadd.f32 1e-05, %v1297_v59  ;;  %vm7333_vm14 = vmor %vm137_vm12, %vm233_vm13  ;;  %vm8959_vm12 = vcmp.eq.s32.totalorder %v6901_v44, %v7028_v51  ;;  %v1240_v59 = vpop.xlane.xlu0 %1239  ;;  %v1244_v50 = vpop.xlane.xlu1 %1243 }
 0x3b1   :  { %8952 = vst [vmem:[#allocation53_spill] sm:$0xff] %v8951_v10  ;;  %5568 = vmatprep.subr.bf16.mxu1 %v5969_v52  ;;  %v8954_v4 = vsel %vm7333_vm14, 4294967295, %v8953_v4  ;;  %vm7349_vm7 = vmor %vm140_vm6, %vm236_vm4  ;;  %vm8960_vm13 = vcmp.eq.s32.totalorder %v6901_v44, %v7038_v20  ;;  %v1301_v51 = vmax.f32 %v1285_v33, 0.0  ;;  %v5971_v20 = vld [vmem:[%s8785_s5 + $0x198] sm:$0xff]   ;;  %v1331_v28 = vadd.f32 1e-05, %v1299_v5 }
 0x3b2   :  { %8955 = vst [vmem:[#allocation54_spill] sm:$0xff] %v8954_v4  ;;  %v8957_v42 = vsel %vm7349_vm7, 4294967295, %v8956_v42  ;;  %vm7363_vm15 = vmor %vm8960_vm13, %vm8959_vm12  ;;  %6110 = vrsqrt.f32 %v1329_v17  ;;  %v1258_v58 = vmul.f32 0.0078125, %v1240_v59  ;;  %v1332_v18 = vadd.f32 1e-05, %v1300_v38 }
 0x3b3   :  { %8958 = vst [vmem:[#allocation55_spill] sm:$0xff] %v8957_v42  ;;  %v8962_v24 = vsel %vm7363_vm15, 4294967295, %v8961_v24  ;;  %6112 = vrsqrt.f32 %v1327_v15  ;;  %vm8847_vm6 = vmpackc.low %vm7314_vm8, %vm7333_vm14  ;;  %v1288_v17 = vsub.f32 %v1256_v35, %v1272_v30  ;;  %v8965_v60 = vmov 0 }
 0x3b4   :  { %8963 = vst [vmem:[#allocation56_spill] sm:$0xff] %v8962_v24  ;;  %5569 = vmatpush3.bf16.msra.mxu1 %v5969_v52  ;;  %v6105_v52 = vpop.eup %6104  ;;  %6114 = vrsqrt.f32 %v1330_v55  ;;  %vm8848_vm4 = vmpackc.low %vm7349_vm7, %vm7363_vm15  ;;  %v1310_v33 = vsub.f32 %v8968_v22, %v7119_v19  ;;  %v1333_v15 = vadd.f32 1e-05, %v1301_v51  ;;  %v1289_v5 = vsub.f32 %v1257_v45, %v1273_v31  ;;  %v8983_v31 = vld [vmem:[#allocation46_spill] sm:$0xff]  ;;  %v8984_v51 = vld [vmem:[#allocation44_spill] sm:$0xff] }
 0x3b5   :  { %5570 = vmatprep.subr.bf16.mxu1 %v5970_v47  ;;  %v6107_v29 = vpop.eup %6106  ;;  %v1287_v19 = vsub.f32 %v1255_v21, %v1271_v53  ;;  %v7436_v55 = vmul.f32 0.0078125, %v7186_v54  ;;  %v1357_v11 = vmul.f32 %v6105_v52, %v1309_v2  ;;  %vm8974_vm13 = vcmp.eq.s32.totalorder %v6901_v44, %v7040_v43  ;;  %v8985_v52 = vld [vmem:[#allocation13_spill] sm:$0xff] }
 0x3b6   :  { %v8975_v14 = vmov 0  ;;  %6116 = vrsqrt.f32 %v1331_v28  ;;  %v1334_v30 = vadd.f32 1e-05, %v1302_v36  ;;  %v1290_v38 = vsub.f32 %v1258_v58, %v1274_v39  ;;  %v8986_v58 = vld [vmem:[#allocation45_spill] sm:$0xff] }
 0x3b7   :  { %5555 = vmatmul.mubr.msk.bf16.gmra.mrb[28].mxu1 %vm8847_vm6, %v8949_v34  ;;  %vm8964_vm6 = vcmp.eq.s32.totalorder %v6901_v44, %v7050_v46  ;;  %v5972_v46 = vld [vmem:[%s8785_s5 + $0x1a0] sm:$0xff]   ;;  %6118 = vrsqrt.f32 %v1332_v18  ;;  %v1304_v54 = vmax.f32 %v1288_v17, 0.0  ;;  %v1260_v35 = vmul.f32 0.0078125, %v1244_v50  ;;  %v6109_v59 = vpop.eup %6108 }
 0x3b8   :  { %5558 = vmatprep.mubr.msk.bf16.mxu1 %vm8848_vm4, %v8949_v34  ;;  %5571 = vmatpush3.bf16.msra.mxu1 %v5970_v47  ;;  %vm7412_vm12 = vmor %vm142_vm2, %vm8964_vm6  ;;  %vm8969_vm2 = vcmp.eq.s32.totalorder %v6901_v44, %v7046_v6  ;;  %v7433_v47 = vmul.f32 0.0078125, %v1180_v63  ;;  %vm8973_vm4 = vcmp.eq.s32.totalorder %v6901_v44, %v7058_v57  ;;  %v1358_v6 = vmul.f32 %v6107_v29, %v1310_v33  ;;  %v1242_v63 = vpop.xlane.xlu0 %1241 }
 0x3b9   :  { %v8966_v60 = vsel %vm7412_vm12, 4294967295, %v8965_v60  ;;  %5572 = vmatprep.subr.bf16.mxu1 %v5971_v20  ;;  %vm7429_vm6 = vmor %vm8969_vm2, %vm237_vm0  ;;  %vm8978_vm0 = vcmp.eq.s32.totalorder %v6901_v44, %v7044_v25  ;;  %vm8979_vm2 = vcmp.eq.s32.totalorder %v6901_v44, %v7054_v37  ;;  %v8980_v57 = vmov 0  ;;  %v5973_v37 = vld [vmem:[%s8785_s5 + $0x1a8] sm:$0xff]  }
 0x3ba   :  { %8967 = vst [vmem:[#allocation57_spill] sm:$0xff] %v8966_v60  ;;  %v8971_v40 = vsel %vm7429_vm6, 4294967295, %v8970_v40  ;;  %vm7444_vm15 = vmor %vm8974_vm13, %vm8973_vm4  ;;  %v1276_v43 = vmul.f32 %v7433_v47, %v7433_v47  ;;  %vm242_vm4 = vcmp.eq.s32.totalorder %v6901_v44, %v8983_v31  ;;  %6120 = vrsqrt.f32 %v1333_v15  ;;  %v8988_v15 = vld [vmem:[#allocation18_spill] sm:$0xff] }
 0x3bb   :  { %8972 = vst [vmem:[#allocation14_spill] sm:$0xff] %v8971_v40  ;;  %v8976_v14 = vsel %vm7444_vm15, 4294967295, %v8975_v14  ;;  %vm7454_vm7 = vmor %vm8979_vm2, %vm8978_vm0  ;;  %v1305_v25 = vmax.f32 %v1289_v5, 0.0  ;;  %v1303_v45 = vmax.f32 %v1287_v19, 0.0  ;;  %v1275_v28 = vmul.f32 %v7436_v55, %v7436_v55  ;;  %v8989_v19 = vld [vmem:[#allocation19_spill] sm:$0xff] }
 0x3bc   :  { %8977 = vst [vmem:[#allocation58_spill] sm:$0xff] %v8976_v14  ;;  %v8981_v57 = vsel %vm7454_vm7, 4294967295, %v8980_v57  ;;  %5573 = vmatpush3.bf16.msra.mxu1 %v5971_v20  ;;  %v1259_v21 = vmul.f32 0.0078125, %v1242_v63  ;;  %vm8852_vm0 = vmpackc.low %vm7412_vm12, %vm7429_vm6  ;;  %v1377_v20 = vmul.f32 %v7146_v9, %v1357_v11  ;;  %v6111_v53 = vpop.eup %6110  ;;  %v1312_v36 = vsub.f32 %v8985_v52, %v7154_v13  ;;  %v8987_v13 = vld [vmem:[#allocation15_spill] sm:$0xff] }
 0x3bd   :  { %8982 = vst [vmem:[#allocation59_spill] sm:$0xff] %v8981_v57  ;;  %5574 = vmatprep.subr.bf16.mxu1 %v5972_v46  ;;  %vm241_vm2 = vcmp.eq.s32.totalorder %v6901_v44, %v8986_v58  ;;  %6122 = vrsqrt.f32 %v1334_v30  ;;  %v1306_v39 = vmax.f32 %v1290_v38, 0.0  ;;  %vm8851_vm13 = vmpackc.low %vm7444_vm15, %vm7454_vm7  ;;  %v6113_v29 = vpop.eup %6112  ;;  %v1313_v2 = vsub.f32 %v8987_v13, %v7161_v27 }
 0x3be   :  { %v1378_v18 = vmul.f32 %v7146_v9, %v1358_v6  ;;  %v1336_v17 = vadd.f32 1e-05, %v1304_v54  ;;  %v1292_v22 = vsub.f32 %v1260_v35, %v1276_v43  ;;  %v6115_v33 = vpop.eup %6114  ;;  %v1311_v5 = vsub.f32 %v8988_v15, %v7171_v26  ;;  %v5974_v6 = vld [vmem:[%s8785_s5 + $0x1b0] sm:$0xff]  }
 0x3bf   :  { %5559 = vmatmul.mubr.msk.bf16.gmra.mrb[32].mxu1 %vm8852_vm0, %v8949_v34  ;;  %v1360_v50 = vmul.f32 %v6109_v59, %v1312_v36  ;;  %v1314_v27 = vsub.f32 %v8989_v19, %v7164_v1  ;;  %v1337_v11 = vadd.f32 1e-05, %v1305_v25  ;;  %v1335_v26 = vadd.f32 1e-05, %v1303_v45  ;;  %v8999_v36 = vld [vmem:[#allocation20_spill] sm:$0xff] }
 0x3c0   :  { %5562 = vmatprep.mubr.msk.bf16.mxu1 %vm8851_vm13, %v8949_v34  ;;  %5575 = vmatpush3.bf16.msra.mxu1 %v5972_v46  ;;  %vm8990_vm13 = vcmp.eq.s32.totalorder %v6901_v44, %v8984_v51  ;;  %v8991_v46 = vmov 0  ;;  %v1291_v30 = vsub.f32 %v1259_v21, %v1275_v28  ;;  %v7515_v1 = vadd.f32 %v7149_v62, %v1377_v20  ;;  %v6117_v25 = vpop.eup %6116  ;;  %v8998_v20 = vld [vmem:[#allocation17_spill] sm:$0xff] }
 0x3c1   :  { %5576 = vmatprep.subr.bf16.mxu1 %v5973_v37  ;;  %vm7510_vm0 = vmor %vm8990_vm13, %vm242_vm4  ;;  %v1361_v63 = vmul.f32 %v6111_v53, %v1313_v2  ;;  %vm8994_vm7 = vcmp.eq.s32.totalorder %v6901_v44, %v7062_v61  ;;  %v8995_v38 = vmov 0  ;;  %v1359_v43 = vmul.f32 %v6113_v29, %v1311_v5  ;;  %v5975_v44 = vld [vmem:[%s8785_s5 + $0x1b8] sm:$0xff]   ;;  %v6119_v59 = vpop.eup %6118 }
 0x3c2   :  { %v8992_v46 = vsel %vm7510_vm0, 4294967295, %v8991_v46  ;;  %vm7523_vm15 = vmor %vm8994_vm7, %vm241_vm2  ;;  %v1338_v54 = vadd.f32 1e-05, %v1306_v39  ;;  %v1362_v35 = vmul.f32 %v6115_v33, %v1314_v27  ;;  %6124 = vrsqrt.f32 %v1336_v17 }
 0x3c3   :  { %8993 = vst [vmem:[#allocation46_spill] sm:$0xff] %v8992_v46  ;;  %v8996_v38 = vsel %vm7523_vm15, 4294967295, %v8995_v38  ;;  %v1308_v31 = vmax.f32 %v1292_v22, 0.0  ;;  %v7528_v51 = vadd.f32 %v7149_v62, %v1378_v18  ;;  %6126 = vrsqrt.f32 %v1337_v11  ;;  %vm8873_vm7 = vmpackc.low %vm7510_vm0, %vm7523_vm15  ;;  %v9001_v22 = vld [vmem:[#allocation25_spill] sm:$0xff] }
 0x3c4   :  { %8997 = vst [vmem:[#allocation44_spill] sm:$0xff] %v8996_v38  ;;  %5577 = vmatpush3.bf16.msra.mxu1 %v5973_v37  ;;  %v1380_v61 = vmul.f32 %v7146_v9, %v1360_v50  ;;  %6128 = vrsqrt.f32 %v1335_v26  ;;  %v1307_v45 = vmax.f32 %v1291_v30, 0.0  ;;  %v1381_v28 = vmul.f32 %v7146_v9, %v1361_v63  ;;  %v6121_v21 = vpop.eup %6120 }
 0x3c5   :  { %5578 = vmatprep.subr.bf16.mxu1 %v5974_v6  ;;  %v1417_v37 = vpack.c.bf16 %v7528_v51, %v7515_v1  ;;  %v1316_v53 = vsub.f32 %v8998_v20, %v7217_v16  ;;  %6130 = vrsqrt.f32 %v1338_v54  ;;  %v1379_v52 = vmul.f32 %v7146_v9, %v1359_v43  ;;  %v9000_v16 = vld [vmem:[#allocation16_spill] sm:$0xff]  ;;  %v9002_v43 = vld [vmem:[#allocation23_spill] sm:$0xff] }
 0x3c6   :  { %v1317_v58 = vsub.f32 %v8999_v36, %v7249_v48  ;;  %v1382_v39 = vmul.f32 %v7146_v9, %v1362_v35  ;;  %v1340_v29 = vadd.f32 1e-05, %v1308_v31  ;;  %v1315_v2 = vsub.f32 %v9000_v16, %v7184_v7 }
 0x3c7   :  { %5563 = vmatmul.mubr.msk.bf16.gmra.mrb[36].mxu1 %vm8873_vm7, %v8949_v34  ;;  %v6123_v13 = vpop.eup %6122  ;;  %v7556_v18 = vadd.f32 %v7149_v62, %v1380_v61  ;;  %v1364_v17 = vmul.f32 %v6119_v59, %v1316_v53  ;;  %v1318_v33 = vsub.f32 %v9001_v22, %v7252_v32  ;;  %v1339_v15 = vadd.f32 1e-05, %v1307_v45  ;;  %v9004_v45 = vld [vmem:[#allocation22_spill] sm:$0xff] }
 0x3c8   :  { %5579 = vmatpush3.bf16.msra.mxu1 %v5974_v6  ;;  %5582 = vmatprep.mubr.bf16.mxu1 %v1417_v37  ;;  %v7561_v48 = vadd.f32 %v7149_v62, %v1381_v28  ;;  %v1365_v5 = vmul.f32 %v6121_v21, %v1317_v58  ;;  %v1363_v50 = vmul.f32 %v6117_v25, %v1315_v2  ;;  %6132 = vrsqrt.f32 %v1340_v29  ;;  %v9003_v25 = vld [vmem:[#allocation29_spill] sm:$0xff]  ;;  %v9006_v2 = vld [vmem:[#allocation30_spill] sm:$0xff] }
 0x3c9   :  { %5580 = vmatprep.subr.bf16.mxu1 %v5975_v44  ;;  %v7564_v19 = vadd.f32 %v7149_v62, %v1379_v52  ;;  %v1366_v27 = vmul.f32 %v6123_v13, %v1318_v33  ;;  %v7567_v7 = vadd.f32 %v7149_v62, %v1382_v39  ;;  %v1384_v32 = vmul.f32 %v7146_v9, %v1364_v17 }
 0x3ca   :  { %6134 = vrsqrt.f32 %v1339_v15  ;;  %v1385_v30 = vmul.f32 %v7146_v9, %v1365_v5  ;;  %v1320_v54 = vsub.f32 %v9002_v43, %v7338_v49  ;;  %v1383_v35 = vmul.f32 %v7146_v9, %v1363_v50  ;;  %v9005_v49 = vld [vmem:[#allocation31_spill] sm:$0xff]  ;;  %v9007_v5 = vld [vmem:[#allocation34_spill] sm:$0xff] }
 0x3cb   :  { %v1418_v11 = vpack.c.bf16 %v7556_v18, %v7564_v19  ;;  %v1419_v26 = vpack.c.bf16 %v7567_v7, %v7561_v48  ;;  %v1386_v61 = vmul.f32 %v7146_v9, %v1366_v27  ;;  %v1319_v37 = vsub.f32 %v9004_v45, %v7341_v12 }
 0x3cc   :  { %5581 = vmatpush3.bf16.msra.mxu1 %v5975_v44  ;;  %v6125_v6 = vpop.eup %6124  ;;  %v1321_v44 = vsub.f32 %v9003_v25, %v7353_v41  ;;  %v7584_v28 = vadd.f32 %v7149_v62, %v1384_v32  ;;  %v1322_v20 = vsub.f32 %v9005_v49, %v7355_v23  ;;  %v7589_v53 = vadd.f32 %v7149_v62, %v1385_v30  ;;  %v5982_v25 = vld [vmem:[%s8785_s5 + $0x1f0] sm:$0xff]  }
 0x3cd   :  { %v6127_v63 = vpop.eup %6126  ;;  %v1368_v21 = vmul.f32 %v6125_v6, %v1320_v54  ;;  %v7592_v41 = vadd.f32 %v7149_v62, %v1383_v35  ;;  %v7595_v39 = vadd.f32 %v7149_v62, %v1386_v61  ;;  %v1324_v17 = vsub.f32 %v9006_v2, %v7433_v47  ;;  %5610 = vmatprep.subr.bf16.mxu0 %v5982_v25 }
 0x3ce   :  { %v6129_v31 = vpop.eup %6128  ;;  %v1369_v52 = vmul.f32 %v6127_v63, %v1321_v44  ;;  %v1323_v50 = vsub.f32 %v9007_v5, %v7436_v55  ;;  %5611 = vmatpush3.bf16.msra.mxu0 %v5982_v25  ;;  %v9008_v44 = vld [vmem:[#allocation9_spill] sm:$0xff] }
 0x3cf   :  { %5583 = vmatmul.mubr.bf16.vlgmr.msra.gmra.mrb[24].mxu1 %v1418_v11  ;;  %v6131_v59 = vpop.eup %6130  ;;  %v1367_v36 = vmul.f32 %v6129_v31, %v1319_v37  ;;  %v1420_v12 = vpack.c.bf16 %v7584_v28, %v7592_v41  ;;  %v1388_v29 = vmul.f32 %v7146_v9, %v1368_v21  ;;  %v1421_v23 = vpack.c.bf16 %v7595_v39, %v7589_v53 }
 0x3d0   :  { %5586 = vmatprep.mubr.bf16.mxu1 %v1419_v26  ;;  %v1370_v58 = vmul.f32 %v6131_v59, %v1322_v20  ;;  %v1389_v16 = vmul.f32 %v7146_v9, %v1369_v52 }
 0x3d1   :  { %v1387_v22 = vmul.f32 %v7146_v9, %v1367_v36  ;;  %v7610_v27 = vadd.f32 %v7149_v62, %v1388_v29 }
 0x3d2   :  { %v6133_v13 = vpop.eup %6132  ;;  %v1390_v15 = vmul.f32 %v7146_v9, %v1370_v58  ;;  %v7613_v32 = vadd.f32 %v7149_v62, %v1389_v16 }
 0x3d3   :  { %v1372_v11 = vmul.f32 %v6133_v13, %v1324_v17  ;;  %v7616_v6 = vadd.f32 %v7149_v62, %v1387_v22 }
 0x3d4   :  { %v6135_v33 = vpop.eup %6134  ;;  %v7619_v26 = vadd.f32 %v7149_v62, %v1390_v15 }
 0x3d5   :  { %v1371_v47 = vmul.f32 %v6135_v33, %v1323_v50  ;;  %v1422_v30 = vpack.c.bf16 %v7610_v27, %v7616_v6  ;;  %v1392_v63 = vmul.f32 %v7146_v9, %v1372_v11 }
 0x3d6   :  { %v1423_v55 = vpack.c.bf16 %v7619_v26, %v7613_v32 }
 0x3d7   :  { %5587 = vmatmul.mubr.bf16.gmra.mrb[28].mxu1 %v1420_v12  ;;  %v1391_v43 = vmul.f32 %v7146_v9, %v1371_v47  ;;  %v7628_v54 = vadd.f32 %v7149_v62, %v1392_v63  ;;  %v5983_v9 = vld [vmem:[%s8785_s5 + $0x1f8] sm:$0xff]  }
 0x3d8   :  { %5590 = vmatprep.mubr.bf16.mxu1 %v1421_v23  ;;  %5612 = vmatprep.subr.bf16.mxu0 %v5983_v9 }
 0x3d9   :  { %v7631_v35 = vadd.f32 %v7149_v62, %v1391_v43  ;;  %5613 = vmatpush3.bf16.msra.mxu0 %v5983_v9  ;;  %v7644_v62 = vld [vmem:[%s8788_s8 + $0x8] sm:$0xff] }
 0x3da   :  { %v1864_v61 = vrot.slane %v7644_v62, %v9008_v44 }
 0x3db   :  { %v1424_v31 = vpack.c.bf16 %v7628_v54, %v7631_v35 }
 0x3df   :  { %5591 = vmatmul.mubr.bf16.gmra.mrb[32].mxu1 %v1422_v30 }
 0x3e0   :  { %5594 = vmatprep.mubr.bf16.mxu1 %v1423_v55 }
 0x3e7   :  { %5595 = vmatmul.mubr.bf16.gmra.mrb[36].mxu1 %v1424_v31 }
 0x4a2   :  { %v5584_v59 = vpop.f32.mrb[24].mxu1 }
 0x4a3   :  { %v1867_v45 = vadd.f32 %v5584_v59, %v1864_v61  ;;  %v1798_v37 = vpop.f32.mrb[25].mxu1 }
 0x4a4   :  { %v1865_v21 = vadd.f32 %v1864_v61, %v1798_v37  ;;  %v5585_v49 = vpop.f32.mrb[26].mxu1 }
 0x4a5   :  { %v1868_v20 = vadd.f32 %v5585_v49, %v1864_v61  ;;  %v1801_v52 = vpop.f32.mrb[27].mxu1  ;;  %v1883_v58 = vmax.f32 %v1867_v45, 0.0 }
 0x4a6   :  { %v1866_v36 = vadd.f32 %v1864_v61, %v1801_v52  ;;  %v1881_v29 = vmax.f32 %v1865_v21, 0.0 }
 0x4a7   :  { %v1884_v12 = vmax.f32 %v1868_v20, 0.0 }
 0x4a8   :  { %v1882_v13 = vmax.f32 %v1866_v36, 0.0 }
 0x4a9   :  { %v1898_v23 = vpack.c.bf16 %v1884_v12, %v1883_v58 }
 0x4aa   :  { %v1897_v16 = vpack.c.bf16 %v1882_v13, %v1881_v29  ;;  %v5588_v2 = vpop.f32.mrb[28].mxu1 }
 0x4ab   :  { %v1871_v17 = vadd.f32 %v5588_v2, %v1864_v61  ;;  %v1814_v22 = vpop.f32.mrb[29].mxu1 }
 0x4ac   :  { %v1869_v33 = vadd.f32 %v1864_v61, %v1814_v22  ;;  %v5589_v15 = vpop.f32.mrb[30].mxu1  ;;  %5614 = vmatprep.mubr.bf16.mxu0 %v1897_v16 }
 0x4ad   :  { %v1872_v5 = vadd.f32 %v5589_v15, %v1864_v61  ;;  %v1817_v50 = vpop.f32.mrb[31].mxu1  ;;  %5615 = vmatmul.mubr.bf16.vlgmr.msra.gmra.mrb[40].mxu0 %v1898_v23  ;;  %v1887_v47 = vmax.f32 %v1871_v17, 0.0 }
 0x4ae   :  { %v1870_v11 = vadd.f32 %v1864_v61, %v1817_v50  ;;  %v1885_v63 = vmax.f32 %v1869_v33, 0.0 }
 0x4af   :  { %v1888_v30 = vmax.f32 %v1872_v5, 0.0 }
 0x4b0   :  { %v1886_v55 = vmax.f32 %v1870_v11, 0.0 }
 0x4b1   :  { %v1900_v43 = vpack.c.bf16 %v1888_v30, %v1887_v47 }
 0x4b2   :  { %v1899_v31 = vpack.c.bf16 %v1886_v55, %v1885_v63  ;;  %v5592_v25 = vpop.f32.mrb[32].mxu1 }
 0x4b3   :  { %v1875_v9 = vadd.f32 %v5592_v25, %v1864_v61  ;;  %v1830_v59 = vpop.f32.mrb[33].mxu1 }
 0x4b4   :  { %v1873_v45 = vadd.f32 %v1864_v61, %v1830_v59  ;;  %v5593_v37 = vpop.f32.mrb[34].mxu1  ;;  %5618 = vmatprep.mubr.bf16.mxu0 %v1899_v31 }
 0x4b5   :  { %v1876_v21 = vadd.f32 %v5593_v37, %v1864_v61  ;;  %v1833_v49 = vpop.f32.mrb[35].mxu1  ;;  %5619 = vmatmul.mubr.bf16.gmra.mrb[44].mxu0 %v1900_v43  ;;  %v1891_v52 = vmax.f32 %v1875_v9, 0.0  ;;  %v9009_v43 = vld [vmem:[#allocation11_spill] sm:$0xff] }
 0x4b6   :  { %v1874_v20 = vadd.f32 %v1864_v61, %v1833_v49  ;;  %v1889_v58 = vmax.f32 %v1873_v45, 0.0  ;;  %v7650_v31 = vrot.slane %v7644_v62, %v9009_v43 }
 0x4b7   :  { %v1892_v36 = vmax.f32 %v1876_v21, 0.0 }
 0x4b8   :  { %v1890_v12 = vmax.f32 %v1874_v20, 0.0 }
 0x4b9   :  { %v1902_v29 = vpack.c.bf16 %v1892_v36, %v1891_v52 }
 0x4ba   :  { %v1901_v13 = vpack.c.bf16 %v1890_v12, %v1889_v58  ;;  %v5596_v23 = vpop.f32.mrb[36].mxu1 }
 0x4bb   :  { %v1879_v16 = vadd.f32 %v5596_v23, %v1864_v61  ;;  %v1846_v2 = vpop.f32.mrb[37].mxu1 }
 0x4bc   :  { %v1877_v17 = vadd.f32 %v1864_v61, %v1846_v2  ;;  %v5597_v22 = vpop.f32.mrb[38].mxu1  ;;  %5622 = vmatprep.mubr.bf16.mxu0 %v1901_v13 }
 0x4bd   :  { %v1880_v33 = vadd.f32 %v5597_v22, %v1864_v61  ;;  %v1849_v15 = vpop.f32.mrb[39].mxu1  ;;  %5623 = vmatmul.mubr.bf16.gmra.mrb[48].mxu0 %v1902_v29  ;;  %v1895_v50 = vmax.f32 %v1879_v16, 0.0 }
 0x4be   :  { %v1878_v5 = vadd.f32 %v1864_v61, %v1849_v15  ;;  %v1893_v47 = vmax.f32 %v1877_v17, 0.0 }
 0x4bf   :  { %v1896_v11 = vmax.f32 %v1880_v33, 0.0 }
 0x4c0   :  { %v1894_v30 = vmax.f32 %v1878_v5, 0.0 }
 0x4c1   :  { %v1904_v63 = vpack.c.bf16 %v1896_v11, %v1895_v50 }
 0x4c2   :  { %v1903_v55 = vpack.c.bf16 %v1894_v30, %v1893_v47 }
 0x4c4   :  { %5626 = vmatprep.mubr.bf16.mxu0 %v1903_v55 }
 0x4c5   :  { %5627 = vmatmul.mubr.bf16.gmra.mrb[52].mxu0 %v1904_v63 }
 0x580   :  { %v5616_v25 = vpop.f32.mrb[40].mxu0 }
 0x581   :  { %v7653_v9 = vadd.f32 %v5616_v25, %v7650_v31  ;;  %v2008_v59 = vpop.f32.mrb[41].mxu0 }
 0x582   :  { %v5617_v45 = vpop.f32.mrb[42].mxu0  ;;  %v7660_v21 = vadd.f32 %v2008_v59, %v7650_v31 }
 0x583   :  { %v7656_v61 = vadd.f32 %v5617_v45, %v7650_v31  ;;  %2075 = vadd.xlane.f32.xlu0 %v7653_v9  ;;  %v2011_v37 = vpop.f32.mrb[43].mxu0  ;;  %v2121_v36 = vmul.f32 %v7653_v9, %v7653_v9 }
 0x584   :  { %v7664_v49 = vadd.f32 %v2011_v37, %v7650_v31  ;;  %v2119_v13 = vmul.f32 %v7660_v21, %v7660_v21 }
 0x585   :  { %2077 = vadd.xlane.f32.xlu1 %v7656_v61  ;;  %v2122_v29 = vmul.f32 %v7656_v61, %v7656_v61 }
 0x586   :  { %v2120_v23 = vmul.f32 %v7664_v49, %v7664_v49 }
 0x587   :  { %2071 = vadd.xlane.f32.xlu0 %v7660_v21 }
 0x588   :  { %v5620_v20 = vpop.f32.mrb[44].mxu0 }
 0x589   :  { %2073 = vadd.xlane.f32.xlu1 %v7664_v49  ;;  %v2024_v52 = vpop.f32.mrb[45].mxu0  ;;  %v7677_v2 = vadd.f32 %v5620_v20, %v7650_v31 }
 0x58a   :  { %v5621_v58 = vpop.f32.mrb[46].mxu0  ;;  %v7684_v5 = vadd.f32 %v2024_v52, %v7650_v31 }
 0x58b   :  { %2139 = vadd.xlane.f32.xlu0 %v2121_v36  ;;  %v2027_v12 = vpop.f32.mrb[47].mxu0  ;;  %v7680_v33 = vadd.f32 %v5621_v58, %v7650_v31  ;;  %v2125_v30 = vmul.f32 %v7677_v2, %v7677_v2 }
 0x58c   :  { %v7688_v50 = vadd.f32 %v2027_v12, %v7650_v31  ;;  %v2123_v59 = vmul.f32 %v7684_v5, %v7684_v5 }
 0x58d   :  { %2141 = vadd.xlane.f32.xlu1 %v2122_v29  ;;  %v2126_v25 = vmul.f32 %v7680_v33, %v7680_v33 }
 0x58e   :  { %v2124_v45 = vmul.f32 %v7688_v50, %v7688_v50 }
 0x58f   :  { %2135 = vadd.xlane.f32.xlu0 %v2119_v13 }
 0x590   :  { %v5624_v16 = vpop.f32.mrb[48].mxu0 }
 0x591   :  { %2137 = vadd.xlane.f32.xlu1 %v2120_v23  ;;  %v2040_v17 = vpop.f32.mrb[49].mxu0  ;;  %v7701_v37 = vadd.f32 %v5624_v16, %v7650_v31 }
 0x592   :  { %v5625_v22 = vpop.f32.mrb[50].mxu0  ;;  %v7708_v52 = vadd.f32 %v2040_v17, %v7650_v31 }
 0x593   :  { %2083 = vadd.xlane.f32.xlu0 %v7677_v2  ;;  %v2043_v15 = vpop.f32.mrb[51].mxu0  ;;  %v7704_v20 = vadd.f32 %v5625_v22, %v7650_v31  ;;  %v2129_v58 = vmul.f32 %v7701_v37, %v7701_v37 }
 0x594   :  { %v7712_v36 = vadd.f32 %v2043_v15, %v7650_v31  ;;  %v2127_v29 = vmul.f32 %v7708_v52, %v7708_v52 }
 0x595   :  { %2085 = vadd.xlane.f32.xlu1 %v7680_v33  ;;  %v2130_v12 = vmul.f32 %v7704_v20, %v7704_v20 }
 0x596   :  { %v2128_v13 = vmul.f32 %v7712_v36, %v7712_v36 }
 0x597   :  { %2079 = vadd.xlane.f32.xlu0 %v7684_v5 }
 0x598   :  { %v5628_v11 = vpop.f32.mrb[52].mxu0 }
 0x599   :  { %2081 = vadd.xlane.f32.xlu1 %v7688_v50  ;;  %v2056_v47 = vpop.f32.mrb[53].mxu0  ;;  %v7725_v23 = vadd.f32 %v5628_v11, %v7650_v31 }
 0x59a   :  { %v5629_v63 = vpop.f32.mrb[54].mxu0  ;;  %v7732_v17 = vadd.f32 %v2056_v47, %v7650_v31 }
 0x59b   :  { %2147 = vadd.xlane.f32.xlu0 %v2125_v30  ;;  %v2059_v55 = vpop.f32.mrb[55].mxu0  ;;  %v7728_v16 = vadd.f32 %v5629_v63, %v7650_v31  ;;  %v2133_v47 = vmul.f32 %v7725_v23, %v7725_v23  ;;  %v9010_v30 = vld [vmem:[#allocation8_spill] sm:$0xff] }
 0x59c   :  { %v7736_v22 = vadd.f32 %v2059_v55, %v7650_v31  ;;  %v2131_v15 = vmul.f32 %v7732_v17, %v7732_v17  ;;  %v301_v63 = vadd.s32 8, %v9010_v30  ;;  %v7752_v55 = vld [vmem:[%s8784_s4] ss:$0 sm:$0xff] }
 0x59d   :  { %2149 = vadd.xlane.f32.xlu1 %v2126_v25  ;;  %v2134_v31 = vmul.f32 %v7728_v16, %v7728_v16  ;;  %9011 = vst [vmem:[#allocation13_spill] sm:$0xff] %v7752_v55  ;;  %vm313_vm4 = vcmp.eq.s32.totalorder %v9010_v30, %v7752_v55  ;;  %v9012_v25 = vmov 0 }
 0x59e   :  { %v2132_v11 = vmul.f32 %v7736_v22, %v7736_v22  ;;  %vm314_vm13 = vcmp.eq.s32.totalorder %v301_v63, %v7752_v55  ;;  %v5994_v63 = vld [vmem:[#allocation4 + $0x68] sm:$0xff]   ;;  %v9016_v55 = vld [vmem:[#allocation24_spill] sm:$0xff] }
 0x59f   :  { %2143 = vadd.xlane.f32.xlu0 %v2123_v59  ;;  %vm7757_vm2 = vmpackc.low %vm314_vm13, %vm313_vm4  ;;  %v5984_v59 = vld [vmem:[#allocation4 + $0x40] sm:$0xff]  }
 0x5a0   :  { %v9013_v25 = vsel %vm7757_vm2, 4294967295, %v9012_v25  ;;  %5646 = vmatprep.mubr.msk.bf16.mxu0 %vm7757_vm2, %v8949_v34  ;;  %5234 = vmatprep.subr.bf16.mxu1 %v5984_v59  ;;  %v5996_v59 = vld [vmem:[#allocation4 + $0x70] sm:$0xff]  }
 0x5a1   :  { %2145 = vadd.xlane.f32.xlu1 %v2124_v45  ;;  %9014 = vst [vmem:[#allocation45_spill] sm:$0xff] %v9013_v25  ;;  %v5985_v45 = vld [vmem:[#allocation4] sm:$0xff]   ;;  %v5995_v25 = vld [vmem:[#allocation4 + $0x28] sm:$0xff]  }
 0x5a2   :  { %5235 = vmatpush3.bf16.msra.mxu1 %v5985_v45 }
 0x5a3   :  { %2091 = vadd.xlane.f32.xlu0 %v7701_v37 }
 0x5a5   :  { %2093 = vadd.xlane.f32.xlu1 %v7704_v20 }
 0x5a7   :  { %2087 = vadd.xlane.f32.xlu0 %v7708_v52 }
 0x5a9   :  { %2089 = vadd.xlane.f32.xlu1 %v7712_v36 }
 0x5ab   :  { %2155 = vadd.xlane.f32.xlu0 %v2129_v58  ;;  %v5986_v58 = vld [vmem:[#allocation4 + $0x48] sm:$0xff]  }
 0x5ac   :  { %5236 = vmatprep.subr.bf16.mxu1 %v5986_v58 }
 0x5ad   :  { %2157 = vadd.xlane.f32.xlu1 %v2130_v12  ;;  %v5987_v12 = vld [vmem:[#allocation4 + $0x8] sm:$0xff]  }
 0x5ae   :  { %5237 = vmatpush3.bf16.msra.mxu1 %v5987_v12 }
 0x5af   :  { %2151 = vadd.xlane.f32.xlu0 %v2127_v29  ;;  %v5988_v29 = vld [vmem:[#allocation4 + $0x50] sm:$0xff]  }
 0x5b0   :  { %5238 = vmatprep.subr.bf16.mxu1 %v5988_v29 }
 0x5b1   :  { %2153 = vadd.xlane.f32.xlu1 %v2128_v13  ;;  %v5989_v13 = vld [vmem:[#allocation4 + $0x10] sm:$0xff]  }
 0x5b2   :  { %5239 = vmatpush3.bf16.msra.mxu1 %v5989_v13 }
 0x5b3   :  { %2099 = vadd.xlane.f32.xlu0 %v7725_v23 }
 0x5b5   :  { %2101 = vadd.xlane.f32.xlu1 %v7728_v16 }
 0x5b7   :  { %2095 = vadd.xlane.f32.xlu0 %v7732_v17 }
 0x5b9   :  { %2097 = vadd.xlane.f32.xlu1 %v7736_v22 }
 0x5bb   :  { %2159 = vadd.xlane.f32.xlu0 %v2131_v15  ;;  %v5990_v15 = vld [vmem:[#allocation4 + $0x58] sm:$0xff]  }
 0x5bc   :  { %5240 = vmatprep.subr.bf16.mxu1 %v5990_v15 }
 0x5bd   :  { %2161 = vadd.xlane.f32.xlu1 %v2132_v11  ;;  %v5991_v11 = vld [vmem:[#allocation4 + $0x18] sm:$0xff]  }
 0x5be   :  { %5241 = vmatpush3.bf16.msra.mxu1 %v5991_v11 }
 0x5bf   :  { %2163 = vadd.xlane.f32.xlu0 %v2133_v47  ;;  %v5992_v47 = vld [vmem:[#allocation4 + $0x60] sm:$0xff]  }
 0x5c0   :  { %5242 = vmatprep.subr.bf16.mxu1 %v5992_v47 }
 0x5c1   :  { %2165 = vadd.xlane.f32.xlu1 %v2134_v31  ;;  %v5993_v31 = vld [vmem:[#allocation4 + $0x20] sm:$0xff]  }
 0x5c2   :  { %5243 = vmatpush3.bf16.msra.mxu1 %v5993_v31 }
 0x5c3   :  { %5244 = vmatprep.subr.bf16.mxu1 %v5994_v63 }
 0x5c6   :  { %5245 = vmatpush3.bf16.msra.mxu1 %v5995_v25 }
 0x5c7   :  { %5246 = vmatprep.subr.bf16.mxu1 %v5996_v59 }
 0x610   :  { %v2076_v45 = vpop.xlane.xlu0 %2075 }
 0x611   :  { %v2105_v38 = vmul.f32 0.0078125, %v2076_v45 }
 0x612   :  { %v2078_v58 = vpop.xlane.xlu1 %2077 }
 0x613   :  { %v2106_v46 = vmul.f32 0.0078125, %v2078_v58  ;;  %v2185_v57 = vmul.f32 %v2105_v38, %v2105_v38 }
 0x614   :  { %v2072_v12 = vpop.xlane.xlu0 %2071 }
 0x615   :  { %v7764_v15 = vmul.f32 0.0078125, %v2072_v12  ;;  %v2186_v31 = vmul.f32 %v2106_v46, %v2106_v46 }
 0x616   :  { %v2074_v29 = vpop.xlane.xlu1 %2073 }
 0x617   :  { %v7766_v14 = vmul.f32 0.0078125, %v2074_v29  ;;  %v2183_v25 = vmul.f32 %v7764_v15, %v7764_v15 }
 0x618   :  { %v2140_v13 = vpop.xlane.xlu0 %2139 }
 0x619   :  { %v2169_v11 = vmul.f32 0.0078125, %v2140_v13  ;;  %v2184_v58 = vmul.f32 %v7766_v14, %v7766_v14  ;;  %v2232_v44 = vsub.f32 %v7664_v49, %v7766_v14 }
 0x61a   :  { %v2142_v47 = vpop.xlane.xlu1 %2141 }
 0x61b   :  { %v2201_v40 = vsub.f32 %v2169_v11, %v2185_v57  ;;  %v2170_v63 = vmul.f32 0.0078125, %v2142_v47 }
 0x61c   :  { %v2136_v60 = vpop.xlane.xlu0 %2135 }
 0x61d   :  { %v2217_v59 = vmax.f32 %v2201_v40, 0.0  ;;  %v2202_v24 = vsub.f32 %v2170_v63, %v2186_v31  ;;  %v2167_v45 = vmul.f32 0.0078125, %v2136_v60 }
 0x61e   :  { %v2138_v42 = vpop.xlane.xlu1 %2137 }
 0x61f   :  { %v2249_v12 = vadd.f32 1e-05, %v2217_v59  ;;  %v2218_v4 = vmax.f32 %v2202_v24, 0.0  ;;  %v2199_v13 = vsub.f32 %v2167_v45, %v2183_v25  ;;  %v2168_v29 = vmul.f32 0.0078125, %v2138_v42 }
 0x620   :  { %v2084_v10 = vpop.xlane.xlu0 %2083 }
 0x621   :  { %6136 = vrsqrt.f32 %v2249_v12  ;;  %v2250_v56 = vadd.f32 1e-05, %v2218_v4  ;;  %v2215_v57 = vmax.f32 %v2199_v13, 0.0  ;;  %v2200_v11 = vsub.f32 %v2168_v29, %v2184_v58  ;;  %v9015_v12 = vld [vmem:[#allocation21_spill] sm:$0xff] }
 0x622   :  { %v2086_v47 = vpop.xlane.xlu1 %2085  ;;  %v7772_v31 = vmul.f32 0.0078125, %v2084_v10  ;;  %v7786_v13 = vrot.slane %v7644_v62, %v9015_v12  ;;  %v2233_v29 = vsub.f32 %v7653_v9, %v2105_v38 }
 0x623   :  { %6138 = vrsqrt.f32 %v2250_v56  ;;  %v2247_v8 = vadd.f32 1e-05, %v2215_v57  ;;  %v2216_v3 = vmax.f32 %v2200_v11, 0.0  ;;  %v7774_v59 = vmul.f32 0.0078125, %v2086_v47 }
 0x624   :  { %v2080_v40 = vpop.xlane.xlu0 %2079  ;;  %v2189_v42 = vmul.f32 %v7772_v31, %v7772_v31  ;;  %v2234_v57 = vsub.f32 %v7656_v61, %v2106_v46 }
 0x625   :  { %6140 = vrsqrt.f32 %v2247_v8  ;;  %v2248_v60 = vadd.f32 1e-05, %v2216_v3  ;;  %v7778_v4 = vmul.f32 0.0078125, %v2080_v40  ;;  %v2190_v3 = vmul.f32 %v7774_v59, %v7774_v59 }
 0x626   :  { %v2082_v63 = vpop.xlane.xlu1 %2081 }
 0x627   :  { %6142 = vrsqrt.f32 %v2248_v60  ;;  %v7780_v45 = vmul.f32 0.0078125, %v2082_v63  ;;  %v2187_v40 = vmul.f32 %v7778_v4, %v7778_v4 }
 0x628   :  { %v2148_v24 = vpop.xlane.xlu0 %2147 }
 0x629   :  { %v2173_v25 = vmul.f32 0.0078125, %v2148_v24 }
 0x62a   :  { %v2150_v56 = vpop.xlane.xlu1 %2149 }
 0x62b   :  { %v6137_v58 = vpop.eup %6136  ;;  %v2205_v8 = vsub.f32 %v2173_v25, %v2189_v42  ;;  %v2174_v10 = vmul.f32 0.0078125, %v2150_v56  ;;  %v2231_v42 = vsub.f32 %v7660_v21, %v7764_v15  ;;  %v2188_v25 = vmul.f32 %v7780_v45, %v7780_v45 }
 0x62c   :  { %v2144_v11 = vpop.xlane.xlu0 %2143  ;;  %v2281_v0 = vmul.f32 %v6137_v58, %v2233_v29  ;;  %v7801_v58 = vrot.slane %v7644_v62, %v9016_v55 }
 0x62d   :  { %v6139_v47 = vpop.eup %6138  ;;  %v2221_v60 = vmax.f32 %v2205_v8, 0.0  ;;  %v2206_v63 = vsub.f32 %v2174_v10, %v2190_v3  ;;  %v2171_v24 = vmul.f32 0.0078125, %v2144_v11 }
 0x62e   :  { %v2146_v56 = vpop.xlane.xlu1 %2145  ;;  %v2282_v12 = vmul.f32 %v6139_v47, %v2234_v57 }
 0x62f   :  { %v6141_v38 = vpop.eup %6140  ;;  %v2253_v9 = vadd.f32 1e-05, %v2221_v60  ;;  %v2222_v46 = vmax.f32 %v2206_v63, 0.0  ;;  %v2203_v61 = vsub.f32 %v2171_v24, %v2187_v40  ;;  %v2172_v43 = vmul.f32 0.0078125, %v2146_v56 }
 0x630   :  { %v2092_v8 = vpop.xlane.xlu0 %2091  ;;  %v2279_v3 = vmul.f32 %v6141_v38, %v2231_v42  ;;  %v2302_v10 = vmul.f32 %v7786_v13, %v2282_v12  ;;  %v2301_v40 = vmul.f32 %v7786_v13, %v2281_v0 }
 0x631   :  { %v6143_v11 = vpop.eup %6142  ;;  %6144 = vrsqrt.f32 %v2253_v9  ;;  %v2254_v21 = vadd.f32 1e-05, %v2222_v46  ;;  %v2219_v15 = vmax.f32 %v2203_v61, 0.0  ;;  %v2204_v34 = vsub.f32 %v2172_v43, %v2188_v25 }
 0x632   :  { %v2094_v29 = vpop.xlane.xlu1 %2093  ;;  %v2280_v57 = vmul.f32 %v6143_v11, %v2232_v44  ;;  %v2299_v47 = vmul.f32 %v7786_v13, %v2279_v3  ;;  %v2322_v43 = vadd.f32 %v7801_v58, %v2302_v10  ;;  %v7808_v62 = vmul.f32 0.0078125, %v2092_v8 }
 0x633   :  { %6146 = vrsqrt.f32 %v2254_v21  ;;  %v2251_v14 = vadd.f32 1e-05, %v2219_v15  ;;  %v2220_v49 = vmax.f32 %v2204_v34, 0.0  ;;  %v2321_v25 = vadd.f32 %v7801_v58, %v2301_v40 }
 0x634   :  { %v2088_v60 = vpop.xlane.xlu0 %2087  ;;  %v2300_v12 = vmul.f32 %v7786_v13, %v2280_v57  ;;  %v2319_v63 = vadd.f32 %v7801_v58, %v2299_v47  ;;  %v7812_v0 = vmul.f32 0.0078125, %v2094_v29  ;;  %v7821_v9 = vadd.f32 %v2322_v43, %v7556_v18 }
 0x635   :  { %6148 = vrsqrt.f32 %v2251_v14  ;;  %v2252_v24 = vadd.f32 1e-05, %v2220_v49  ;;  %v2193_v46 = vmul.f32 %v7808_v62, %v7808_v62  ;;  %v7825_v61 = vmul.f32 0.0078125, %v2088_v60 }
 0x636   :  { %v2090_v42 = vpop.xlane.xlu1 %2089  ;;  %v2320_v44 = vadd.f32 %v7801_v58, %v2300_v12  ;;  %v7815_v56 = vadd.f32 %v2319_v63, %v7515_v1  ;;  %v7834_v1 = vadd.f32 %v2321_v25, %v7564_v19  ;;  %v2194_v18 = vmul.f32 %v7812_v0, %v7812_v0 }
 0x637   :  { %6150 = vrsqrt.f32 %v2252_v24  ;;  %v7827_v3 = vmul.f32 0.0078125, %v2090_v42  ;;  %v2237_v29 = vsub.f32 %v7677_v2, %v7772_v31  ;;  %v2238_v57 = vsub.f32 %v7680_v33, %v7774_v59 }
 0x638   :  { %v2156_v34 = vpop.xlane.xlu0 %2155  ;;  %v7818_v38 = vadd.f32 %v2320_v44, %v7528_v51  ;;  %v7845_v40 = vpack.c.bf16 %v7821_v9, %v7834_v1  ;;  %v2191_v14 = vmul.f32 %v7825_v61, %v7825_v61  ;;  %v2235_v2 = vsub.f32 %v7684_v5, %v7778_v4 }
 0x639   :  { %v2177_v8 = vmul.f32 0.0078125, %v2156_v34  ;;  %v2192_v33 = vmul.f32 %v7827_v3, %v7827_v3  ;;  %v2236_v34 = vsub.f32 %v7688_v50, %v7780_v45 }
 0x63a   :  { %v2158_v10 = vpop.xlane.xlu1 %2157  ;;  %v7831_v11 = vpack.c.bf16 %v7818_v38, %v7815_v56 }
 0x63b   :  { %v6145_v51 = vpop.eup %6144  ;;  %v2209_v21 = vsub.f32 %v2177_v8, %v2193_v46  ;;  %v2178_v15 = vmul.f32 0.0078125, %v2158_v10 }
 0x63c   :  { %v2152_v47 = vpop.xlane.xlu0 %2151  ;;  %5630 = vmatprep.subr.bf16.mxu0 %v7831_v11  ;;  %v2285_v59 = vmul.f32 %v6145_v51, %v2237_v29 }
 0x63d   :  { %v6147_v19 = vpop.eup %6146  ;;  %v2225_v49 = vmax.f32 %v2209_v21, 0.0  ;;  %v2210_v60 = vsub.f32 %v2178_v15, %v2194_v18  ;;  %v2175_v12 = vmul.f32 0.0078125, %v2152_v47  ;;  %5631 = vmatpush3.bf16.msra.mxu0 %v7831_v11 }
 0x63e   :  { %5632 = vmatprep.subr.bf16.mxu0 %v7845_v40  ;;  %v2154_v31 = vpop.xlane.xlu1 %2153  ;;  %v2286_v63 = vmul.f32 %v6147_v19, %v2238_v57  ;;  %v2305_v57 = vmul.f32 %v7786_v13, %v2285_v59 }
 0x63f   :  { %v6149_v43 = vpop.eup %6148  ;;  %v2257_v24 = vadd.f32 1e-05, %v2225_v49  ;;  %v2226_v42 = vmax.f32 %v2210_v60, 0.0  ;;  %v2207_v44 = vsub.f32 %v2175_v12, %v2191_v14  ;;  %v2176_v25 = vmul.f32 0.0078125, %v2154_v31 }
 0x640   :  { %v2100_v46 = vpop.xlane.xlu0 %2099  ;;  %v2283_v8 = vmul.f32 %v6149_v43, %v2235_v2  ;;  %v2306_v5 = vmul.f32 %v7786_v13, %v2286_v63  ;;  %v2325_v31 = vadd.f32 %v7801_v58, %v2305_v57 }
 0x641   :  { %v6151_v4 = vpop.eup %6150  ;;  %6152 = vrsqrt.f32 %v2257_v24  ;;  %v2258_v10 = vadd.f32 1e-05, %v2226_v42  ;;  %v2223_v18 = vmax.f32 %v2207_v44, 0.0  ;;  %v2208_v21 = vsub.f32 %v2176_v25, %v2192_v33  ;;  %5633 = vmatpush3.bf16.msra.mxu0 %v7845_v40 }
 0x642   :  { %v2102_v51 = vpop.xlane.xlu1 %2101  ;;  %v2284_v15 = vmul.f32 %v6151_v4, %v2236_v34  ;;  %v2303_v29 = vmul.f32 %v7786_v13, %v2283_v8  ;;  %v2326_v49 = vadd.f32 %v7801_v58, %v2306_v5  ;;  %v7879_v44 = vmul.f32 0.0078125, %v2100_v46 }
 0x643   :  { %6154 = vrsqrt.f32 %v2258_v10  ;;  %v2255_v47 = vadd.f32 1e-05, %v2223_v18  ;;  %v2224_v50 = vmax.f32 %v2208_v21, 0.0  ;;  %v7883_v8 = vmul.f32 0.0078125, %v2102_v51 }
 0x644   :  { %v2096_v45 = vpop.xlane.xlu0 %2095  ;;  %v2304_v19 = vmul.f32 %v7786_v13, %v2284_v15  ;;  %v2323_v14 = vadd.f32 %v7801_v58, %v2303_v29  ;;  %v7877_v42 = vadd.f32 %v2326_v49, %v7584_v28  ;;  %v2241_v18 = vsub.f32 %v7701_v37, %v7808_v62 }
 0x645   :  { %6156 = vrsqrt.f32 %v2255_v47  ;;  %v2256_v60 = vadd.f32 1e-05, %v2224_v50  ;;  %v7864_v12 = vmul.f32 0.0078125, %v2096_v45  ;;  %v2242_v21 = vsub.f32 %v7704_v20, %v7812_v0 }
 0x646   :  { %v2098_v2 = vpop.xlane.xlu1 %2097  ;;  %v2324_v33 = vadd.f32 %v7801_v58, %v2304_v19  ;;  %v7871_v43 = vadd.f32 %v2323_v14, %v7561_v48  ;;  %v7890_v48 = vadd.f32 %v2325_v31, %v7592_v41  ;;  %v2197_v29 = vmul.f32 %v7879_v44, %v7879_v44 }
 0x647   :  { %6158 = vrsqrt.f32 %v2256_v60  ;;  %v7868_v59 = vmul.f32 0.0078125, %v2098_v2  ;;  %v2195_v25 = vmul.f32 %v7864_v12, %v7864_v12  ;;  %v2239_v37 = vsub.f32 %v7708_v52, %v7825_v61 }
 0x648   :  { %v2160_v63 = vpop.xlane.xlu0 %2159  ;;  %v7874_v24 = vadd.f32 %v2324_v33, %v7567_v7  ;;  %v7901_v15 = vpack.c.bf16 %v7877_v42, %v7890_v48  ;;  %v2198_v20 = vmul.f32 %v7883_v8, %v7883_v8  ;;  %v2240_v33 = vsub.f32 %v7712_v36, %v7827_v3 }
 0x649   :  { %v2179_v34 = vmul.f32 0.0078125, %v2160_v63  ;;  %v2196_v28 = vmul.f32 %v7868_v59, %v7868_v59 }
 0x64a   :  { %v2162_v5 = vpop.xlane.xlu1 %2161  ;;  %v7887_v4 = vpack.c.bf16 %v7874_v24, %v7871_v43 }
 0x64b   :  { %v6153_v7 = vpop.eup %6152  ;;  %v2211_v46 = vsub.f32 %v2179_v34, %v2195_v25  ;;  %v2180_v10 = vmul.f32 0.0078125, %v2162_v5 }
 0x64c   :  { %v2164_v51 = vpop.xlane.xlu0 %2163  ;;  %5634 = vmatprep.subr.bf16.mxu0 %v7887_v4  ;;  %v2289_v0 = vmul.f32 %v6153_v7, %v2241_v18 }
 0x64d   :  { %v6155_v41 = vpop.eup %6154  ;;  %v2227_v57 = vmax.f32 %v2211_v46, 0.0  ;;  %v2212_v47 = vsub.f32 %v2180_v10, %v2196_v28  ;;  %v2181_v50 = vmul.f32 0.0078125, %v2164_v51  ;;  %5635 = vmatpush3.bf16.msra.mxu0 %v7887_v4 }
 0x64e   :  { %5636 = vmatprep.subr.bf16.mxu0 %v7901_v15  ;;  %v2166_v62 = vpop.xlane.xlu1 %2165  ;;  %v2290_v45 = vmul.f32 %v6155_v41, %v2242_v21  ;;  %v2309_v28 = vmul.f32 %v7786_v13, %v2289_v0 }
 0x64f   :  { %v6157_v19 = vpop.eup %6156  ;;  %v2259_v14 = vadd.f32 1e-05, %v2227_v57  ;;  %v2228_v49 = vmax.f32 %v2212_v47, 0.0  ;;  %v2213_v60 = vsub.f32 %v2181_v50, %v2197_v29  ;;  %v2182_v2 = vmul.f32 0.0078125, %v2166_v62 }
 0x650   :  { %v2287_v31 = vmul.f32 %v6157_v19, %v2239_v37  ;;  %v2310_v63 = vmul.f32 %v7786_v13, %v2290_v45  ;;  %v2329_v41 = vadd.f32 %v7801_v58, %v2309_v28  ;;  %v2243_v50 = vsub.f32 %v7732_v17, %v7864_v12 }
 0x651   :  { %v6159_v52 = vpop.eup %6158  ;;  %6160 = vrsqrt.f32 %v2259_v14  ;;  %v2260_v61 = vadd.f32 1e-05, %v2228_v49  ;;  %v2229_v25 = vmax.f32 %v2213_v60, 0.0  ;;  %v2214_v34 = vsub.f32 %v2182_v2, %v2198_v20  ;;  %5637 = vmatpush3.bf16.msra.mxu0 %v7901_v15 }
 0x652   :  { %v2288_v5 = vmul.f32 %v6159_v52, %v2240_v33  ;;  %v2307_v7 = vmul.f32 %v7786_v13, %v2287_v31  ;;  %v2330_v18 = vadd.f32 %v7801_v58, %v2310_v63  ;;  %v7938_v20 = vadd.f32 %v2329_v41, %v7616_v6 }
 0x653   :  { %6162 = vrsqrt.f32 %v2260_v61  ;;  %v2261_v46 = vadd.f32 1e-05, %v2229_v25  ;;  %v2230_v10 = vmax.f32 %v2214_v34, 0.0  ;;  %v2245_v17 = vsub.f32 %v7725_v23, %v7879_v44  ;;  %v9017_v34 = vld [vmem:[#allocation13_spill] sm:$0xff] }
 0x654   :  { %v2308_v36 = vmul.f32 %v7786_v13, %v2288_v5  ;;  %v2327_v3 = vadd.f32 %v7801_v58, %v2307_v7  ;;  %v7929_v47 = vadd.f32 %v2330_v18, %v7610_v27  ;;  %v302_v52 = vadd.s32 16, %v9010_v30  ;;  %v6001_v18 = vld [vmem:[%s8785_s5 + $0x208] sm:$0xff]  }
 0x655   :  { %6164 = vrsqrt.f32 %v2261_v46  ;;  %v2262_v21 = vadd.f32 1e-05, %v2230_v10  ;;  %v303_v61 = vadd.s32 24, %v9010_v30  ;;  %v305_v25 = vadd.s32 40, %v9010_v30  ;;  %v5998_v10 = vld [vmem:[#allocation4 + $0x78] sm:$0xff]  }
 0x656   :  { %v2328_v51 = vadd.f32 %v7801_v58, %v2308_v36  ;;  %v7923_v29 = vadd.f32 %v2327_v3, %v7589_v53  ;;  %v2244_v53 = vsub.f32 %v7736_v22, %v7868_v59  ;;  %v2246_v22 = vsub.f32 %v7728_v16, %v7883_v8  ;;  %v5999_v36 = vld [vmem:[#allocation4 + $0x38] sm:$0xff]   ;;  %v6000_v3 = vld [vmem:[%s8785_s5 + $0x200] sm:$0xff]  }
 0x657   :  { %6166 = vrsqrt.f32 %v2262_v21  ;;  %vm315_vm4 = vcmp.eq.s32.totalorder %v302_v52, %v9017_v34  ;;  %vm316_vm13 = vcmp.eq.s32.totalorder %v303_v61, %v9017_v34  ;;  %vm318_vm2 = vcmp.eq.s32.totalorder %v305_v25, %v9017_v34  ;;  %v6002_v21 = vld [vmem:[%s8785_s5 + $0x210] sm:$0xff]  }
 0x658   :  { %v7926_v57 = vadd.f32 %v2328_v51, %v7595_v39  ;;  %v7945_v39 = vpack.c.bf16 %v7929_v47, %v7938_v20  ;;  %vm7994_vm15 = vmpackc.low %vm316_vm13, %vm315_vm4  ;;  %v306_v5 = vadd.s32 48, %v9010_v30  ;;  %v307_v7 = vadd.s32 56, %v9010_v30  ;;  %v8051_v52 = vld [vmem:[%s8788_s8 + $0x10] sm:$0xff] }
 0x659   :  { %v9024_v28 = vmov 1.0|1.0   ;;  %v9025_v46 = vmov 0 }
 0x65a   :  { %v7935_v37 = vpack.c.bf16 %v7926_v57, %v7923_v29  ;;  %vm319_vm4 = vcmp.eq.s32.totalorder %v306_v5, %v9017_v34  ;;  %vm320_vm13 = vcmp.eq.s32.totalorder %v307_v7, %v9017_v34 }
 0x65b   :  { %v6161_v62 = vpop.eup %6160 }
 0x65c   :  { %5638 = vmatprep.subr.bf16.mxu0 %v7935_v37  ;;  %v2291_v27 = vmul.f32 %v6161_v62, %v2243_v50 }
 0x65d   :  { %v6163_v0 = vpop.eup %6162  ;;  %5639 = vmatpush3.bf16.msra.mxu0 %v7935_v37 }
 0x65e   :  { %5640 = vmatprep.subr.bf16.mxu0 %v7945_v39  ;;  %v2292_v6 = vmul.f32 %v6163_v0, %v2244_v53  ;;  %v2311_v12 = vmul.f32 %v7786_v13, %v2291_v27  ;;  %v9028_v0 = vld [vmem:[#allocation28_spill] sm:$0xff] }
 0x65f   :  { %v6165_v45 = vpop.eup %6164 }
 0x660   :  { %v2312_v59 = vmul.f32 %v7786_v13, %v2292_v6  ;;  %v2331_v19 = vadd.f32 %v7801_v58, %v2311_v12  ;;  %v2293_v14 = vmul.f32 %v6165_v45, %v2245_v17 }
 0x661   :  { %v6167_v49 = vpop.eup %6166  ;;  %5641 = vmatpush3.bf16.msra.mxu0 %v7945_v39 }
 0x662   :  { %v2332_v60 = vadd.f32 %v7801_v58, %v2312_v59  ;;  %v2294_v23 = vmul.f32 %v6167_v49, %v2246_v22  ;;  %v2313_v44 = vmul.f32 %v7786_v13, %v2293_v14  ;;  %v7960_v2 = vadd.f32 %v2331_v19, %v7613_v32  ;;  %v9029_v19 = vld [vmem:[#allocation35_spill] sm:$0xff]  ;;  %v9030_v14 = vld [vmem:[#allocation40_spill] sm:$0xff] }
 0x663   :  { %v304_v32 = vadd.s32 32, %v9010_v30  ;;  %v5997_v30 = vld [vmem:[#allocation4 + $0x30] sm:$0xff]   ;;  %v9031_v49 = vld [vmem:[#allocation43_spill] sm:$0xff] }
 0x664   :  { %v7963_v33 = vadd.f32 %v2332_v60, %v7619_v26  ;;  %v2314_v16 = vmul.f32 %v7786_v13, %v2294_v23  ;;  %v2333_v8 = vadd.f32 %v7801_v58, %v2313_v44  ;;  %5247 = vmatpush3.bf16.msra.mxu1 %v5997_v30  ;;  %v9032_v60 = vmov 0   ;;  %v6003_v23 = vld [vmem:[%s8785_s5 + $0x218] sm:$0xff]   ;;  %v6004_v44 = vld [vmem:[%s8785_s5 + $0x220] sm:$0xff]  }
 0x665   :  { %vm317_vm7 = vcmp.eq.s32.totalorder %v304_v32, %v9017_v34  ;;  %5248 = vmatprep.subr.bf16.mxu1 %v5998_v10  ;;  %v9033_v32 = vld [vmem:[#allocation9_spill] sm:$0xff] }
 0x666   :  { %v7969_v31 = vpack.c.bf16 %v7963_v33, %v7960_v2  ;;  %v2334_v63 = vadd.f32 %v7801_v58, %v2314_v16  ;;  %v7978_v26 = vadd.f32 %v2333_v8, %v7631_v35  ;;  %vm7998_vm0 = vmpackc.low %vm318_vm2, %vm317_vm7  ;;  %v9021_v35 = vmov 0  ;;  %v6005_v16 = vld [vmem:[%s8785_s5 + $0x228] sm:$0xff]   ;;  %v6006_v8 = vld [vmem:[%s8785_s5 + $0x230] sm:$0xff]  }
 0x667   :  { %v9022_v35 = vsel %vm7998_vm0, 4294967295, %v9021_v35  ;;  %vm8012_vm7 = vmpackc.low %vm320_vm13, %vm319_vm4  ;;  %v2463_v25 = vrot.slane %v8051_v52, %v9033_v32 }
 0x668   :  { %5642 = vmatprep.subr.bf16.mxu0 %v7969_v31  ;;  %v7981_v13 = vadd.f32 %v2334_v63, %v7628_v54  ;;  %v9018_v54 = vmov 0  ;;  %9023 = vst [vmem:[#allocation18_spill] sm:$0xff] %v9022_v35  ;;  %v9026_v46 = vsel %vm8012_vm7, 4294967295, %v9025_v46  ;;  %5249 = vmatpush3.bf16.msra.mxu1 %v5999_v36  ;;  %v6007_v63 = vld [vmem:[%s8785_s5 + $0x238] sm:$0xff]   ;;  %vm9036_vm2 = vmpackc.low %vm6951_vm5, %vm6942_vm3 }
 0x669   :  { %5643 = vmatpush3.bf16.msra.mxu0 %v7969_v31  ;;  %v9019_v54 = vsel %vm7994_vm15, 4294967295, %v9018_v54  ;;  %9027 = vst [vmem:[#allocation19_spill] sm:$0xff] %v9026_v46  ;;  %vm9061_vm3 = vmpackc.low %vm7229_vm9, %vm7208_vm1 }
 0x66a   :  { %v7986_v58 = vpack.c.bf16 %v7981_v13, %v7978_v26  ;;  %9020 = vst [vmem:[#allocation15_spill] sm:$0xff] %v9019_v54  ;;  %vm9064_vm5 = vmpackc.low %vm7242_vm11, %vm7260_vm10  ;;  %v9091_v54 = vld [vmem:[#allocation48_spill] sm:$0xff] }
 0x66b   :  { %vm9067_vm1 = vmpackc.low %vm7314_vm8, %vm7333_vm14 }
 0x66c   :  { %5644 = vmatprep.subr.bf16.mxu0 %v7986_v58  ;;  %vm9075_vm8 = vmpackc.low %vm7412_vm12, %vm7429_vm6 }
 0x66d   :  { %5645 = vmatpush3.bf16.msra.mxu0 %v7986_v58 }
 0x66e   :  { %5654 = vmatprep.subr.bf16.mxu0 %v6000_v3 }
 0x670   :  { %5647 = vmatmul.mubr.msk.bf16.vlgmr.msra.gmra.mrb[56].mxu0 %vm7994_vm15, %v9024_v28 }
 0x671   :  { %5650 = vmatprep.mubr.msk.bf16.mxu0 %vm7998_vm0, %v9024_v28  ;;  %5655 = vmatpush3.bf16.msra.mxu0 %v6000_v3 }
 0x672   :  { %5656 = vmatprep.subr.bf16.mxu0 %v6001_v18 }
 0x675   :  { %5657 = vmatpush3.bf16.msra.mxu0 %v6001_v18 }
 0x676   :  { %5658 = vmatprep.subr.bf16.mxu0 %v6002_v21 }
 0x678   :  { %5651 = vmatmul.mubr.msk.bf16.gmra.mrb[60].mxu0 %vm8012_vm7, %v9024_v28 }
 0x679   :  { %5659 = vmatpush3.bf16.msra.mxu0 %v6002_v21 }
 0x67a   :  { %5660 = vmatprep.subr.bf16.mxu0 %v6003_v23 }
 0x67d   :  { %5661 = vmatpush3.bf16.msra.mxu0 %v6003_v23 }
 0x67e   :  { %5662 = vmatprep.subr.bf16.mxu0 %v6004_v44 }
 0x681   :  { %5663 = vmatpush3.bf16.msra.mxu0 %v6004_v44 }
 0x682   :  { %5664 = vmatprep.subr.bf16.mxu0 %v6005_v16 }
 0x685   :  { %5665 = vmatpush3.bf16.msra.mxu0 %v6005_v16 }
 0x686   :  { %5666 = vmatprep.subr.bf16.mxu0 %v6006_v8 }
 0x689   :  { %5667 = vmatpush3.bf16.msra.mxu0 %v6006_v8 }
 0x68a   :  { %5668 = vmatprep.subr.bf16.mxu0 %v6007_v63 }
 0x68d   :  { %5669 = vmatpush3.bf16.msra.mxu0 %v6007_v63 }
 0x743   :  { %v5648_v51 = vpop.f32.mrb[56].mxu0 }
 0x744   :  { %v2393_v41 = vpop.f32.mrb[57].mxu0 }
 0x745   :  { %v5649_v50 = vpop.f32.mrb[58].mxu0 }
 0x746   :  { %v2425_v62 = vpack.c.bf16 %v5649_v50, %v5648_v51  ;;  %v2396_v53 = vpop.f32.mrb[59].mxu0 }
 0x747   :  { %v2424_v27 = vpack.c.bf16 %v2396_v53, %v2393_v41 }
 0x749   :  { %2592 = vmatprep.mubr.bf16.mxu1 %v2424_v27 }
 0x74a   :  { %2593 = vmatmul.mubr.bf16.vlgmr.msra.gmra.mrb[40].mxu1 %v9028_v0 }
 0x74b   :  { %2600 = vmatprep.mubr.bf16.mxu1 %v2425_v62  ;;  %v5652_v17 = vpop.f32.mrb[60].mxu0 }
 0x74c   :  { %v2409_v6 = vpop.f32.mrb[61].mxu0 }
 0x74d   :  { %v5653_v12 = vpop.f32.mrb[62].mxu0 }
 0x74e   :  { %v2427_v45 = vpack.c.bf16 %v5653_v12, %v5652_v17  ;;  %v2412_v22 = vpop.f32.mrb[63].mxu0 }
 0x74f   :  { %v2426_v59 = vpack.c.bf16 %v2412_v22, %v2409_v6 }
 0x752   :  { %2601 = vmatmul.mubr.bf16.gmra.mrb[44].mxu1 %v9029_v19 }
 0x753   :  { %2608 = vmatprep.mubr.bf16.mxu1 %v2426_v59 }
 0x75a   :  { %2609 = vmatmul.mubr.bf16.gmra.mrb[48].mxu1 %v9030_v14 }
 0x75b   :  { %2616 = vmatprep.mubr.bf16.mxu1 %v2427_v45 }
 0x762   :  { %2617 = vmatmul.mubr.bf16.gmra.mrb[52].mxu1 %v9031_v49 }
 0x763   :  { %3048 = vmatprep.mubr.bf16.mxu1 %v9032_v60 }
 0x81d   :  { %v5250_v61 = vpop.f32.mrb[40].mxu1 }
 0x81e   :  { %v5251_v34 = vpop.f32.mrb[41].mxu1 }
 0x81f   :  { %v5252_v5 = vadd.f32 %v5251_v34, %v5250_v61  ;;  %v5253_v7 = vpop.f32.mrb[42].mxu1 }
 0x820   :  { %v5254_v30 = vpop.f32.mrb[43].mxu1 }
 0x821   :  { %v2595_v10 = vadd.f32 %v5252_v5, %v2463_v25  ;;  %v5255_v36 = vadd.f32 %v5254_v30, %v5253_v7 }
 0x823   :  { %v2598_v3 = vadd.f32 %v5255_v36, %v2463_v25  ;;  %v2625_v18 = vmax.f32 %v2595_v10, 0.0 }
 0x825   :  { %v2626_v21 = vmax.f32 %v2598_v3, 0.0  ;;  %v5256_v51 = vpop.f32.mrb[44].mxu1 }
 0x826   :  { %v5257_v41 = vpop.f32.mrb[45].mxu1 }
 0x827   :  { %v5258_v50 = vadd.f32 %v5257_v41, %v5256_v51  ;;  %v5259_v62 = vpop.f32.mrb[46].mxu1  ;;  %v2633_v53 = vpack.c.bf16 %v2626_v21, %v2625_v18 }
 0x828   :  { %v5260_v27 = vpop.f32.mrb[47].mxu1 }
 0x829   :  { %v2603_v0 = vadd.f32 %v5258_v50, %v2463_v25  ;;  %v5261_v17 = vadd.f32 %v5260_v27, %v5259_v62  ;;  %5670 = vmatprep.mubr.bf16.mxu0 %v2633_v53  ;;  %v9037_v27 = vld [vmem:[#allocation11_spill] sm:$0xff]  ;;  %v6014_v53 = vld [vmem:[#allocation2 + $0xa0] ss:$8 sps:$4 sm:$0xff]  }
 0x82b   :  { %v2606_v6 = vadd.f32 %v5261_v17, %v2463_v25  ;;  %v2627_v12 = vmax.f32 %v2603_v0, 0.0  ;;  %v2657_v0 = vrot.slane %v8051_v52, %v9037_v27 }
 0x82d   :  { %v2628_v45 = vmax.f32 %v2606_v6, 0.0  ;;  %v5262_v22 = vpop.f32.mrb[48].mxu1 }
 0x82e   :  { %v5263_v59 = vpop.f32.mrb[49].mxu1 }
 0x82f   :  { %v2634_v19 = vpack.c.bf16 %v2628_v45, %v2627_v12  ;;  %v5264_v14 = vadd.f32 %v5263_v59, %v5262_v22  ;;  %v5265_v49 = vpop.f32.mrb[50].mxu1 }
 0x830   :  { %v5266_v23 = vpop.f32.mrb[51].mxu1 }
 0x831   :  { %v2611_v44 = vadd.f32 %v5264_v14, %v2463_v25  ;;  %v5267_v16 = vadd.f32 %v5266_v23, %v5265_v49  ;;  %5671 = vmatmul.mubr.bf16.vlgmr.msra.gmra.mrb[64].mxu0 %v2634_v19 }
 0x833   :  { %v2614_v8 = vadd.f32 %v5267_v16, %v2463_v25  ;;  %v2629_v63 = vmax.f32 %v2611_v44, 0.0 }
 0x835   :  { %v2630_v61 = vmax.f32 %v2614_v8, 0.0  ;;  %v5268_v34 = vpop.f32.mrb[52].mxu1 }
 0x836   :  { %v5269_v5 = vpop.f32.mrb[53].mxu1 }
 0x837   :  { %v5270_v7 = vadd.f32 %v5269_v5, %v5268_v34  ;;  %v5271_v30 = vpop.f32.mrb[54].mxu1  ;;  %v2635_v10 = vpack.c.bf16 %v2630_v61, %v2629_v63 }
 0x838   :  { %v5272_v36 = vpop.f32.mrb[55].mxu1 }
 0x839   :  { %v2619_v3 = vadd.f32 %v5270_v7, %v2463_v25  ;;  %v5273_v18 = vadd.f32 %v5272_v36, %v5271_v30  ;;  %5674 = vmatprep.mubr.bf16.mxu0 %v2635_v10  ;;  %v6008_v30 = vld [vmem:[#allocation2 + $0x80] ss:$8 sps:$4 sm:$0xff]   ;;  %v6010_v10 = vld [vmem:[#allocation2 + $0x84] ss:$8 sps:$4 sm:$0xff]  }
 0x83a   :  { %3016 = vmatprep.subr.bf16.mxu1 %v6010_v10 }
 0x83b   :  { %v2622_v21 = vadd.f32 %v5273_v18, %v2463_v25  ;;  %v2631_v51 = vmax.f32 %v2619_v3, 0.0  ;;  %3017 = vmatpush1.bf16.msra.mxu1 %v6008_v30  ;;  %v6013_v18 = vld [vmem:[#allocation2 + $0x94] ss:$8 sps:$4 sm:$0xff]  }
 0x83c   :  { %3018 = vmatprep.subr.bf16.mxu1 %v6013_v18 }
 0x83d   :  { %v2632_v41 = vmax.f32 %v2622_v21, 0.0 }
 0x83f   :  { %v2636_v50 = vpack.c.bf16 %v2632_v41, %v2631_v51  ;;  %v6011_v51 = vld [vmem:[#allocation2 + $0x90] ss:$8 sps:$4 sm:$0xff]  }
 0x840   :  { %3019 = vmatpush1.bf16.msra.mxu1 %v6011_v51 }
 0x841   :  { %5675 = vmatmul.mubr.bf16.gmra.mrb[68].mxu0 %v2636_v50  ;;  %v6016_v50 = vld [vmem:[#allocation2 + $0xa4] ss:$8 sps:$4 sm:$0xff]  }
 0x842   :  { %5694 = vmatprep.mubr.msk.bf16.mxu0 %vm9036_vm2, %v9024_v28  ;;  %3020 = vmatprep.subr.bf16.mxu1 %v6016_v50 }
 0x844   :  { %3021 = vmatpush1.bf16.msra.mxu1 %v6014_v53 }
 0x904   :  { %v5672_v17 = vpop.f32.mrb[64].mxu0 }
 0x905   :  { %v2740_v6 = vpop.f32.mrb[65].mxu0  ;;  %v8073_v14 = vadd.f32 %v5672_v17, %v2657_v0  ;;  %v6017_v17 = vld [vmem:[#allocation2 + $0xb0] ss:$8 sps:$4 sm:$0xff]  }
 0x906   :  { %v8063_v12 = vadd.f32 %v2740_v6, %v2657_v0  ;;  %v5673_v45 = vpop.f32.mrb[66].mxu0  ;;  %v6022_v6 = vld [vmem:[#allocation2 + $0xc4] ss:$8 sps:$4 sm:$0xff]  }
 0x907   :  { %v2743_v25 = vpop.f32.mrb[67].mxu0  ;;  %v8075_v49 = vadd.f32 %v5673_v45, %v2657_v0  ;;  %v2797_v23 = vmul.f32 %v8073_v14, %v8073_v14  ;;  %v6020_v45 = vld [vmem:[#allocation2 + $0xc0] ss:$8 sps:$4 sm:$0xff]  }
 0x908   :  { %v8065_v22 = vadd.f32 %v2743_v25, %v2657_v0  ;;  %2771 = vadd.xlane.f32.xlu0 %v8063_v12  ;;  %v2795_v59 = vmul.f32 %v8063_v12, %v8063_v12  ;;  %v6025_v25 = vld [vmem:[#allocation2 + $0xd4] ss:$8 sps:$4 sm:$0xff]  }
 0x909   :  { %v2798_v16 = vmul.f32 %v8075_v49, %v8075_v49 }
 0x90a   :  { %2773 = vadd.xlane.f32.xlu1 %v8065_v22  ;;  %v2796_v19 = vmul.f32 %v8065_v22, %v8065_v22 }
 0x90c   :  { %2803 = vadd.xlane.f32.xlu0 %v2795_v59  ;;  %v6023_v59 = vld [vmem:[#allocation2 + $0xd0] ss:$8 sps:$4 sm:$0xff]  }
 0x90e   :  { %2805 = vadd.xlane.f32.xlu1 %v2796_v19  ;;  %v6028_v19 = vld [vmem:[#allocation2 + $0xe4] ss:$8 sps:$4 sm:$0xff]  }
 0x910   :  { %2775 = vadd.xlane.f32.xlu0 %v8073_v14 }
 0x912   :  { %2777 = vadd.xlane.f32.xlu1 %v8075_v49 }
 0x914   :  { %2807 = vadd.xlane.f32.xlu0 %v2797_v23  ;;  %v5676_v44 = vpop.f32.mrb[68].mxu0  ;;  %v6026_v23 = vld [vmem:[#allocation2 + $0xe0] ss:$8 sps:$4 sm:$0xff]  }
 0x915   :  { %v2756_v8 = vpop.f32.mrb[69].mxu0  ;;  %v8093_v3 = vadd.f32 %v5676_v44, %v2657_v0  ;;  %v6031_v44 = vld [vmem:[#allocation2 + $0xf4] ss:$8 sps:$4 sm:$0xff]  }
 0x916   :  { %v8083_v63 = vadd.f32 %v2756_v8, %v2657_v0  ;;  %2809 = vadd.xlane.f32.xlu1 %v2798_v16  ;;  %v5677_v61 = vpop.f32.mrb[70].mxu0  ;;  %v6029_v16 = vld [vmem:[#allocation2 + $0xf0] ss:$8 sps:$4 sm:$0xff]  }
 0x917   :  { %v2759_v34 = vpop.f32.mrb[71].mxu0  ;;  %v8095_v21 = vadd.f32 %v5677_v61, %v2657_v0  ;;  %v2801_v41 = vmul.f32 %v8093_v3, %v8093_v3 }
 0x918   :  { %v8085_v5 = vadd.f32 %v2759_v34, %v2657_v0  ;;  %2779 = vadd.xlane.f32.xlu0 %v8083_v63  ;;  %v2799_v7 = vmul.f32 %v8083_v63, %v8083_v63  ;;  %v6019_v0 = vld [vmem:[#allocation2 + $0xb4] ss:$8 sps:$4 sm:$0xff]  }
 0x919   :  { %v2802_v62 = vmul.f32 %v8095_v21, %v8095_v21  ;;  %3022 = vmatprep.subr.bf16.mxu1 %v6019_v0 }
 0x91a   :  { %2781 = vadd.xlane.f32.xlu1 %v8085_v5  ;;  %v2800_v36 = vmul.f32 %v8085_v5, %v8085_v5  ;;  %3023 = vmatpush1.bf16.msra.mxu1 %v6017_v17 }
 0x91b   :  { %3024 = vmatprep.subr.bf16.mxu1 %v6022_v6 }
 0x91c   :  { %2811 = vadd.xlane.f32.xlu0 %v2799_v7 }
 0x91e   :  { %2813 = vadd.xlane.f32.xlu1 %v2800_v36  ;;  %3025 = vmatpush1.bf16.msra.mxu1 %v6020_v45 }
 0x91f   :  { %3026 = vmatprep.subr.bf16.mxu1 %v6025_v25 }
 0x920   :  { %2783 = vadd.xlane.f32.xlu0 %v8093_v3 }
 0x922   :  { %2785 = vadd.xlane.f32.xlu1 %v8095_v21  ;;  %3027 = vmatpush1.bf16.msra.mxu1 %v6023_v59 }
 0x923   :  { %3028 = vmatprep.subr.bf16.mxu1 %v6028_v19 }
 0x924   :  { %2815 = vadd.xlane.f32.xlu0 %v2801_v41 }
 0x926   :  { %2817 = vadd.xlane.f32.xlu1 %v2802_v62  ;;  %3029 = vmatpush1.bf16.msra.mxu1 %v6026_v23 }
 0x927   :  { %3030 = vmatprep.subr.bf16.mxu1 %v6031_v44 }
 0x92a   :  { %3031 = vmatpush1.bf16.msra.mxu1 %v6029_v16 }
 0x995   :  { %v2772_v8 = vpop.xlane.xlu0 %2771 }
 0x996   :  { %v2787_v61 = vmul.f32 0.0078125, %v2772_v8 }
 0x997   :  { %v2774_v34 = vpop.xlane.xlu1 %2773 }
 0x998   :  { %v2788_v7 = vmul.f32 0.0078125, %v2774_v34  ;;  %v2827_v10 = vmul.f32 %v2787_v61, %v2787_v61 }
 0x999   :  { %v2804_v30 = vpop.xlane.xlu0 %2803 }
 0x99a   :  { %v2819_v36 = vmul.f32 0.0078125, %v2804_v30  ;;  %v2828_v51 = vmul.f32 %v2788_v7, %v2788_v7 }
 0x99b   :  { %v2806_v18 = vpop.xlane.xlu1 %2805 }
 0x99c   :  { %v2835_v41 = vsub.f32 %v2819_v36, %v2827_v10  ;;  %v2820_v50 = vmul.f32 0.0078125, %v2806_v18 }
 0x99d   :  { %v2776_v62 = vpop.xlane.xlu0 %2775 }
 0x99e   :  { %v2843_v53 = vmax.f32 %v2835_v41, 0.0  ;;  %v2836_v0 = vsub.f32 %v2820_v50, %v2828_v51  ;;  %v8103_v17 = vmul.f32 0.0078125, %v2776_v62 }
 0x99f   :  { %v2778_v6 = vpop.xlane.xlu1 %2777 }
 0x9a0   :  { %v2859_v45 = vadd.f32 1e-05, %v2843_v53  ;;  %v2844_v25 = vmax.f32 %v2836_v0, 0.0  ;;  %v8105_v59 = vmul.f32 0.0078125, %v2778_v6  ;;  %v2829_v44 = vmul.f32 %v8103_v17, %v8103_v17 }
 0x9a1   :  { %v2808_v19 = vpop.xlane.xlu0 %2807 }
 0x9a2   :  { %6168 = vrsqrt.f32 %v2859_v45  ;;  %v2860_v23 = vadd.f32 1e-05, %v2844_v25  ;;  %v2821_v16 = vmul.f32 0.0078125, %v2808_v19  ;;  %v2830_v34 = vmul.f32 %v8105_v59, %v8105_v59 }
 0x9a3   :  { %v2810_v8 = vpop.xlane.xlu1 %2809 }
 0x9a4   :  { %6170 = vrsqrt.f32 %v2860_v23  ;;  %v2837_v30 = vsub.f32 %v2821_v16, %v2829_v44  ;;  %v2822_v10 = vmul.f32 0.0078125, %v2810_v8  ;;  %v2851_v23 = vsub.f32 %v8063_v12, %v2787_v61  ;;  %v9038_v44 = vld [vmem:[#allocation21_spill] sm:$0xff] }
 0x9a5   :  { %v2780_v36 = vpop.xlane.xlu0 %2779  ;;  %v8120_v16 = vrot.slane %v8051_v52, %v9038_v44 }
 0x9a6   :  { %v2845_v18 = vmax.f32 %v2837_v30, 0.0  ;;  %v2838_v51 = vsub.f32 %v2822_v10, %v2830_v34  ;;  %v8111_v41 = vmul.f32 0.0078125, %v2780_v36 }
 0x9a7   :  { %v2782_v50 = vpop.xlane.xlu1 %2781 }
 0x9a8   :  { %v2861_v62 = vadd.f32 1e-05, %v2845_v18  ;;  %v2846_v53 = vmax.f32 %v2838_v51, 0.0  ;;  %v8113_v0 = vmul.f32 0.0078125, %v2782_v50  ;;  %v2831_v25 = vmul.f32 %v8111_v41, %v8111_v41 }
 0x9a9   :  { %v2812_v6 = vpop.xlane.xlu0 %2811  ;;  %v2852_v18 = vsub.f32 %v8065_v22, %v2788_v7 }
 0x9aa   :  { %6172 = vrsqrt.f32 %v2861_v62  ;;  %v2862_v45 = vadd.f32 1e-05, %v2846_v53  ;;  %v2823_v19 = vmul.f32 0.0078125, %v2812_v6  ;;  %v2832_v30 = vmul.f32 %v8113_v0, %v8113_v0 }
 0x9ab   :  { %v2814_v8 = vpop.xlane.xlu1 %2813  ;;  %v8127_v62 = vrot.slane %v8051_v52, %v9016_v55 }
 0x9ac   :  { %v6169_v34 = vpop.eup %6168  ;;  %6174 = vrsqrt.f32 %v2862_v45  ;;  %v2839_v10 = vsub.f32 %v2823_v19, %v2831_v25  ;;  %v2824_v36 = vmul.f32 0.0078125, %v2814_v8 }
 0x9ad   :  { %v2875_v51 = vmul.f32 %v6169_v34, %v2851_v23  ;;  %v2784_v50 = vpop.xlane.xlu0 %2783  ;;  %v2853_v34 = vsub.f32 %v8073_v14, %v8103_v17 }
 0x9ae   :  { %v6171_v12 = vpop.eup %6170  ;;  %v2847_v61 = vmax.f32 %v2839_v10, 0.0  ;;  %v2840_v53 = vsub.f32 %v2824_v36, %v2832_v30  ;;  %v8129_v6 = vmul.f32 0.0078125, %v2784_v50  ;;  %v2854_v50 = vsub.f32 %v8075_v49, %v8105_v59 }
 0x9af   :  { %v2887_v45 = vmul.f32 %v8120_v16, %v2875_v51  ;;  %v2876_v44 = vmul.f32 %v6171_v12, %v2852_v18  ;;  %v2786_v27 = vpop.xlane.xlu1 %2785 }
 0x9b0   :  { %v2863_v32 = vadd.f32 1e-05, %v2847_v61  ;;  %v2848_v25 = vmax.f32 %v2840_v53, 0.0  ;;  %v2794_v22 = vmul.f32 0.0078125, %v2786_v27  ;;  %v2833_v52 = vmul.f32 %v8129_v6, %v8129_v6  ;;  %v9041_v61 = vld [vmem:[#allocation27_spill] sm:$0xff] }
 0x9b1   :  { %v2888_v19 = vmul.f32 %v8120_v16, %v2876_v44  ;;  %v2816_v7 = vpop.xlane.xlu0 %2815  ;;  %v2899_v23 = vadd.f32 %v8127_v62, %v2887_v45 }
 0x9b2   :  { %6176 = vrsqrt.f32 %v2863_v32  ;;  %v2864_v55 = vadd.f32 1e-05, %v2848_v25  ;;  %v2825_v8 = vmul.f32 0.0078125, %v2816_v7  ;;  %v2834_v18 = vmul.f32 %v2794_v22, %v2794_v22  ;;  %v9039_v32 = vld [vmem:[#allocation26_spill] sm:$0xff] }
 0x9b3   :  { %v2818_v30 = vpop.xlane.xlu1 %2817  ;;  %v2900_v10 = vadd.f32 %v8127_v62, %v2888_v19  ;;  %v8142_v12 = vadd.f32 %v2899_v23, %v9039_v32 }
 0x9b4   :  { %v6173_v36 = vpop.eup %6172  ;;  %6178 = vrsqrt.f32 %v2864_v55  ;;  %v2841_v51 = vsub.f32 %v2825_v8, %v2833_v52  ;;  %v2826_v27 = vmul.f32 0.0078125, %v2818_v30  ;;  %v2855_v8 = vsub.f32 %v8083_v63, %v8111_v41 }
 0x9b5   :  { %9040 = vst [vmem:[#allocation17_spill] sm:$0xff] %v8142_v12  ;;  %v8145_v53 = vadd.f32 %v2900_v10, %v9041_v61  ;;  %v2877_v45 = vmul.f32 %v6173_v36, %v2853_v34  ;;  %v2856_v10 = vsub.f32 %v8085_v5, %v8113_v0  ;;  %v9044_v36 = vld [vmem:[#allocation32_spill] sm:$0xff]  ;;  %v2857_v0 = vsub.f32 %v8093_v3, %v8129_v6 }
 0x9b6   :  { %v6175_v44 = vpop.eup %6174  ;;  %v2849_v14 = vmax.f32 %v2841_v51, 0.0  ;;  %v2842_v17 = vsub.f32 %v2826_v27, %v2834_v18  ;;  %v9046_v51 = vld [vmem:[#allocation33_spill] sm:$0xff] }
 0x9b7   :  { %9042 = vst [vmem:[#allocation20_spill] sm:$0xff] %v8145_v53  ;;  %v8149_v25 = vpack.c.bf16 %v8145_v53, %v8142_v12  ;;  %v2878_v19 = vmul.f32 %v6175_v44, %v2854_v50  ;;  %v2889_v7 = vmul.f32 %v8120_v16, %v2877_v45 }
 0x9b8   :  { %v2865_v55 = vadd.f32 1e-05, %v2849_v14  ;;  %v2850_v52 = vmax.f32 %v2842_v17, 0.0  ;;  %v2858_v17 = vsub.f32 %v8095_v21, %v2794_v22 }
 0x9b9   :  { %9043 = vst [vmem:[#allocation16_spill] sm:$0xff] %v8149_v25  ;;  %3049 = vmatmul.mubr.bf16.vlgmr.msra.gmra.mrb[56].mxu1 %v8149_v25  ;;  %v2890_v49 = vmul.f32 %v8120_v16, %v2878_v19  ;;  %v2901_v59 = vadd.f32 %v8127_v62, %v2889_v7  ;;  %v9049_v19 = vld [vmem:[#allocation38_spill] sm:$0xff] }
 0x9ba   :  { %6180 = vrsqrt.f32 %v2865_v55  ;;  %v2866_v23 = vadd.f32 1e-05, %v2850_v52  ;;  %3058 = vmatprep.mubr.bf16.mxu1 %v9032_v60  ;;  %v9051_v55 = vld [vmem:[#allocation39_spill] sm:$0xff] }
 0x9bb   :  { %v2902_v34 = vadd.f32 %v8127_v62, %v2890_v49  ;;  %v8162_v18 = vadd.f32 %v2901_v59, %v9044_v36 }
 0x9bc   :  { %v6177_v30 = vpop.eup %6176  ;;  %6182 = vrsqrt.f32 %v2866_v23 }
 0x9bd   :  { %9045 = vst [vmem:[#allocation25_spill] sm:$0xff] %v8162_v18  ;;  %v8165_v27 = vadd.f32 %v2902_v34, %v9046_v51  ;;  %v2879_v50 = vmul.f32 %v6177_v30, %v2855_v8  ;;  %v9054_v34 = vld [vmem:[#allocation41_spill] sm:$0xff] }
 0x9be   :  { %v6179_v32 = vpop.eup %6178 }
 0x9bf   :  { %9047 = vst [vmem:[#allocation23_spill] sm:$0xff] %v8165_v27  ;;  %v8169_v61 = vpack.c.bf16 %v8165_v27, %v8162_v18  ;;  %v2880_v63 = vmul.f32 %v6179_v32, %v2856_v10  ;;  %v2891_v41 = vmul.f32 %v8120_v16, %v2879_v50  ;;  %v9056_v10 = vld [vmem:[#allocation42_spill] sm:$0xff]  ;;  %v6043_v50 = vld [vmem:[%s8785_s5 + $0x298] sm:$0xff]   ;;  %v6044_v32 = vld [vmem:[%s8785_s5 + $0x2a0] sm:$0xff]  }
 0x9c1   :  { %9048 = vst [vmem:[#allocation29_spill] sm:$0xff] %v8169_v61  ;;  %3059 = vmatmul.mubr.bf16.gmra.mrb[60].mxu1 %v8169_v61  ;;  %v2892_v45 = vmul.f32 %v8120_v16, %v2880_v63  ;;  %v2903_v5 = vadd.f32 %v8127_v62, %v2891_v41  ;;  %v6045_v63 = vld [vmem:[%s8785_s5 + $0x2a8] sm:$0xff]  }
 0x9c2   :  { %3068 = vmatprep.mubr.bf16.mxu1 %v9032_v60 }
 0x9c3   :  { %v2904_v44 = vadd.f32 %v8127_v62, %v2892_v45  ;;  %v8181_v7 = vadd.f32 %v2903_v5, %v9049_v19 }
 0x9c4   :  { %v6181_v14 = vpop.eup %6180 }
 0x9c5   :  { %9050 = vst [vmem:[#allocation22_spill] sm:$0xff] %v8181_v7  ;;  %v8184_v52 = vadd.f32 %v2904_v44, %v9051_v55  ;;  %v2881_v49 = vmul.f32 %v6181_v14, %v2857_v0 }
 0x9c6   :  { %v6183_v59 = vpop.eup %6182 }
 0x9c7   :  { %9052 = vst [vmem:[#allocation31_spill] sm:$0xff] %v8184_v52  ;;  %v8188_v23 = vpack.c.bf16 %v8184_v52, %v8181_v7  ;;  %v2882_v8 = vmul.f32 %v6183_v59, %v2858_v17  ;;  %v2893_v3 = vmul.f32 %v8120_v16, %v2881_v49 }
 0x9c9   :  { %9053 = vst [vmem:[#allocation30_spill] sm:$0xff] %v8188_v23  ;;  %3069 = vmatmul.mubr.bf16.gmra.mrb[64].mxu1 %v8188_v23  ;;  %v2894_v6 = vmul.f32 %v8120_v16, %v2882_v8  ;;  %v2905_v21 = vadd.f32 %v8127_v62, %v2893_v3  ;;  %v6040_v16 = vld [vmem:[%s8785_s5 + $0x280] sm:$0xff]  }
 0x9ca   :  { %3078 = vmatprep.mubr.bf16.mxu1 %v9032_v60  ;;  %v6041_v60 = vld [vmem:[%s8785_s5 + $0x288] sm:$0xff]   ;;  %5742 = vmatprep.subr.bf16.mxu1 %v6040_v16 }
 0x9cb   :  { %v2906_v22 = vadd.f32 %v8127_v62, %v2894_v6  ;;  %v8197_v30 = vadd.f32 %v2905_v21, %v9054_v34  ;;  %5743 = vmatpush3.bf16.msra.mxu1 %v6040_v16  ;;  %v6042_v62 = vld [vmem:[%s8785_s5 + $0x290] sm:$0xff]  }
 0x9cc   :  { %5744 = vmatprep.subr.bf16.mxu1 %v6041_v60 }
 0x9cd   :  { %9055 = vst [vmem:[#allocation34_spill] sm:$0xff] %v8197_v30  ;;  %v8200_v36 = vadd.f32 %v2906_v22, %v9056_v10 }
 0x9cf   :  { %9057 = vst [vmem:[#allocation8_spill] sm:$0xff] %v8200_v36  ;;  %v8204_v51 = vpack.c.bf16 %v8200_v36, %v8197_v30  ;;  %5745 = vmatpush3.bf16.msra.mxu1 %v6041_v60 }
 0x9d0   :  { %5746 = vmatprep.subr.bf16.mxu1 %v6042_v62 }
 0x9d1   :  { %9058 = vst [vmem:[#allocation24_spill] sm:$0xff] %v8204_v51  ;;  %3079 = vmatmul.mubr.bf16.gmra.mrb[68].mxu1 %v8204_v51 }
 0x9d3   :  { %5747 = vmatpush3.bf16.msra.mxu1 %v6042_v62 }
 0x9d4   :  { %5748 = vmatprep.subr.bf16.mxu1 %v6043_v50 }
 0x9d7   :  { %5749 = vmatpush3.bf16.msra.mxu1 %v6043_v50 }
 0x9d8   :  { %5750 = vmatprep.subr.bf16.mxu1 %v6044_v32 }
 0x9db   :  { %5751 = vmatpush3.bf16.msra.mxu1 %v6044_v32 }
 0x9dc   :  { %5752 = vmatprep.subr.bf16.mxu1 %v6045_v63 }
 0x9df   :  { %5753 = vmatpush3.bf16.msra.mxu1 %v6045_v63 }
 0xa8c   :  { %v3050_v41 = vpop.f32.mrb[56].mxu1 }
 0xa8d   :  { %v3052_v45 = vpop.f32.mrb[57].mxu1 }
 0xa8e   :  { %v3054_v5 = vpop.f32.mrb[58].mxu1 }
 0xa8f   :  { %v3089_v0 = vpack.c.bf16 %v3054_v5, %v3050_v41  ;;  %v3056_v44 = vpop.f32.mrb[59].mxu1  ;;  %v6032_v41 = vld [vmem:[%s8785_s5 + $0x240] sm:$0xff]  }
 0xa90   :  { %v3090_v14 = vpack.c.bf16 %v3056_v44, %v3052_v45  ;;  %v6033_v45 = vld [vmem:[%s8785_s5 + $0x248] sm:$0xff]  }
 0xa91   :  { %5678 = vmatprep.subr.bf16.mxu0 %v3089_v0 }
 0xa92   :  { %5679 = vmatpush3.bf16.msra.mxu0 %v3089_v0 }
 0xa94   :  { %v3060_v17 = vpop.f32.mrb[60].mxu1 }
 0xa95   :  { %v3062_v19 = vpop.f32.mrb[61].mxu1 }
 0xa96   :  { %v3064_v55 = vpop.f32.mrb[62].mxu1 }
 0xa97   :  { %v3091_v49 = vpack.c.bf16 %v3064_v55, %v3060_v17  ;;  %v3066_v59 = vpop.f32.mrb[63].mxu1  ;;  %v6034_v17 = vld [vmem:[%s8785_s5 + $0x250] sm:$0xff]  }
 0xa98   :  { %v3092_v8 = vpack.c.bf16 %v3066_v59, %v3062_v19  ;;  %v6035_v19 = vld [vmem:[%s8785_s5 + $0x258] sm:$0xff]  }
 0xa99   :  { %5680 = vmatprep.subr.bf16.mxu0 %v3091_v49  ;;  %v9068_v59 = vld [vmem:[#allocation55_spill] sm:$0xff] }
 0xa9a   :  { %5681 = vmatpush3.bf16.msra.mxu0 %v3091_v49  ;;  %vm9069_vm9 = vnez %v9068_v59 }
 0xa9c   :  { %v3070_v3 = vpop.f32.mrb[64].mxu1 }
 0xa9d   :  { %v3072_v6 = vpop.f32.mrb[65].mxu1 }
 0xa9e   :  { %v3074_v21 = vpop.f32.mrb[66].mxu1 }
 0xa9f   :  { %v3093_v22 = vpack.c.bf16 %v3074_v21, %v3070_v3  ;;  %v3076_v34 = vpop.f32.mrb[67].mxu1  ;;  %v6036_v3 = vld [vmem:[%s8785_s5 + $0x260] sm:$0xff]  }
 0xaa0   :  { %v3094_v10 = vpack.c.bf16 %v3076_v34, %v3072_v6  ;;  %v6037_v6 = vld [vmem:[%s8785_s5 + $0x268] sm:$0xff]   ;;  %v9076_v34 = vld [vmem:[#allocation58_spill] sm:$0xff] }
 0xaa1   :  { %5682 = vmatprep.subr.bf16.mxu0 %v3093_v22  ;;  %vm9077_vm14 = vnez %v9076_v34 }
 0xaa2   :  { %5683 = vmatpush3.bf16.msra.mxu0 %v3093_v22 }
 0xaa4   :  { %v3080_v16 = vpop.f32.mrb[68].mxu1 }
 0xaa5   :  { %v3082_v60 = vpop.f32.mrb[69].mxu1 }
 0xaa6   :  { %v3084_v62 = vpop.f32.mrb[70].mxu1 }
 0xaa7   :  { %v3095_v50 = vpack.c.bf16 %v3084_v62, %v3080_v16  ;;  %v3086_v32 = vpop.f32.mrb[71].mxu1  ;;  %v6038_v16 = vld [vmem:[%s8785_s5 + $0x270] sm:$0xff]  }
 0xaa8   :  { %v3096_v63 = vpack.c.bf16 %v3086_v32, %v3082_v60  ;;  %v6039_v60 = vld [vmem:[%s8785_s5 + $0x278] sm:$0xff]   ;;  %v9081_v62 = vld [vmem:[#allocation46_spill] sm:$0xff] }
 0xaa9   :  { %5684 = vmatprep.subr.bf16.mxu0 %v3095_v50  ;;  %vm9082_vm12 = vnez %v9081_v62 }
 0xaaa   :  { %5685 = vmatpush3.bf16.msra.mxu0 %v3095_v50  ;;  %v9083_v50 = vld [vmem:[#allocation44_spill] sm:$0xff] }
 0xaab   :  { %5686 = vmatprep.subr.bf16.mxu0 %v3090_v14  ;;  %vm9084_vm6 = vnez %v9083_v50 }
 0xaac   :  { %vm9085_vm2 = vmpackc.low %vm9082_vm12, %vm9084_vm6 }
 0xaae   :  { %5687 = vmatpush3.bf16.msra.mxu0 %v3090_v14 }
 0xaaf   :  { %5688 = vmatprep.subr.bf16.mxu0 %v3092_v8 }
 0xab2   :  { %5689 = vmatpush3.bf16.msra.mxu0 %v3092_v8  ;;  %v9070_v8 = vld [vmem:[#allocation56_spill] sm:$0xff] }
 0xab3   :  { %5690 = vmatprep.subr.bf16.mxu0 %v3094_v10  ;;  %vm9071_vm11 = vnez %v9070_v8 }
 0xab4   :  { %vm9072_vm10 = vmpackc.low %vm9069_vm9, %vm9071_vm11 }
 0xab6   :  { %5691 = vmatpush3.bf16.msra.mxu0 %v3094_v10  ;;  %v9078_v10 = vld [vmem:[#allocation59_spill] sm:$0xff] }
 0xab7   :  { %5692 = vmatprep.subr.bf16.mxu0 %v3096_v63  ;;  %vm9079_vm4 = vnez %v9078_v10 }
 0xab8   :  { %vm9080_vm13 = vmpackc.low %vm9077_vm14, %vm9079_vm4 }
 0xaba   :  { %5693 = vmatpush3.bf16.msra.mxu0 %v3096_v63 }
 0xabb   :  { %5710 = vmatprep.subr.bf16.mxu0 %v6032_v41 }
 0xabd   :  { %5695 = vmatmul.mubr.msk.bf16.vlgmr.msra.gmra.mrb[72].mxu0 %vm9061_vm3, %v9024_v28 }
 0xabe   :  { %5698 = vmatprep.mubr.msk.bf16.mxu0 %vm9064_vm5, %v9024_v28  ;;  %5711 = vmatpush3.bf16.msra.mxu0 %v6032_v41 }
 0xabf   :  { %5712 = vmatprep.subr.bf16.mxu0 %v6033_v45 }
 0xac2   :  { %5713 = vmatpush3.bf16.msra.mxu0 %v6033_v45 }
 0xac3   :  { %5714 = vmatprep.subr.bf16.mxu0 %v6034_v17 }
 0xac5   :  { %5699 = vmatmul.mubr.msk.bf16.gmra.mrb[76].mxu0 %vm9067_vm1, %v9024_v28 }
 0xac6   :  { %5702 = vmatprep.mubr.msk.bf16.mxu0 %vm9072_vm10, %v9024_v28  ;;  %5715 = vmatpush3.bf16.msra.mxu0 %v6034_v17 }
 0xac7   :  { %5716 = vmatprep.subr.bf16.mxu0 %v6035_v19 }
 0xaca   :  { %5717 = vmatpush3.bf16.msra.mxu0 %v6035_v19 }
 0xacb   :  { %5718 = vmatprep.subr.bf16.mxu0 %v6036_v3 }
 0xacd   :  { %5703 = vmatmul.mubr.msk.bf16.gmra.mrb[80].mxu0 %vm9075_vm8, %v9024_v28 }
 0xace   :  { %5706 = vmatprep.mubr.msk.bf16.mxu0 %vm9080_vm13, %v9024_v28  ;;  %5719 = vmatpush3.bf16.msra.mxu0 %v6036_v3 }
 0xacf   :  { %5720 = vmatprep.subr.bf16.mxu0 %v6037_v6 }
 0xad2   :  { %5721 = vmatpush3.bf16.msra.mxu0 %v6037_v6 }
 0xad3   :  { %5722 = vmatprep.subr.bf16.mxu0 %v6038_v16 }
 0xad5   :  { %5707 = vmatmul.mubr.msk.bf16.gmra.mrb[84].mxu0 %vm9085_vm2, %v9024_v28 }
 0xad6   :  { %5723 = vmatpush3.bf16.msra.mxu0 %v6038_v16  ;;  %5726 = vmatprep.mubr.bf16.mxu0 %v7831_v11  ;;  %v6046_v11 = vld [vmem:[%s8785_s5 + $0x2b0] sm:$0xff]  }
 0xad7   :  { %5724 = vmatprep.subr.bf16.mxu0 %v6039_v60  ;;  %5754 = vmatprep.subr.bf16.mxu1 %v6046_v11 }
 0xad8   :  { %5755 = vmatpush3.bf16.msra.mxu1 %v6046_v11 }
 0xada   :  { %5725 = vmatpush3.bf16.msra.mxu0 %v6039_v60 }
 0xadd   :  { %5727 = vmatmul.mubr.bf16.vlgmr.msra.gmra.mrb[72].mxu0 %v7845_v40  ;;  %v6047_v40 = vld [vmem:[%s8785_s5 + $0x2b8] sm:$0xff]  }
 0xade   :  { %5730 = vmatprep.mubr.bf16.mxu0 %v7887_v4  ;;  %5756 = vmatprep.subr.bf16.mxu1 %v6047_v40  ;;  %v8308_v4 = vld [vmem:[%s8788_s8 + $0x8] sm:$0xff] }
 0xadf   :  { %5757 = vmatpush3.bf16.msra.mxu1 %v6047_v40 }
 0xae5   :  { %5731 = vmatmul.mubr.bf16.gmra.mrb[76].mxu0 %v7901_v15  ;;  %v9086_v15 = vld [vmem:[#allocation10_spill] sm:$0xff] }
 0xae6   :  { %5734 = vmatprep.mubr.bf16.mxu0 %v7935_v37  ;;  %v3359_v37 = vrot.slane %v8308_v4, %v9086_v15 }
 0xaed   :  { %5735 = vmatmul.mubr.bf16.gmra.mrb[80].mxu0 %v7945_v39 }
 0xaee   :  { %5738 = vmatprep.mubr.bf16.mxu0 %v7969_v31 }
 0xaf5   :  { %5739 = vmatmul.mubr.bf16.gmra.mrb[84].mxu0 %v7986_v58 }
 0xbb0   :  { %v5728_v39 = vpop.f32.mrb[72].mxu0 }
 0xbb1   :  { %v3362_v31 = vadd.f32 %v5728_v39, %v3359_v37  ;;  %v3293_v58 = vpop.f32.mrb[73].mxu0 }
 0xbb2   :  { %v3360_v32 = vadd.f32 %v3359_v37, %v3293_v58  ;;  %v5729_v63 = vpop.f32.mrb[74].mxu0 }
 0xbb3   :  { %v3363_v41 = vadd.f32 %v5729_v63, %v3359_v37  ;;  %v3296_v45 = vpop.f32.mrb[75].mxu0  ;;  %v3378_v0 = vmax.f32 %v3362_v31, 0.0 }
 0xbb4   :  { %v3361_v5 = vadd.f32 %v3359_v37, %v3296_v45  ;;  %v3376_v14 = vmax.f32 %v3360_v32, 0.0 }
 0xbb5   :  { %v3379_v44 = vmax.f32 %v3363_v41, 0.0 }
 0xbb6   :  { %v3377_v17 = vmax.f32 %v3361_v5, 0.0 }
 0xbb7   :  { %v3393_v19 = vpack.c.bf16 %v3379_v44, %v3378_v0 }
 0xbb8   :  { %v3392_v55 = vpack.c.bf16 %v3377_v17, %v3376_v14  ;;  %v5732_v49 = vpop.f32.mrb[76].mxu0 }
 0xbb9   :  { %v3366_v59 = vadd.f32 %v5732_v49, %v3359_v37  ;;  %v3309_v8 = vpop.f32.mrb[77].mxu0 }
 0xbba   :  { %v3364_v3 = vadd.f32 %v3359_v37, %v3309_v8  ;;  %v5733_v6 = vpop.f32.mrb[78].mxu0  ;;  %5758 = vmatprep.mubr.bf16.mxu1 %v3392_v55 }
 0xbbb   :  { %v3367_v21 = vadd.f32 %v5733_v6, %v3359_v37  ;;  %v3312_v22 = vpop.f32.mrb[79].mxu0  ;;  %5759 = vmatmul.mubr.bf16.vlgmr.msra.gmra.mrb[72].mxu1 %v3393_v19  ;;  %v3382_v10 = vmax.f32 %v3366_v59, 0.0 }
 0xbbc   :  { %v3365_v34 = vadd.f32 %v3359_v37, %v3312_v22  ;;  %v3380_v60 = vmax.f32 %v3364_v3, 0.0 }
 0xbbd   :  { %v3383_v16 = vmax.f32 %v3367_v21, 0.0 }
 0xbbe   :  { %v3381_v62 = vmax.f32 %v3365_v34, 0.0 }
 0xbbf   :  { %v3395_v50 = vpack.c.bf16 %v3383_v16, %v3382_v10 }
 0xbc0   :  { %v3394_v11 = vpack.c.bf16 %v3381_v62, %v3380_v60  ;;  %v5736_v40 = vpop.f32.mrb[80].mxu0 }
 0xbc1   :  { %v3370_v39 = vadd.f32 %v5736_v40, %v3359_v37  ;;  %v3325_v31 = vpop.f32.mrb[81].mxu0  ;;  %v9089_v40 = vld [vmem:[#allocation12_spill] sm:$0xff] }
 0xbc2   :  { %v3368_v58 = vadd.f32 %v3359_v37, %v3325_v31  ;;  %v5737_v32 = vpop.f32.mrb[82].mxu0  ;;  %5762 = vmatprep.mubr.bf16.mxu1 %v3394_v11  ;;  %v9087_v11 = vld [vmem:[#allocation45_spill] sm:$0xff] }
 0xbc3   :  { %v3371_v63 = vadd.f32 %v5737_v32, %v3359_v37  ;;  %v3328_v41 = vpop.f32.mrb[83].mxu0  ;;  %5763 = vmatmul.mubr.bf16.gmra.mrb[76].mxu1 %v3395_v50  ;;  %v3386_v5 = vmax.f32 %v3370_v39, 0.0  ;;  %vm9088_vm3 = vnez %v9087_v11  ;;  %v8317_v39 = vrot.slane %v8308_v4, %v9089_v40 }
 0xbc4   :  { %v3369_v45 = vadd.f32 %v3359_v37, %v3328_v41  ;;  %v3384_v44 = vmax.f32 %v3368_v58, 0.0 }
 0xbc5   :  { %v3387_v0 = vmax.f32 %v3371_v63, 0.0 }
 0xbc6   :  { %v3385_v14 = vmax.f32 %v3369_v45, 0.0 }
 0xbc7   :  { %v3397_v17 = vpack.c.bf16 %v3387_v0, %v3386_v5 }
 0xbc8   :  { %v3396_v19 = vpack.c.bf16 %v3385_v14, %v3384_v44  ;;  %v5740_v55 = vpop.f32.mrb[84].mxu0 }
 0xbc9   :  { %v3374_v49 = vadd.f32 %v5740_v55, %v3359_v37  ;;  %v3341_v59 = vpop.f32.mrb[85].mxu0 }
 0xbca   :  { %v3372_v8 = vadd.f32 %v3359_v37, %v3341_v59  ;;  %v5741_v3 = vpop.f32.mrb[86].mxu0  ;;  %5766 = vmatprep.mubr.bf16.mxu1 %v3396_v19 }
 0xbcb   :  { %v3375_v6 = vadd.f32 %v5741_v3, %v3359_v37  ;;  %v3344_v21 = vpop.f32.mrb[87].mxu0  ;;  %5767 = vmatmul.mubr.bf16.gmra.mrb[80].mxu1 %v3397_v17  ;;  %v3390_v34 = vmax.f32 %v3374_v49, 0.0 }
 0xbcc   :  { %v3373_v22 = vadd.f32 %v3359_v37, %v3344_v21  ;;  %v3388_v16 = vmax.f32 %v3372_v8, 0.0 }
 0xbcd   :  { %v3391_v10 = vmax.f32 %v3375_v6, 0.0 }
 0xbce   :  { %v3389_v60 = vmax.f32 %v3373_v22, 0.0 }
 0xbcf   :  { %v3399_v62 = vpack.c.bf16 %v3391_v10, %v3390_v34 }
 0xbd0   :  { %v3398_v50 = vpack.c.bf16 %v3389_v60, %v3388_v16 }
 0xbd2   :  { %5770 = vmatprep.mubr.bf16.mxu1 %v3398_v50 }
 0xbd3   :  { %5771 = vmatmul.mubr.bf16.gmra.mrb[84].mxu1 %v3399_v62 }
 0xbd4   :  { %5790 = vmatprep.mubr.msk.bf16.mxu1 %vm9088_vm3, %v9024_v28 }
 0xc8e   :  { %v5760_v31 = vpop.f32.mrb[72].mxu1 }
 0xc8f   :  { %v8320_v58 = vadd.f32 %v5760_v31, %v8317_v39  ;;  %v3503_v37 = vpop.f32.mrb[73].mxu1 }
 0xc90   :  { %v5761_v32 = vpop.f32.mrb[74].mxu1  ;;  %v8327_v45 = vadd.f32 %v3503_v37, %v8317_v39 }
 0xc91   :  { %v8323_v63 = vadd.f32 %v5761_v32, %v8317_v39  ;;  %3570 = vadd.xlane.f32.xlu0 %v8320_v58  ;;  %v3506_v41 = vpop.f32.mrb[75].mxu1  ;;  %v3616_v14 = vmul.f32 %v8320_v58, %v8320_v58 }
 0xc92   :  { %v8331_v5 = vadd.f32 %v3506_v41, %v8317_v39  ;;  %v3614_v49 = vmul.f32 %v8327_v45, %v8327_v45 }
 0xc93   :  { %3572 = vadd.xlane.f32.xlu1 %v8323_v63  ;;  %v3617_v55 = vmul.f32 %v8323_v63, %v8323_v63 }
 0xc94   :  { %v3615_v59 = vmul.f32 %v8331_v5, %v8331_v5 }
 0xc95   :  { %3566 = vadd.xlane.f32.xlu0 %v8327_v45 }
 0xc96   :  { %v5764_v0 = vpop.f32.mrb[76].mxu1 }
 0xc97   :  { %3568 = vadd.xlane.f32.xlu1 %v8331_v5  ;;  %v3519_v44 = vpop.f32.mrb[77].mxu1  ;;  %v8344_v3 = vadd.f32 %v5764_v0, %v8317_v39 }
 0xc98   :  { %v5765_v17 = vpop.f32.mrb[78].mxu1  ;;  %v8351_v10 = vadd.f32 %v3519_v44, %v8317_v39 }
 0xc99   :  { %3634 = vadd.xlane.f32.xlu0 %v3616_v14  ;;  %v3522_v19 = vpop.f32.mrb[79].mxu1  ;;  %v8347_v22 = vadd.f32 %v5765_v17, %v8317_v39  ;;  %v3620_v50 = vmul.f32 %v8344_v3, %v8344_v3 }
 0xc9a   :  { %v8355_v16 = vadd.f32 %v3522_v19, %v8317_v39  ;;  %v3618_v32 = vmul.f32 %v8351_v10, %v8351_v10 }
 0xc9b   :  { %3636 = vadd.xlane.f32.xlu1 %v3617_v55  ;;  %v3621_v37 = vmul.f32 %v8347_v22, %v8347_v22 }
 0xc9c   :  { %v3619_v41 = vmul.f32 %v8355_v16, %v8355_v16 }
 0xc9d   :  { %3630 = vadd.xlane.f32.xlu0 %v3614_v49 }
 0xc9e   :  { %v5768_v8 = vpop.f32.mrb[80].mxu1 }
 0xc9f   :  { %3632 = vadd.xlane.f32.xlu1 %v3615_v59  ;;  %v3535_v6 = vpop.f32.mrb[81].mxu1  ;;  %v8368_v0 = vadd.f32 %v5768_v8, %v8317_v39 }
 0xca0   :  { %v5769_v21 = vpop.f32.mrb[82].mxu1  ;;  %v8375_v14 = vadd.f32 %v3535_v6, %v8317_v39 }
 0xca1   :  { %3578 = vadd.xlane.f32.xlu0 %v8344_v3  ;;  %v3538_v34 = vpop.f32.mrb[83].mxu1  ;;  %v8371_v44 = vadd.f32 %v5769_v21, %v8317_v39  ;;  %v3624_v19 = vmul.f32 %v8368_v0, %v8368_v0 }
 0xca2   :  { %v8379_v17 = vadd.f32 %v3538_v34, %v8317_v39  ;;  %v3622_v49 = vmul.f32 %v8375_v14, %v8375_v14 }
 0xca3   :  { %3580 = vadd.xlane.f32.xlu1 %v8347_v22  ;;  %v3625_v55 = vmul.f32 %v8371_v44, %v8371_v44 }
 0xca4   :  { %v3623_v59 = vmul.f32 %v8379_v17, %v8379_v17 }
 0xca5   :  { %3574 = vadd.xlane.f32.xlu0 %v8351_v10 }
 0xca6   :  { %v5772_v60 = vpop.f32.mrb[84].mxu1 }
 0xca7   :  { %3576 = vadd.xlane.f32.xlu1 %v8355_v16  ;;  %v3551_v62 = vpop.f32.mrb[85].mxu1  ;;  %v8392_v8 = vadd.f32 %v5772_v60, %v8317_v39 }
 0xca8   :  { %v5773_v11 = vpop.f32.mrb[86].mxu1  ;;  %v8399_v21 = vadd.f32 %v3551_v62, %v8317_v39 }
 0xca9   :  { %3642 = vadd.xlane.f32.xlu0 %v3620_v50  ;;  %v3554_v31 = vpop.f32.mrb[87].mxu1  ;;  %v8395_v6 = vadd.f32 %v5773_v11, %v8317_v39  ;;  %v3628_v62 = vmul.f32 %v8392_v8, %v8392_v8  ;;  %v6048_v11 = vld [vmem:[#allocation4 + $0xc0] sm:$0xff]  }
 0xcaa   :  { %v8403_v34 = vadd.f32 %v3554_v31, %v8317_v39  ;;  %v3626_v60 = vmul.f32 %v8399_v21, %v8399_v21  ;;  %v6049_v31 = vld [vmem:[#allocation4 + $0x80] sm:$0xff]   ;;  %5346 = vmatprep.subr.bf16.mxu0 %v6048_v11 }
 0xcab   :  { %3644 = vadd.xlane.f32.xlu1 %v3621_v37  ;;  %v3629_v39 = vmul.f32 %v8395_v6, %v8395_v6  ;;  %v6050_v37 = vld [vmem:[#allocation4 + $0xc8] sm:$0xff]   ;;  %5347 = vmatpush3.bf16.msra.mxu0 %v6049_v31 }
 0xcac   :  { %v3627_v50 = vmul.f32 %v8403_v34, %v8403_v34  ;;  %5348 = vmatprep.subr.bf16.mxu0 %v6050_v37 }
 0xcad   :  { %3638 = vadd.xlane.f32.xlu0 %v3618_v32  ;;  %v6051_v32 = vld [vmem:[#allocation4 + $0x88] sm:$0xff]  }
 0xcaf   :  { %3640 = vadd.xlane.f32.xlu1 %v3619_v41  ;;  %v6052_v41 = vld [vmem:[#allocation4 + $0xd0] sm:$0xff]   ;;  %5349 = vmatpush3.bf16.msra.mxu0 %v6051_v32 }
 0xcb0   :  { %5350 = vmatprep.subr.bf16.mxu0 %v6052_v41 }
 0xcb1   :  { %3586 = vadd.xlane.f32.xlu0 %v8368_v0 }
 0xcb3   :  { %3588 = vadd.xlane.f32.xlu1 %v8371_v44 }
 0xcb5   :  { %3582 = vadd.xlane.f32.xlu0 %v8375_v14 }
 0xcb7   :  { %3584 = vadd.xlane.f32.xlu1 %v8379_v17 }
 0xcb9   :  { %3650 = vadd.xlane.f32.xlu0 %v3624_v19  ;;  %v6053_v19 = vld [vmem:[#allocation4 + $0x90] sm:$0xff]  }
 0xcba   :  { %5351 = vmatpush3.bf16.msra.mxu0 %v6053_v19 }
 0xcbb   :  { %3652 = vadd.xlane.f32.xlu1 %v3625_v55  ;;  %v6054_v55 = vld [vmem:[#allocation4 + $0xd8] sm:$0xff]  }
 0xcbc   :  { %5352 = vmatprep.subr.bf16.mxu0 %v6054_v55 }
 0xcbd   :  { %3646 = vadd.xlane.f32.xlu0 %v3622_v49  ;;  %v6055_v49 = vld [vmem:[#allocation4 + $0x98] sm:$0xff]  }
 0xcbe   :  { %5353 = vmatpush3.bf16.msra.mxu0 %v6055_v49 }
 0xcbf   :  { %3648 = vadd.xlane.f32.xlu1 %v3623_v59  ;;  %v6056_v59 = vld [vmem:[#allocation4 + $0xe0] sm:$0xff]  }
 0xcc0   :  { %5354 = vmatprep.subr.bf16.mxu0 %v6056_v59 }
 0xcc1   :  { %3594 = vadd.xlane.f32.xlu0 %v8392_v8 }
 0xcc3   :  { %3596 = vadd.xlane.f32.xlu1 %v8395_v6 }
 0xcc5   :  { %3590 = vadd.xlane.f32.xlu0 %v8399_v21 }
 0xcc7   :  { %3592 = vadd.xlane.f32.xlu1 %v8403_v34 }
 0xcc9   :  { %3654 = vadd.xlane.f32.xlu0 %v3626_v60  ;;  %v6057_v60 = vld [vmem:[#allocation4 + $0xa0] sm:$0xff]  }
 0xcca   :  { %5355 = vmatpush3.bf16.msra.mxu0 %v6057_v60 }
 0xccb   :  { %3656 = vadd.xlane.f32.xlu1 %v3627_v50  ;;  %v6058_v50 = vld [vmem:[#allocation4 + $0xe8] sm:$0xff]  }
 0xccc   :  { %5356 = vmatprep.subr.bf16.mxu0 %v6058_v50 }
 0xccd   :  { %3658 = vadd.xlane.f32.xlu0 %v3628_v62  ;;  %v6059_v62 = vld [vmem:[#allocation4 + $0xa8] sm:$0xff]  }
 0xcce   :  { %5357 = vmatpush3.bf16.msra.mxu0 %v6059_v62 }
 0xccf   :  { %3660 = vadd.xlane.f32.xlu1 %v3629_v39  ;;  %v6060_v39 = vld [vmem:[#allocation4 + $0xf0] sm:$0xff]  }
 0xcd0   :  { %5358 = vmatprep.subr.bf16.mxu0 %v6060_v39 }
 0xd1e   :  { %v3571_v11 = vpop.xlane.xlu0 %3570 }
 0xd1f   :  { %v3600_v32 = vmul.f32 0.0078125, %v3571_v11 }
 0xd20   :  { %v3573_v31 = vpop.xlane.xlu1 %3572 }
 0xd21   :  { %v3601_v36 = vmul.f32 0.0078125, %v3573_v31  ;;  %v3680_v30 = vmul.f32 %v3600_v32, %v3600_v32 }
 0xd22   :  { %v3567_v37 = vpop.xlane.xlu0 %3566 }
 0xd23   :  { %v8415_v55 = vmul.f32 0.0078125, %v3567_v37  ;;  %v3681_v60 = vmul.f32 %v3601_v36, %v3601_v36 }
 0xd24   :  { %v3569_v41 = vpop.xlane.xlu1 %3568 }
 0xd25   :  { %v8417_v52 = vmul.f32 0.0078125, %v3569_v41  ;;  %v3678_v62 = vmul.f32 %v8415_v55, %v8415_v55 }
 0xd26   :  { %v3635_v19 = vpop.xlane.xlu0 %3634 }
 0xd27   :  { %v3664_v49 = vmul.f32 0.0078125, %v3635_v19  ;;  %v3679_v31 = vmul.f32 %v8417_v52, %v8417_v52  ;;  %v3727_v46 = vsub.f32 %v8331_v5, %v8417_v52 }
 0xd28   :  { %v3637_v59 = vpop.xlane.xlu1 %3636 }
 0xd29   :  { %v3696_v7 = vsub.f32 %v3664_v49, %v3680_v30  ;;  %v3665_v50 = vmul.f32 0.0078125, %v3637_v59 }
 0xd2a   :  { %v3631_v18 = vpop.xlane.xlu0 %3630 }
 0xd2b   :  { %v3712_v39 = vmax.f32 %v3696_v7, 0.0  ;;  %v3697_v53 = vsub.f32 %v3665_v50, %v3681_v60  ;;  %v3662_v11 = vmul.f32 0.0078125, %v3631_v18 }
 0xd2c   :  { %v3633_v12 = vpop.xlane.xlu1 %3632 }
 0xd2d   :  { %v3744_v37 = vadd.f32 1e-05, %v3712_v39  ;;  %v3713_v27 = vmax.f32 %v3697_v53, 0.0  ;;  %v3694_v19 = vsub.f32 %v3662_v11, %v3678_v62  ;;  %v3663_v41 = vmul.f32 0.0078125, %v3633_v12 }
 0xd2e   :  { %v3579_v40 = vpop.xlane.xlu0 %3578 }
 0xd2f   :  { %6184 = vrsqrt.f32 %v3744_v37  ;;  %v3745_v15 = vadd.f32 1e-05, %v3713_v27  ;;  %v3710_v30 = vmax.f32 %v3694_v19, 0.0  ;;  %v3695_v49 = vsub.f32 %v3663_v41, %v3679_v31  ;;  %v9090_v37 = vld [vmem:[#allocation47_spill] sm:$0xff] }
 0xd30   :  { %v3581_v59 = vpop.xlane.xlu1 %3580  ;;  %v8423_v60 = vmul.f32 0.0078125, %v3579_v40  ;;  %v8437_v19 = vrot.slane %v8308_v4, %v9090_v37  ;;  %v3728_v41 = vsub.f32 %v8320_v58, %v3600_v32 }
 0xd31   :  { %6186 = vrsqrt.f32 %v3745_v15  ;;  %v3742_v51 = vadd.f32 1e-05, %v3710_v30  ;;  %v3711_v23 = vmax.f32 %v3695_v49, 0.0  ;;  %v8425_v39 = vmul.f32 0.0078125, %v3581_v59 }
 0xd32   :  { %v3575_v7 = vpop.xlane.xlu0 %3574  ;;  %v3684_v12 = vmul.f32 %v8423_v60, %v8423_v60  ;;  %v3729_v30 = vsub.f32 %v8323_v63, %v3601_v36 }
 0xd33   :  { %6188 = vrsqrt.f32 %v3742_v51  ;;  %v3743_v18 = vadd.f32 1e-05, %v3711_v23  ;;  %v8429_v27 = vmul.f32 0.0078125, %v3575_v7  ;;  %v3685_v23 = vmul.f32 %v8425_v39, %v8425_v39 }
 0xd34   :  { %v3577_v50 = vpop.xlane.xlu1 %3576 }
 0xd35   :  { %6190 = vrsqrt.f32 %v3743_v18  ;;  %v8431_v11 = vmul.f32 0.0078125, %v3577_v50  ;;  %v3682_v7 = vmul.f32 %v8429_v27, %v8429_v27 }
 0xd36   :  { %v3643_v53 = vpop.xlane.xlu0 %3642 }
 0xd37   :  { %v3668_v62 = vmul.f32 0.0078125, %v3643_v53 }
 0xd38   :  { %v3645_v15 = vpop.xlane.xlu1 %3644 }
 0xd39   :  { %v6185_v31 = vpop.eup %6184  ;;  %v3700_v51 = vsub.f32 %v3668_v62, %v3684_v12  ;;  %v3669_v40 = vmul.f32 0.0078125, %v3645_v15  ;;  %v3726_v12 = vsub.f32 %v8327_v45, %v8415_v55  ;;  %v3683_v62 = vmul.f32 %v8431_v11, %v8431_v11 }
 0xd3a   :  { %v3639_v49 = vpop.xlane.xlu0 %3638  ;;  %v3776_v37 = vmul.f32 %v6185_v31, %v3728_v41  ;;  %v8452_v31 = vrot.slane %v8308_v4, %v9091_v54 }
 0xd3b   :  { %v6187_v59 = vpop.eup %6186  ;;  %v3716_v18 = vmax.f32 %v3700_v51, 0.0  ;;  %v3701_v50 = vsub.f32 %v3669_v40, %v3685_v23  ;;  %v3666_v53 = vmul.f32 0.0078125, %v3639_v49 }
 0xd3c   :  { %v3641_v15 = vpop.xlane.xlu1 %3640  ;;  %v3777_v61 = vmul.f32 %v6187_v59, %v3729_v30 }
 0xd3d   :  { %v6189_v58 = vpop.eup %6188  ;;  %v3748_v32 = vadd.f32 1e-05, %v3716_v18  ;;  %v3717_v36 = vmax.f32 %v3701_v50, 0.0  ;;  %v3698_v63 = vsub.f32 %v3666_v53, %v3682_v7  ;;  %v3667_v25 = vmul.f32 0.0078125, %v3641_v15 }
 0xd3e   :  { %v3587_v51 = vpop.xlane.xlu0 %3586  ;;  %v3774_v23 = vmul.f32 %v6189_v58, %v3726_v12  ;;  %v3797_v40 = vmul.f32 %v8437_v19, %v3777_v61  ;;  %v3796_v7 = vmul.f32 %v8437_v19, %v3776_v37 }
 0xd3f   :  { %v6191_v49 = vpop.eup %6190  ;;  %6192 = vrsqrt.f32 %v3748_v32  ;;  %v3749_v45 = vadd.f32 1e-05, %v3717_v36  ;;  %v3714_v55 = vmax.f32 %v3698_v63, 0.0  ;;  %v3699_v35 = vsub.f32 %v3667_v25, %v3683_v62 }
 0xd40   :  { %v3589_v41 = vpop.xlane.xlu1 %3588  ;;  %v3775_v30 = vmul.f32 %v6191_v49, %v3727_v46  ;;  %v3794_v59 = vmul.f32 %v8437_v19, %v3774_v23  ;;  %v3817_v25 = vadd.f32 %v8452_v31, %v3797_v40  ;;  %v8459_v4 = vmul.f32 0.0078125, %v3587_v51 }
 0xd41   :  { %6194 = vrsqrt.f32 %v3749_v45  ;;  %v3746_v52 = vadd.f32 1e-05, %v3714_v55  ;;  %v3715_v5 = vmax.f32 %v3699_v35, 0.0  ;;  %v3816_v62 = vadd.f32 %v8452_v31, %v3796_v7 }
 0xd42   :  { %v3583_v18 = vpop.xlane.xlu0 %3582  ;;  %v3795_v61 = vmul.f32 %v8437_v19, %v3775_v30  ;;  %v3814_v50 = vadd.f32 %v8452_v31, %v3794_v59  ;;  %v8463_v37 = vmul.f32 0.0078125, %v3589_v41  ;;  %v3833_v32 = vadd.f32 %v3817_v25, %v7821_v9 }
 0xd43   :  { %6196 = vrsqrt.f32 %v3746_v52  ;;  %v3747_v53 = vadd.f32 1e-05, %v3715_v5  ;;  %v3688_v36 = vmul.f32 %v8459_v4, %v8459_v4  ;;  %v8470_v63 = vmul.f32 0.0078125, %v3583_v18 }
 0xd44   :  { %v3585_v12 = vpop.xlane.xlu1 %3584  ;;  %v3815_v46 = vadd.f32 %v8452_v31, %v3795_v61  ;;  %v3830_v15 = vadd.f32 %v3814_v50, %v7815_v56  ;;  %v3832_v45 = vadd.f32 %v3816_v62, %v7834_v1  ;;  %v3689_v56 = vmul.f32 %v8463_v37, %v8463_v37 }
 0xd45   :  { %6198 = vrsqrt.f32 %v3747_v53  ;;  %v8472_v23 = vmul.f32 0.0078125, %v3585_v12  ;;  %v3732_v9 = vsub.f32 %v8344_v3, %v8423_v60  ;;  %v3733_v30 = vsub.f32 %v8347_v22, %v8425_v39 }
 0xd46   :  { %v3651_v35 = vpop.xlane.xlu0 %3650  ;;  %v3831_v58 = vadd.f32 %v3815_v46, %v7818_v38  ;;  %v3847_v7 = vpack.c.bf16 %v3833_v32, %v3832_v45  ;;  %v3686_v5 = vmul.f32 %v8470_v63, %v8470_v63  ;;  %v3730_v50 = vsub.f32 %v8351_v10, %v8429_v27 }
 0xd47   :  { %v3672_v51 = vmul.f32 0.0078125, %v3651_v35  ;;  %v3687_v3 = vmul.f32 %v8472_v23, %v8472_v23  ;;  %v3731_v35 = vsub.f32 %v8355_v16, %v8431_v11 }
 0xd48   :  { %v3653_v40 = vpop.xlane.xlu1 %3652  ;;  %v3846_v49 = vpack.c.bf16 %v3831_v58, %v3830_v15 }
 0xd49   :  { %v6193_v55 = vpop.eup %6192  ;;  %v3704_v41 = vsub.f32 %v3672_v51, %v3688_v36  ;;  %v3673_v38 = vmul.f32 0.0078125, %v3653_v40 }
 0xd4a   :  { %5774 = vmatprep.subr.bf16.mxu1 %v3846_v49  ;;  %v3647_v59 = vpop.xlane.xlu0 %3646  ;;  %v3780_v22 = vmul.f32 %v6193_v55, %v3732_v9 }
 0xd4b   :  { %v6195_v52 = vpop.eup %6194  ;;  %v3720_v1 = vmax.f32 %v3704_v41, 0.0  ;;  %v3705_v18 = vsub.f32 %v3673_v38, %v3689_v56  ;;  %v3670_v61 = vmul.f32 0.0078125, %v3647_v59  ;;  %5775 = vmatpush3.bf16.msra.mxu1 %v3846_v49 }
 0xd4c   :  { %5776 = vmatprep.subr.bf16.mxu1 %v3847_v7  ;;  %v3649_v60 = vpop.xlane.xlu1 %3648  ;;  %v3781_v39 = vmul.f32 %v6195_v52, %v3733_v30  ;;  %v3800_v55 = vmul.f32 %v8437_v19, %v3780_v22 }
 0xd4d   :  { %v6197_v25 = vpop.eup %6196  ;;  %v3752_v53 = vadd.f32 1e-05, %v3720_v1  ;;  %v3721_v12 = vmax.f32 %v3705_v18, 0.0  ;;  %v3702_v46 = vsub.f32 %v3670_v61, %v3686_v5  ;;  %v3671_v62 = vmul.f32 0.0078125, %v3649_v60 }
 0xd4e   :  { %v3595_v15 = vpop.xlane.xlu0 %3594  ;;  %v3778_v58 = vmul.f32 %v6197_v25, %v3730_v50  ;;  %v3801_v32 = vmul.f32 %v8437_v19, %v3781_v39  ;;  %v3820_v5 = vadd.f32 %v8452_v31, %v3800_v55 }
 0xd4f   :  { %v6199_v10 = vpop.eup %6198  ;;  %6200 = vrsqrt.f32 %v3752_v53  ;;  %v3753_v27 = vadd.f32 1e-05, %v3721_v12  ;;  %v3718_v36 = vmax.f32 %v3702_v46, 0.0  ;;  %v3703_v51 = vsub.f32 %v3671_v62, %v3687_v3  ;;  %5777 = vmatpush3.bf16.msra.mxu1 %v3847_v7 }
 0xd50   :  { %v3597_v40 = vpop.xlane.xlu1 %3596  ;;  %v3779_v49 = vmul.f32 %v6199_v10, %v3731_v35  ;;  %v3798_v45 = vmul.f32 %v8437_v19, %v3778_v58  ;;  %v3821_v9 = vadd.f32 %v8452_v31, %v3801_v32  ;;  %v8504_v60 = vmul.f32 0.0078125, %v3595_v15 }
 0xd51   :  { %6202 = vrsqrt.f32 %v3753_v27  ;;  %v3750_v56 = vadd.f32 1e-05, %v3718_v36  ;;  %v3719_v41 = vmax.f32 %v3703_v51, 0.0  ;;  %v8508_v25 = vmul.f32 0.0078125, %v3597_v40 }
 0xd52   :  { %v3591_v16 = vpop.xlane.xlu0 %3590  ;;  %v3799_v11 = vmul.f32 %v8437_v19, %v3779_v49  ;;  %v3818_v38 = vadd.f32 %v8452_v31, %v3798_v45  ;;  %v3837_v3 = vadd.f32 %v3821_v9, %v7877_v42  ;;  %v3836_v46 = vadd.f32 %v3820_v5, %v7890_v48 }
 0xd53   :  { %6204 = vrsqrt.f32 %v3750_v56  ;;  %v3751_v30 = vadd.f32 1e-05, %v3719_v41  ;;  %v8495_v59 = vmul.f32 0.0078125, %v3591_v16  ;;  %v3736_v42 = vsub.f32 %v8368_v0, %v8459_v4 }
 0xd54   :  { %v3593_v7 = vpop.xlane.xlu1 %3592  ;;  %v3819_v52 = vadd.f32 %v8452_v31, %v3799_v11  ;;  %v3834_v61 = vadd.f32 %v3818_v38, %v7871_v43  ;;  %v3737_v15 = vsub.f32 %v8371_v44, %v8463_v37  ;;  %v3849_v32 = vpack.c.bf16 %v3837_v3, %v3836_v46 }
 0xd55   :  { %6206 = vrsqrt.f32 %v3751_v30  ;;  %v8499_v1 = vmul.f32 0.0078125, %v3593_v7  ;;  %v3690_v22 = vmul.f32 %v8495_v59, %v8495_v59  ;;  %v3692_v27 = vmul.f32 %v8504_v60, %v8504_v60 }
 0xd56   :  { %v3655_v18 = vpop.xlane.xlu0 %3654  ;;  %v3835_v50 = vadd.f32 %v3819_v52, %v7874_v24  ;;  %v3734_v40 = vsub.f32 %v8375_v14, %v8470_v63  ;;  %v3693_v0 = vmul.f32 %v8508_v25, %v8508_v25  ;;  %v3735_v16 = vsub.f32 %v8379_v17, %v8472_v23 }
 0xd57   :  { %v3674_v39 = vmul.f32 0.0078125, %v3655_v18  ;;  %v3691_v43 = vmul.f32 %v8499_v1, %v8499_v1 }
 0xd58   :  { %v3657_v53 = vpop.xlane.xlu1 %3656  ;;  %v3848_v12 = vpack.c.bf16 %v3835_v50, %v3834_v61 }
 0xd59   :  { %v6201_v62 = vpop.eup %6200  ;;  %v3706_v35 = vsub.f32 %v3674_v39, %v3690_v22  ;;  %v3675_v24 = vmul.f32 0.0078125, %v3657_v53 }
 0xd5a   :  { %5778 = vmatprep.subr.bf16.mxu1 %v3848_v12  ;;  %v3659_v58 = vpop.xlane.xlu0 %3658  ;;  %v3784_v44 = vmul.f32 %v6201_v62, %v3736_v42  ;;  %v3738_v62 = vsub.f32 %v8399_v21, %v8495_v59  ;;  %v3739_v42 = vsub.f32 %v8403_v34, %v8499_v1 }
 0xd5b   :  { %v6203_v10 = vpop.eup %6202  ;;  %v3722_v48 = vmax.f32 %v3706_v35, 0.0  ;;  %v3707_v36 = vsub.f32 %v3675_v24, %v3691_v43  ;;  %v3676_v51 = vmul.f32 0.0078125, %v3659_v58  ;;  %5779 = vmatpush3.bf16.msra.mxu1 %v3848_v12 }
 0xd5c   :  { %5780 = vmatprep.subr.bf16.mxu1 %v3849_v32  ;;  %v3661_v4 = vpop.xlane.xlu1 %3660  ;;  %v3785_v37 = vmul.f32 %v6203_v10, %v3737_v15  ;;  %v3804_v5 = vmul.f32 %v8437_v19, %v3784_v44 }
 0xd5d   :  { %v6205_v49 = vpop.eup %6204  ;;  %v3754_v45 = vadd.f32 1e-05, %v3722_v48  ;;  %v3723_v55 = vmax.f32 %v3707_v36, 0.0  ;;  %v3708_v56 = vsub.f32 %v3676_v51, %v3692_v27  ;;  %v3677_v41 = vmul.f32 0.0078125, %v3661_v4 }
 0xd5e   :  { %v3782_v11 = vmul.f32 %v6205_v49, %v3734_v40  ;;  %v3805_v38 = vmul.f32 %v8437_v19, %v3785_v37  ;;  %v3824_v39 = vadd.f32 %v8452_v31, %v3804_v5  ;;  %v6064_v37 = vld [vmem:[%s8785_s5 + $0x2c0] sm:$0xff]   ;;  %v6065_v49 = vld [vmem:[%s8785_s5 + $0x2c8] sm:$0xff]  }
 0xd5f   :  { %v6207_v9 = vpop.eup %6206  ;;  %6208 = vrsqrt.f32 %v3754_v45  ;;  %v3755_v14 = vadd.f32 1e-05, %v3723_v55  ;;  %v3724_v63 = vmax.f32 %v3708_v56, 0.0  ;;  %v3709_v30 = vsub.f32 %v3677_v41, %v3693_v0  ;;  %5781 = vmatpush3.bf16.msra.mxu1 %v3849_v32  ;;  %v9096_v5 = vld [vmem:[#allocation29_spill] sm:$0xff] }
 0xd60   :  { %v3783_v7 = vmul.f32 %v6207_v9, %v3735_v16  ;;  %v3802_v52 = vmul.f32 %v8437_v19, %v3782_v11  ;;  %v3825_v23 = vadd.f32 %v8452_v31, %v3805_v38  ;;  %v3840_v35 = vadd.f32 %v3824_v39, %v7938_v20  ;;  %v9095_v38 = vld [vmem:[#allocation16_spill] sm:$0xff] }
 0xd61   :  { %6210 = vrsqrt.f32 %v3755_v14  ;;  %v3756_v18 = vadd.f32 1e-05, %v3724_v63  ;;  %v3725_v61 = vmax.f32 %v3709_v30, 0.0  ;;  %v3741_v20 = vsub.f32 %v8395_v6, %v8508_v25 }
 0xd62   :  { %v3803_v50 = vmul.f32 %v8437_v19, %v3783_v7  ;;  %v3822_v17 = vadd.f32 %v8452_v31, %v3802_v52  ;;  %v3841_v46 = vadd.f32 %v3825_v23, %v7929_v47  ;;  %v6069_v23 = vld [vmem:[%s8785_s5 + $0x2e8] sm:$0xff]  }
 0xd63   :  { %6212 = vrsqrt.f32 %v3756_v18  ;;  %v3757_v3 = vadd.f32 1e-05, %v3725_v61  ;;  %v9097_v18 = vld [vmem:[#allocation30_spill] sm:$0xff]  ;;  %v9098_v61 = vld [vmem:[#allocation24_spill] sm:$0xff] }
 0xd64   :  { %v3823_v22 = vadd.f32 %v8452_v31, %v3803_v50  ;;  %v3838_v53 = vadd.f32 %v3822_v17, %v7923_v29  ;;  %v3851_v15 = vpack.c.bf16 %v3841_v46, %v3840_v35  ;;  %v3740_v29 = vsub.f32 %v8392_v8, %v8504_v60  ;;  %v6067_v50 = vld [vmem:[%s8785_s5 + $0x2d8] sm:$0xff]   ;;  %v6068_v17 = vld [vmem:[%s8785_s5 + $0x2e0] sm:$0xff]  }
 0xd65   :  { %6214 = vrsqrt.f32 %v3757_v3  ;;  %v6070_v3 = vld [vmem:[%s8785_s5 + $0x2f0] sm:$0xff]  }
 0xd66   :  { %v3839_v12 = vadd.f32 %v3823_v22, %v7926_v57  ;;  %v6071_v22 = vld [vmem:[%s8785_s5 + $0x2f8] sm:$0xff]  }
 0xd68   :  { %v3850_v43 = vpack.c.bf16 %v3839_v12, %v3838_v53  ;;  %v8597_v53 = vld [vmem:[%s8788_s8 + $0x10] sm:$0xff] }
 0xd69   :  { %v6209_v24 = vpop.eup %6208  ;;  %v9099_v12 = vld [vmem:[#allocation10_spill] sm:$0xff] }
 0xd6a   :  { %5782 = vmatprep.subr.bf16.mxu1 %v3850_v43  ;;  %v3786_v58 = vmul.f32 %v6209_v24, %v3738_v62  ;;  %v3959_v46 = vrot.slane %v8597_v53, %v9099_v12 }
 0xd6b   :  { %v6211_v32 = vpop.eup %6210  ;;  %5783 = vmatpush3.bf16.msra.mxu1 %v3850_v43 }
 0xd6c   :  { %5784 = vmatprep.subr.bf16.mxu1 %v3851_v15  ;;  %v3787_v57 = vmul.f32 %v6211_v32, %v3739_v42  ;;  %v3806_v47 = vmul.f32 %v8437_v19, %v3786_v58 }
 0xd6d   :  { %v6213_v21 = vpop.eup %6212 }
 0xd6e   :  { %v3807_v59 = vmul.f32 %v8437_v19, %v3787_v57  ;;  %v3826_v34 = vadd.f32 %v8452_v31, %v3806_v47  ;;  %v3788_v1 = vmul.f32 %v6213_v21, %v3740_v29 }
 0xd6f   :  { %v6215_v10 = vpop.eup %6214  ;;  %5785 = vmatpush3.bf16.msra.mxu1 %v3851_v15 }
 0xd70   :  { %v3827_v27 = vadd.f32 %v8452_v31, %v3807_v59  ;;  %v3789_v48 = vmul.f32 %v6215_v10, %v3741_v20  ;;  %v3808_v8 = vmul.f32 %v8437_v19, %v3788_v1  ;;  %v3842_v60 = vadd.f32 %v3826_v34, %v7960_v2 }
 0xd72   :  { %v3843_v36 = vadd.f32 %v3827_v27, %v7963_v33  ;;  %v3809_v51 = vmul.f32 %v8437_v19, %v3789_v48  ;;  %v3828_v6 = vadd.f32 %v8452_v31, %v3808_v8 }
 0xd74   :  { %v3852_v25 = vpack.c.bf16 %v3843_v36, %v3842_v60  ;;  %v3829_v40 = vadd.f32 %v8452_v31, %v3809_v51  ;;  %v3844_v0 = vadd.f32 %v3828_v6, %v7978_v26  ;;  %v6061_v31 = vld [vmem:[#allocation4 + $0xb0] sm:$0xff]   ;;  %v6062_v26 = vld [vmem:[#allocation4 + $0xf8] sm:$0xff]  }
 0xd75   :  { %5359 = vmatpush3.bf16.msra.mxu0 %v6061_v31 }
 0xd76   :  { %5786 = vmatprep.subr.bf16.mxu1 %v3852_v25  ;;  %v3845_v4 = vadd.f32 %v3829_v40, %v7981_v13  ;;  %v6063_v13 = vld [vmem:[#allocation4 + $0xb8] sm:$0xff]   ;;  %5360 = vmatprep.subr.bf16.mxu0 %v6062_v26 }
 0xd77   :  { %5787 = vmatpush3.bf16.msra.mxu1 %v3852_v25 }
 0xd78   :  { %v3853_v44 = vpack.c.bf16 %v3845_v4, %v3844_v0 }
 0xd79   :  { %5361 = vmatpush3.bf16.msra.mxu0 %v6063_v13 }
 0xd7a   :  { %5788 = vmatprep.subr.bf16.mxu1 %v3853_v44 }
 0xd7b   :  { %5789 = vmatpush3.bf16.msra.mxu1 %v3853_v44 }
 0xd7c   :  { %5798 = vmatprep.subr.bf16.mxu1 %v6064_v37 }
 0xd7e   :  { %5791 = vmatmul.mubr.msk.bf16.vlgmr.msra.gmra.mrb[88].mxu1 %vm7994_vm15, %v9024_v28 }
 0xd7f   :  { %5794 = vmatprep.mubr.msk.bf16.mxu1 %vm7998_vm0, %v9024_v28  ;;  %5799 = vmatpush3.bf16.msra.mxu1 %v6064_v37 }
 0xd80   :  { %5800 = vmatprep.subr.bf16.mxu1 %v6065_v49 }
 0xd83   :  { %5801 = vmatpush3.bf16.msra.mxu1 %v6065_v49 }
 0xd86   :  { %5795 = vmatmul.mubr.msk.bf16.gmra.mrb[92].mxu1 %vm8012_vm7, %v9024_v28  ;;  %v6066_v28 = vld [vmem:[%s8785_s5 + $0x2d0] sm:$0xff]  }
 0xd87   :  { %5802 = vmatprep.subr.bf16.mxu1 %v6066_v28 }
 0xd88   :  { %5803 = vmatpush3.bf16.msra.mxu1 %v6066_v28 }
 0xd89   :  { %5804 = vmatprep.subr.bf16.mxu1 %v6067_v50 }
 0xd8c   :  { %5805 = vmatpush3.bf16.msra.mxu1 %v6067_v50 }
 0xd8d   :  { %5806 = vmatprep.subr.bf16.mxu1 %v6068_v17 }
 0xd90   :  { %5807 = vmatpush3.bf16.msra.mxu1 %v6068_v17 }
 0xd91   :  { %5808 = vmatprep.subr.bf16.mxu1 %v6069_v23 }
 0xd94   :  { %5809 = vmatpush3.bf16.msra.mxu1 %v6069_v23 }
 0xd95   :  { %5810 = vmatprep.subr.bf16.mxu1 %v6070_v3 }
 0xd98   :  { %5811 = vmatpush3.bf16.msra.mxu1 %v6070_v3 }
 0xd99   :  { %5812 = vmatprep.subr.bf16.mxu1 %v6071_v22 }
 0xd9c   :  { %5813 = vmatpush3.bf16.msra.mxu1 %v6071_v22 }
 0xe51   :  { %v5792_v45 = vpop.f32.mrb[88].mxu1 }
 0xe52   :  { %v3888_v55 = vpop.f32.mrb[89].mxu1 }
 0xe53   :  { %v5793_v56 = vpop.f32.mrb[90].mxu1 }
 0xe54   :  { %v3920_v41 = vpack.c.bf16 %v5793_v56, %v5792_v45  ;;  %v3891_v16 = vpop.f32.mrb[91].mxu1 }
 0xe55   :  { %v3919_v11 = vpack.c.bf16 %v3891_v16, %v3888_v55 }
 0xe57   :  { %4088 = vmatprep.mubr.bf16.mxu0 %v3919_v11  ;;  %v9100_v11 = vld [vmem:[#allocation12_spill] sm:$0xff] }
 0xe58   :  { %4089 = vmatmul.mubr.bf16.vlgmr.msra.gmra.mrb[88].mxu0 %v9095_v38  ;;  %v4153_v38 = vrot.slane %v8597_v53, %v9100_v11 }
 0xe59   :  { %4096 = vmatprep.mubr.bf16.mxu0 %v3920_v41  ;;  %v5796_v9 = vpop.f32.mrb[92].mxu1 }
 0xe5a   :  { %v3904_v14 = vpop.f32.mrb[93].mxu1 }
 0xe5b   :  { %v5797_v63 = vpop.f32.mrb[94].mxu1 }
 0xe5c   :  { %v3922_v30 = vpack.c.bf16 %v5797_v63, %v5796_v9  ;;  %v3907_v7 = vpop.f32.mrb[95].mxu1 }
 0xe5d   :  { %v3921_v52 = vpack.c.bf16 %v3907_v7, %v3904_v14 }
 0xe60   :  { %4097 = vmatmul.mubr.bf16.gmra.mrb[92].mxu0 %v9096_v5 }
 0xe61   :  { %4104 = vmatprep.mubr.bf16.mxu0 %v3921_v52 }
 0xe68   :  { %4105 = vmatmul.mubr.bf16.gmra.mrb[96].mxu0 %v9097_v18 }
 0xe69   :  { %4112 = vmatprep.mubr.bf16.mxu0 %v3922_v30 }
 0xe70   :  { %4113 = vmatmul.mubr.bf16.gmra.mrb[100].mxu0 %v9098_v61 }
 0xf2b   :  { %v5362_v39 = vpop.f32.mrb[88].mxu0 }
 0xf2c   :  { %v5363_v62 = vpop.f32.mrb[89].mxu0 }
 0xf2d   :  { %v5364_v43 = vadd.f32 %v5363_v62, %v5362_v39  ;;  %v5365_v35 = vpop.f32.mrb[90].mxu0 }
 0xf2e   :  { %v5366_v24 = vpop.f32.mrb[91].mxu0 }
 0xf2f   :  { %v4091_v42 = vadd.f32 %v5364_v43, %v3959_v46  ;;  %v5367_v15 = vadd.f32 %v5366_v24, %v5365_v35 }
 0xf31   :  { %v4094_v58 = vadd.f32 %v5367_v15, %v3959_v46  ;;  %v4121_v32 = vmax.f32 %v4091_v42, 0.0 }
 0xf33   :  { %v4122_v29 = vmax.f32 %v4094_v58, 0.0  ;;  %v5368_v57 = vpop.f32.mrb[92].mxu0 }
 0xf34   :  { %v5369_v47 = vpop.f32.mrb[93].mxu0 }
 0xf35   :  { %v5370_v21 = vadd.f32 %v5369_v47, %v5368_v57  ;;  %v5371_v20 = vpop.f32.mrb[94].mxu0  ;;  %v4129_v59 = vpack.c.bf16 %v4122_v29, %v4121_v32  ;;  %v6072_v32 = vld [vmem:[%s8785_s5 + $0x100] sm:$0xff]   ;;  %v6073_v29 = vld [vmem:[%s8785_s5 + $0x108] sm:$0xff]   ;;  %v6074_v57 = vld [vmem:[%s8785_s5 + $0x110] sm:$0xff]  }
 0xf36   :  { %v5372_v34 = vpop.f32.mrb[95].mxu0  ;;  %5822 = vmatprep.subr.bf16.mxu0 %v6072_v32  ;;  %v6075_v47 = vld [vmem:[%s8785_s5 + $0x118] sm:$0xff]  }
 0xf37   :  { %v4099_v1 = vadd.f32 %v5370_v21, %v3959_v46  ;;  %v5373_v10 = vadd.f32 %v5372_v34, %v5371_v20  ;;  %5814 = vmatprep.mubr.bf16.mxu1 %v4129_v59  ;;  %5823 = vmatpush3.bf16.msra.mxu0 %v6072_v32  ;;  %v6076_v21 = vld [vmem:[%s8785_s5 + $0x120] sm:$0xff]   ;;  %v6077_v20 = vld [vmem:[%s8785_s5 + $0x128] sm:$0xff]   ;;  %v6078_v59 = vld [vmem:[%s8785_s5 + $0x130] sm:$0xff]  }
 0xf38   :  { %5824 = vmatprep.subr.bf16.mxu0 %v6073_v29  ;;  %v6079_v34 = vld [vmem:[%s8785_s5 + $0x138] sm:$0xff]  }
 0xf39   :  { %v4102_v27 = vadd.f32 %v5373_v10, %v3959_v46  ;;  %v4123_v48 = vmax.f32 %v4099_v1, 0.0  ;;  %v6080_v1 = vld [vmem:[%s8785_s5 + $0x140] sm:$0xff]   ;;  %v6081_v10 = vld [vmem:[%s8785_s5 + $0x148] sm:$0xff]  }
 0xf3a   :  { %5846 = vmatprep.subr.bf16.mxu1 %v6080_v1 }
 0xf3b   :  { %v4124_v8 = vmax.f32 %v4102_v27, 0.0  ;;  %v5374_v60 = vpop.f32.mrb[96].mxu0  ;;  %5825 = vmatpush3.bf16.msra.mxu0 %v6073_v29  ;;  %v6082_v27 = vld [vmem:[%s8785_s5 + $0x150] sm:$0xff]  }
 0xf3c   :  { %v5375_v36 = vpop.f32.mrb[97].mxu0  ;;  %5826 = vmatprep.subr.bf16.mxu0 %v6074_v57 }
 0xf3d   :  { %v4130_v51 = vpack.c.bf16 %v4124_v8, %v4123_v48  ;;  %v5376_v6 = vadd.f32 %v5375_v36, %v5374_v60  ;;  %v5377_v25 = vpop.f32.mrb[98].mxu0  ;;  %v6083_v48 = vld [vmem:[%s8785_s5 + $0x158] sm:$0xff]   ;;  %v6084_v8 = vld [vmem:[%s8785_s5 + $0x160] sm:$0xff]   ;;  %v6085_v60 = vld [vmem:[%s8785_s5 + $0x168] sm:$0xff]  }
 0xf3e   :  { %v5378_v40 = vpop.f32.mrb[99].mxu0 }
 0xf3f   :  { %v4107_v0 = vadd.f32 %v5376_v6, %v3959_v46  ;;  %v5379_v4 = vadd.f32 %v5378_v40, %v5377_v25  ;;  %5815 = vmatmul.mubr.bf16.vlgmr.msra.gmra.mrb[96].mxu1 %v4130_v51  ;;  %5827 = vmatpush3.bf16.msra.mxu0 %v6074_v57 }
 0xf40   :  { %5828 = vmatprep.subr.bf16.mxu0 %v6075_v47  ;;  %5847 = vmatpush3.bf16.msra.mxu1 %v6080_v1 }
 0xf41   :  { %v4110_v44 = vadd.f32 %v5379_v4, %v3959_v46  ;;  %v4125_v2 = vmax.f32 %v4107_v0, 0.0  ;;  %5848 = vmatprep.subr.bf16.mxu1 %v6081_v10 }
 0xf43   :  { %v4126_v33 = vmax.f32 %v4110_v44, 0.0  ;;  %v5380_v19 = vpop.f32.mrb[100].mxu0  ;;  %5829 = vmatpush3.bf16.msra.mxu0 %v6075_v47 }
 0xf44   :  { %v5381_v31 = vpop.f32.mrb[101].mxu0  ;;  %5830 = vmatprep.subr.bf16.mxu0 %v6076_v21  ;;  %5849 = vmatpush3.bf16.msra.mxu1 %v6081_v10 }
 0xf45   :  { %v5382_v26 = vadd.f32 %v5381_v31, %v5380_v19  ;;  %v5383_v13 = vpop.f32.mrb[102].mxu0  ;;  %v4131_v37 = vpack.c.bf16 %v4126_v33, %v4125_v2  ;;  %5850 = vmatprep.subr.bf16.mxu1 %v6082_v27 }
 0xf46   :  { %v5384_v49 = vpop.f32.mrb[103].mxu0 }
 0xf47   :  { %v4115_v28 = vadd.f32 %v5382_v26, %v3959_v46  ;;  %v5385_v45 = vadd.f32 %v5384_v49, %v5383_v13  ;;  %5818 = vmatprep.mubr.bf16.mxu1 %v4131_v37  ;;  %5831 = vmatpush3.bf16.msra.mxu0 %v6076_v21 }
 0xf48   :  { %5832 = vmatprep.subr.bf16.mxu0 %v6077_v20  ;;  %5851 = vmatpush3.bf16.msra.mxu1 %v6082_v27  ;;  %v9101_v27 = vld [vmem:[#allocation47_spill] sm:$0xff] }
 0xf49   :  { %v4118_v55 = vadd.f32 %v5385_v45, %v3959_v46  ;;  %v4127_v56 = vmax.f32 %v4115_v28, 0.0  ;;  %5852 = vmatprep.subr.bf16.mxu1 %v6083_v48 }
 0xf4b   :  { %v4128_v41 = vmax.f32 %v4118_v55, 0.0  ;;  %5833 = vmatpush3.bf16.msra.mxu0 %v6077_v20 }
 0xf4c   :  { %5834 = vmatprep.subr.bf16.mxu0 %v6078_v59  ;;  %5853 = vmatpush3.bf16.msra.mxu1 %v6083_v48  ;;  %v8709_v48 = vrot.slane %v8597_v53, %v9101_v27 }
 0xf4d   :  { %v4132_v16 = vpack.c.bf16 %v4128_v41, %v4127_v56  ;;  %5854 = vmatprep.subr.bf16.mxu1 %v6084_v8 }
 0xf4f   :  { %5819 = vmatmul.mubr.bf16.gmra.mrb[100].mxu1 %v4132_v16  ;;  %5835 = vmatpush3.bf16.msra.mxu0 %v6078_v59 }
 0xf50   :  { %5836 = vmatprep.subr.bf16.mxu0 %v6079_v34  ;;  %5855 = vmatpush3.bf16.msra.mxu1 %v6084_v8 }
 0xf51   :  { %5856 = vmatprep.subr.bf16.mxu1 %v6085_v60 }
 0xf53   :  { %5837 = vmatpush3.bf16.msra.mxu0 %v6079_v34 }
 0xf54   :  { %5857 = vmatpush3.bf16.msra.mxu1 %v6085_v60 }
0x1012   :  { %v5816_v9 = vpop.f32.mrb[96].mxu1 }
0x1013   :  { %v8603_v14 = vadd.f32 %v5816_v9, %v4153_v38  ;;  %v4236_v63 = vpop.f32.mrb[97].mxu1 }
0x1014   :  { %v5817_v30 = vpop.f32.mrb[98].mxu1  ;;  %v8608_v5 = vadd.f32 %v4236_v63, %v4153_v38 }
0x1015   :  { %v8605_v7 = vadd.f32 %v5817_v30, %v4153_v38  ;;  %4271 = vadd.xlane.f32.xlu0 %v8603_v14  ;;  %v4239_v52 = vpop.f32.mrb[99].mxu1  ;;  %v4293_v61 = vmul.f32 %v8603_v14, %v8603_v14 }
0x1016   :  { %v8611_v18 = vadd.f32 %v4239_v52, %v4153_v38  ;;  %v4291_v17 = vmul.f32 %v8608_v5, %v8608_v5 }
0x1017   :  { %4273 = vadd.xlane.f32.xlu1 %v8605_v7  ;;  %v4294_v50 = vmul.f32 %v8605_v7, %v8605_v7 }
0x1018   :  { %v4292_v23 = vmul.f32 %v8611_v18, %v8611_v18 }
0x1019   :  { %4267 = vadd.xlane.f32.xlu0 %v8608_v5 }
0x101b   :  { %4269 = vadd.xlane.f32.xlu1 %v8611_v18 }
0x101d   :  { %4303 = vadd.xlane.f32.xlu0 %v4293_v61 }
0x101f   :  { %4305 = vadd.xlane.f32.xlu1 %v4294_v50 }
0x1021   :  { %4299 = vadd.xlane.f32.xlu0 %v4291_v17 }
0x1022   :  { %v5820_v3 = vpop.f32.mrb[100].mxu1 }
0x1023   :  { %v8623_v22 = vadd.f32 %v5820_v3, %v4153_v38  ;;  %4301 = vadd.xlane.f32.xlu1 %v4292_v23  ;;  %v4252_v39 = vpop.f32.mrb[101].mxu1 }
0x1024   :  { %v5821_v12 = vpop.f32.mrb[102].mxu1  ;;  %v8628_v43 = vadd.f32 %v4252_v39, %v4153_v38 }
0x1025   :  { %v8625_v46 = vadd.f32 %v5821_v12, %v4153_v38  ;;  %4279 = vadd.xlane.f32.xlu0 %v8623_v22  ;;  %v4255_v62 = vpop.f32.mrb[103].mxu1  ;;  %v4297_v15 = vmul.f32 %v8623_v22, %v8623_v22 }
0x1026   :  { %v8631_v35 = vadd.f32 %v4255_v62, %v4153_v38  ;;  %v4295_v24 = vmul.f32 %v8628_v43, %v8628_v43 }
0x1027   :  { %4281 = vadd.xlane.f32.xlu1 %v8625_v46  ;;  %v4298_v58 = vmul.f32 %v8625_v46, %v8625_v46 }
0x1028   :  { %v4296_v42 = vmul.f32 %v8631_v35, %v8631_v35 }
0x1029   :  { %4275 = vadd.xlane.f32.xlu0 %v8628_v43 }
0x102b   :  { %4277 = vadd.xlane.f32.xlu1 %v8631_v35 }
0x102d   :  { %4307 = vadd.xlane.f32.xlu0 %v4295_v24 }
0x102f   :  { %4309 = vadd.xlane.f32.xlu1 %v4296_v42 }
0x1031   :  { %4311 = vadd.xlane.f32.xlu0 %v4297_v15 }
0x1033   :  { %4313 = vadd.xlane.f32.xlu1 %v4298_v58 }
0x10a2   :  { %v4272_v36 = vpop.xlane.xlu0 %4271 }
0x10a3   :  { %v4285_v25 = vmul.f32 0.0078125, %v4272_v36 }
0x10a4   :  { %v4274_v51 = vpop.xlane.xlu1 %4273 }
0x10a5   :  { %v4286_v0 = vmul.f32 0.0078125, %v4274_v51  ;;  %v4325_v44 = vmul.f32 %v4285_v25, %v4285_v25  ;;  %v4349_v57 = vsub.f32 %v8603_v14, %v4285_v25 }
0x10a6   :  { %v4268_v6 = vpop.xlane.xlu0 %4267 }
0x10a7   :  { %v8685_v2 = vmul.f32 0.0078125, %v4268_v6  ;;  %v4326_v26 = vmul.f32 %v4286_v0, %v4286_v0  ;;  %v4350_v10 = vsub.f32 %v8605_v7, %v4286_v0 }
0x10a8   :  { %v4270_v40 = vpop.xlane.xlu1 %4269 }
0x10a9   :  { %v8687_v19 = vmul.f32 0.0078125, %v4270_v40  ;;  %v4323_v28 = vmul.f32 %v8685_v2, %v8685_v2  ;;  %v4347_v40 = vsub.f32 %v8608_v5, %v8685_v2 }
0x10aa   :  { %v4304_v4 = vpop.xlane.xlu0 %4303 }
0x10ab   :  { %v4317_v33 = vmul.f32 0.0078125, %v4304_v4  ;;  %v4324_v41 = vmul.f32 %v8687_v19, %v8687_v19 }
0x10ac   :  { %v4306_v31 = vpop.xlane.xlu1 %4305 }
0x10ad   :  { %v4333_v13 = vsub.f32 %v4317_v33, %v4325_v44  ;;  %v4318_v37 = vmul.f32 0.0078125, %v4306_v31  ;;  %v4394_v44 = vrot.slane %v8597_v53, %v9091_v54 }
0x10ae   :  { %v4300_v49 = vpop.xlane.xlu0 %4299 }
0x10af   :  { %v4341_v45 = vmax.f32 %v4333_v13, 0.0  ;;  %v4334_v55 = vsub.f32 %v4318_v37, %v4326_v26  ;;  %v4315_v56 = vmul.f32 0.0078125, %v4300_v49  ;;  %v4348_v49 = vsub.f32 %v8611_v18, %v8687_v19 }
0x10b0   :  { %v4302_v16 = vpop.xlane.xlu1 %4301 }
0x10b1   :  { %v4357_v11 = vadd.f32 1e-05, %v4341_v45  ;;  %v4342_v38 = vmax.f32 %v4334_v55, 0.0  ;;  %v4331_v9 = vsub.f32 %v4315_v56, %v4323_v28  ;;  %v4316_v63 = vmul.f32 0.0078125, %v4302_v16 }
0x10b2   :  { %v4280_v30 = vpop.xlane.xlu0 %4279 }
0x10b3   :  { %6216 = vrsqrt.f32 %v4357_v11  ;;  %v4358_v52 = vadd.f32 1e-05, %v4342_v38  ;;  %v4339_v61 = vmax.f32 %v4331_v9, 0.0  ;;  %v4332_v50 = vsub.f32 %v4316_v63, %v4324_v41 }
0x10b4   :  { %v4282_v17 = vpop.xlane.xlu1 %4281  ;;  %v8697_v58 = vmul.f32 0.0078125, %v4280_v30 }
0x10b5   :  { %6218 = vrsqrt.f32 %v4358_v52  ;;  %v4355_v23 = vadd.f32 1e-05, %v4339_v61  ;;  %v4340_v3 = vmax.f32 %v4332_v50, 0.0  ;;  %v8702_v47 = vmul.f32 0.0078125, %v4282_v17  ;;  %v9102_v52 = vld [vmem:[#allocation23_spill] sm:$0xff]  ;;  %v9103_v50 = vld [vmem:[#allocation17_spill] sm:$0xff] }
0x10b6   :  { %v4276_v39 = vpop.xlane.xlu0 %4275  ;;  %v4329_v14 = vmul.f32 %v8697_v58, %v8697_v58 }
0x10b7   :  { %6220 = vrsqrt.f32 %v4355_v23  ;;  %v4356_v12 = vadd.f32 1e-05, %v4340_v3  ;;  %v8693_v62 = vmul.f32 0.0078125, %v4276_v39  ;;  %v4330_v7 = vmul.f32 %v8702_v47, %v8702_v47  ;;  %v9104_v23 = vld [vmem:[#allocation20_spill] sm:$0xff]  ;;  %v9105_v39 = vld [vmem:[#allocation25_spill] sm:$0xff] }
0x10b8   :  { %v4278_v24 = vpop.xlane.xlu1 %4277 }
0x10b9   :  { %6222 = vrsqrt.f32 %v4356_v12  ;;  %v8695_v42 = vmul.f32 0.0078125, %v4278_v24  ;;  %v4327_v32 = vmul.f32 %v8693_v62, %v8693_v62  ;;  %v4351_v24 = vsub.f32 %v8628_v43, %v8693_v62 }
0x10ba   :  { %v4308_v15 = vpop.xlane.xlu0 %4307  ;;  %v4354_v43 = vsub.f32 %v8625_v46, %v8702_v47  ;;  %v9108_v46 = vld [vmem:[#allocation34_spill] sm:$0xff] }
0x10bb   :  { %v4319_v29 = vmul.f32 0.0078125, %v4308_v15  ;;  %v4328_v59 = vmul.f32 %v8695_v42, %v8695_v42 }
0x10bc   :  { %v4310_v21 = vpop.xlane.xlu1 %4309 }
0x10bd   :  { %v6217_v20 = vpop.eup %6216  ;;  %v4335_v34 = vsub.f32 %v4319_v29, %v4327_v32  ;;  %v4320_v1 = vmul.f32 0.0078125, %v4310_v21 }
0x10be   :  { %v4373_v8 = vmul.f32 %v6217_v20, %v4349_v57  ;;  %v4312_v60 = vpop.xlane.xlu0 %4311  ;;  %v4352_v57 = vsub.f32 %v8631_v35, %v8695_v42 }
0x10bf   :  { %v6219_v36 = vpop.eup %6218  ;;  %v4343_v51 = vmax.f32 %v4335_v34, 0.0  ;;  %v4336_v6 = vsub.f32 %v4320_v1, %v4328_v59  ;;  %v4321_v25 = vmul.f32 0.0078125, %v4312_v60  ;;  %v4353_v59 = vsub.f32 %v8623_v22, %v8697_v58 }
0x10c0   :  { %v4374_v4 = vmul.f32 %v6219_v36, %v4350_v10  ;;  %v4314_v0 = vpop.xlane.xlu1 %4313  ;;  %v4385_v28 = vmul.f32 %v8709_v48, %v4373_v8 }
0x10c1   :  { %v6221_v33 = vpop.eup %6220  ;;  %v4359_v31 = vadd.f32 1e-05, %v4343_v51  ;;  %v4344_v26 = vmax.f32 %v4336_v6, 0.0  ;;  %v4337_v13 = vsub.f32 %v4321_v25, %v4329_v14  ;;  %v4322_v37 = vmul.f32 0.0078125, %v4314_v0  ;;  %v9106_v14 = vld [vmem:[#allocation22_spill] sm:$0xff]  ;;  %v9107_v6 = vld [vmem:[#allocation31_spill] sm:$0xff] }
0x10c2   :  { %v4386_v5 = vmul.f32 %v8709_v48, %v4374_v4  ;;  %v4371_v2 = vmul.f32 %v6221_v33, %v4347_v40  ;;  %v4397_v63 = vadd.f32 %v4394_v44, %v4385_v28 }
0x10c3   :  { %v6223_v45 = vpop.eup %6222  ;;  %6224 = vrsqrt.f32 %v4359_v31  ;;  %v4360_v55 = vadd.f32 1e-05, %v4344_v26  ;;  %v4345_v56 = vmax.f32 %v4337_v13, 0.0  ;;  %v4338_v41 = vsub.f32 %v4322_v37, %v4330_v7  ;;  %v9109_v7 = vld [vmem:[#allocation8_spill] sm:$0xff]  ;;  %v6086_v31 = vld [vmem:[%s8785_s5 + $0x170] sm:$0xff]   ;;  %v9110_v26 = vld [vmem:[#allocation9_spill] sm:$0xff] }
0x10c4   :  { %v4372_v16 = vmul.f32 %v6223_v45, %v4348_v49  ;;  %v4383_v54 = vmul.f32 %v8709_v48, %v4371_v2  ;;  %v4398_v38 = vadd.f32 %v4394_v44, %v4386_v5  ;;  %v4405_v12 = vadd.f32 %v4397_v63, %v9105_v39  ;;  %5858 = vmatprep.subr.bf16.mxu1 %v6086_v31 }
0x10c5   :  { %6226 = vrsqrt.f32 %v4360_v55  ;;  %v4361_v53 = vadd.f32 1e-05, %v4345_v56  ;;  %v4346_v11 = vmax.f32 %v4338_v41, 0.0  ;;  %5859 = vmatpush3.bf16.msra.mxu1 %v6086_v31 }
0x10c6   :  { %v4384_v9 = vmul.f32 %v8709_v48, %v4372_v16  ;;  %v4395_v18 = vadd.f32 %v4394_v44, %v4383_v54  ;;  %v4406_v61 = vadd.f32 %v4398_v38, %v9102_v52 }
0x10c7   :  { %6228 = vrsqrt.f32 %v4361_v53  ;;  %v4362_v19 = vadd.f32 1e-05, %v4346_v11 }
0x10c8   :  { %v4396_v30 = vadd.f32 %v4394_v44, %v4384_v9  ;;  %v4403_v17 = vadd.f32 %v4395_v18, %v9103_v50  ;;  %v4412_v29 = vpack.c.bf16 %v4406_v61, %v4405_v12 }
0x10c9   :  { %6230 = vrsqrt.f32 %v4362_v19 }
0x10ca   :  { %v4404_v3 = vadd.f32 %v4396_v30, %v9104_v23 }
0x10cc   :  { %v4411_v15 = vpack.c.bf16 %v4404_v3, %v4403_v17 }
0x10cd   :  { %v6225_v32 = vpop.eup %6224 }
0x10ce   :  { %5838 = vmatprep.mubr.bf16.mxu0 %v4411_v15  ;;  %v4375_v21 = vmul.f32 %v6225_v32, %v4351_v24  ;;  %v9111_v15 = vld [vmem:[#allocation11_spill] sm:$0xff] }
0x10cf   :  { %v6227_v20 = vpop.eup %6226  ;;  %5839 = vmatmul.mubr.bf16.vlgmr.msra.gmra.mrb[104].mxu0 %v4412_v29 }
0x10d0   :  { %v4376_v34 = vmul.f32 %v6227_v20, %v4352_v57  ;;  %v4387_v1 = vmul.f32 %v8709_v48, %v4375_v21 }
0x10d1   :  { %v6229_v10 = vpop.eup %6228 }
0x10d2   :  { %v4388_v62 = vmul.f32 %v8709_v48, %v4376_v34  ;;  %v4399_v27 = vadd.f32 %v4394_v44, %v4387_v1  ;;  %v4377_v8 = vmul.f32 %v6229_v10, %v4353_v59 }
0x10d3   :  { %v6231_v60 = vpop.eup %6230 }
0x10d4   :  { %v4400_v35 = vadd.f32 %v4394_v44, %v4388_v62  ;;  %v4378_v42 = vmul.f32 %v6231_v60, %v4354_v43  ;;  %v4389_v36 = vmul.f32 %v8709_v48, %v4377_v8  ;;  %v4407_v51 = vadd.f32 %v4399_v27, %v9106_v14 }
0x10d6   :  { %v4408_v22 = vadd.f32 %v4400_v35, %v9107_v6  ;;  %v4390_v58 = vmul.f32 %v8709_v48, %v4378_v42  ;;  %v4401_v25 = vadd.f32 %v4394_v44, %v4389_v36  ;;  %v6087_v48 = vld [vmem:[%s8785_s5 + $0x178] sm:$0xff]  }
0x10d7   :  { %5860 = vmatprep.subr.bf16.mxu1 %v6087_v48 }
0x10d8   :  { %v4413_v40 = vpack.c.bf16 %v4408_v22, %v4407_v51  ;;  %v4402_v4 = vadd.f32 %v4394_v44, %v4390_v58  ;;  %v4409_v47 = vadd.f32 %v4401_v25, %v9108_v46  ;;  %5861 = vmatpush3.bf16.msra.mxu1 %v6087_v48  ;;  %v64_v44 = vld [vmem:[%s8788_s8 + $0x18] sm:$0x3] }
0x10d9   :  { %v4452_v13 = vrot.slane %v64_v44, %v9110_v26  ;;  %v4581_v32 = vrot.slane %v64_v44, %v9111_v15 }
0x10da   :  { %5842 = vmatprep.mubr.bf16.mxu0 %v4413_v40  ;;  %v4410_v0 = vadd.f32 %v4402_v4, %v9109_v7 }
0x10dc   :  { %v4414_v33 = vpack.c.bf16 %v4410_v0, %v4409_v47 }
0x10de   :  { %5843 = vmatmul.mubr.bf16.gmra.mrb[108].mxu0 %v4414_v33 }
0x11a2   :  { %v5840_v37 = vpop.f32.mrb[104].mxu0 }
0x11a3   :  { %v4544_v49 = vadd.f32 %v5840_v37, %v4452_v13  ;;  %v4535_v28 = vpop.f32.mrb[105].mxu0 }
0x11a4   :  { %v4536_v5 = vadd.f32 %v4535_v28, %v4452_v13  ;;  %v5841_v2 = vpop.f32.mrb[106].mxu0 }
0x11a5   :  { %v4547_v45 = vadd.f32 %v5841_v2, %v4452_v13  ;;  %v4538_v55 = vpop.f32.mrb[107].mxu0  ;;  %v4568_v41 = vmax.f32 %v4544_v49, 0.0 }
0x11a6   :  { %v4539_v56 = vadd.f32 %v4538_v55, %v4452_v13  ;;  %v4566_v54 = vmax.f32 %v4536_v5, 0.0 }
0x11a7   :  { %v4569_v16 = vmax.f32 %v4547_v45, 0.0 }
0x11a8   :  { %v4567_v53 = vmax.f32 %v4539_v56, 0.0 }
0x11a9   :  { %v4575_v11 = vpack.c.bf16 %v4569_v16, %v4568_v41 }
0x11aa   :  { %v4574_v38 = vpack.c.bf16 %v4567_v53, %v4566_v54 }
0x11ac   :  { %5862 = vmatprep.mubr.bf16.mxu1 %v4574_v38 }
0x11ad   :  { %5863 = vmatmul.mubr.bf16.vlgmr.msra.gmra.mrb[104].mxu1 %v4575_v11 }
0x11b1   :  { %v5844_v9 = vpop.f32.mrb[108].mxu0 }
0x11b2   :  { %v4560_v18 = vadd.f32 %v5844_v9, %v4452_v13  ;;  %v4551_v19 = vpop.f32.mrb[109].mxu0 }
0x11b3   :  { %v4552_v63 = vadd.f32 %v4551_v19, %v4452_v13  ;;  %v5845_v30 = vpop.f32.mrb[110].mxu0 }
0x11b4   :  { %v4563_v52 = vadd.f32 %v5845_v30, %v4452_v13  ;;  %v4554_v61 = vpop.f32.mrb[111].mxu0  ;;  %v4572_v17 = vmax.f32 %v4560_v18, 0.0 }
0x11b5   :  { %v4555_v50 = vadd.f32 %v4554_v61, %v4452_v13  ;;  %v4570_v3 = vmax.f32 %v4552_v63, 0.0 }
0x11b6   :  { %v4573_v23 = vmax.f32 %v4563_v52, 0.0 }
0x11b7   :  { %v4571_v39 = vmax.f32 %v4555_v50, 0.0 }
0x11b8   :  { %v4577_v12 = vpack.c.bf16 %v4573_v23, %v4572_v17 }
0x11b9   :  { %v4576_v24 = vpack.c.bf16 %v4571_v39, %v4570_v3 }
0x11bb   :  { %5866 = vmatprep.mubr.bf16.mxu1 %v4576_v24 }
0x11bc   :  { %5867 = vmatmul.mubr.bf16.gmra.mrb[108].mxu1 %v4577_v12 }
0x1280   :  { %v5864_v29 = vpop.f32.mrb[104].mxu1 }
0x1281   :  { %v4673_v57 = vadd.f32 %v5864_v29, %v4581_v32  ;;  %v4664_v21 = vpop.f32.mrb[105].mxu1 }
0x1282   :  { %v4665_v20 = vadd.f32 %v4664_v21, %v4581_v32  ;;  %v5865_v59 = vpop.f32.mrb[106].mxu1 }
0x1283   :  { %4697 = vst [vmem:[%s8789_s9 + $0x10] sm:$0xff] %v4673_v57  ;;  %v4676_v34 = vadd.f32 %v5865_v59, %v4581_v32  ;;  %v4667_v1 = vpop.f32.mrb[107].mxu1 }
0x1284   :  { %4695 = vst [vmem:[%s8789_s9] sm:$0xff] %v4665_v20  ;;  %v4668_v10 = vadd.f32 %v4667_v1, %v4581_v32 }
0x1285   :  { %4698 = vst [vmem:[%s8789_s9 + $0x18] sm:$0xff] %v4676_v34 }
0x1286   :  { %4696 = vst [vmem:[%s8789_s9 + $0x8] sm:$0xff] %v4668_v10 }
0x128f   :  { %v5868_v43 = vpop.f32.mrb[108].mxu1 }
0x1290   :  { %v4689_v62 = vadd.f32 %v5868_v43, %v4581_v32  ;;  %v4680_v27 = vpop.f32.mrb[109].mxu1 }
0x1291   :  { %v4681_v8 = vadd.f32 %v4680_v27, %v4581_v32  ;;  %v5869_v60 = vpop.f32.mrb[110].mxu1 }
0x1292   :  { %4701 = vst [vmem:[%s8789_s9 + $0x30] sm:$0xff] %v4689_v62  ;;  %v4692_v35 = vadd.f32 %v5869_v60, %v4581_v32  ;;  %v4683_v42 = vpop.f32.mrb[111].mxu1 }
0x1293   :  { %4699 = vst [vmem:[%s8789_s9 + $0x20] sm:$0xff] %v4681_v8  ;;  %v4684_v36 = vadd.f32 %v4683_v42, %v4581_v32 }
0x1294   :  { %4702 = vst [vmem:[%s8789_s9 + $0x38] sm:$0xff] %v4692_v35 }
0x1295   :  { %4700 = vst [vmem:[%s8789_s9 + $0x28] sm:$0xff] %v4684_v36 }
0x1296   :  { %4707 = vsyncpa [#allocation3], 1 }
0x1297   :  { %4708 = vsyncpa [#allocation5], 1 }

</bundles_post_ra>
